<compile_context>
chip_gen: v7x
topology: tpu7x:2x2x1
jax: 0.10.0
libtpu: 0.0.40
codegen_flags: <defaults>
</compile_context>

<pallas_src>
import functools

import numpy as np
import jax
import jax.numpy as jnp
from jax.experimental import pallas as pl
from jax.experimental.pallas import tpu as pltpu


_TAPS = tuple((dy, dx) for dy in (-1, 0, 1) for dx in (-1, 0, 1))
_LAYER_ORDER = (("omega", 0), ("omega", 1), ("omega", 2),
                ("alpha", 0), ("alpha", 1), ("alpha", 2),
                ("hy", 0), ("hy", 1), ("hy", 2), ("hy", 3))


# ---------------------------------------------------------------------------
# Host-side constant / weight packing.
# ---------------------------------------------------------------------------
def _make_mask_table(H, W):
    """(11, H*W) f32 constants: rows 0..8 = zero-padding validity mask of each
    3x3 tap (dy, dx); row 9 = (w == 0); row 10 = (w == W-1)."""
    HW = H * W
    col = np.arange(HW)
    hh, ww = col // W, col % W
    rows = []
    for dy, dx in _TAPS:
        valid = (hh + dy >= 0) & (hh + dy < H) & (ww + dx >= 0) & (ww + dx < W)
        rows.append(valid.astype(np.float32))
    rows.append((ww == 0).astype(np.float32))
    rows.append((ww == W - 1).astype(np.float32))
    return jnp.asarray(np.stack(rows, axis=0))


def _build_weight_tables(params, Bt):
    """Pack every conv layer as a block-diagonal (over the sublane-packed
    batch) im2col weight into one padded (n_layers, Bt*max_cout, 9*Bt*max_cin)
    table, plus the matching (n_layers, Bt*max_cout, 1) bias table.

    Tap slab row / weight column ordering: col = ti*(Bt*cin) + bb*cin + ci,
    with ti = (dy+1)*3 + (dx+1) (matching _TAPS and the PyTorch OIHW kernel).
    """
    couts = [int(params[n][i][0].shape[0]) for n, i in _LAYER_ORDER]
    cins = [int(params[n][i][0].shape[1]) for n, i in _LAYER_ORDER]
    n_layers = len(_LAYER_ORDER)
    max_rows = Bt * max(couts)
    max_cols = 9 * Bt * max(cins)
    w_all = jnp.zeros((n_layers, max_rows, max_cols), jnp.float32)
    b_all = jnp.zeros((n_layers, max_rows, 1), jnp.float32)
    cfgs = {"omega": [], "alpha": [], "hy": []}
    eye = jnp.eye(Bt, dtype=jnp.float32)
    for l, (name, i) in enumerate(_LAYER_ORDER):
        w, b = params[name][i]
        cout, cin = int(w.shape[0]), int(w.shape[1])
        cfgs[name].append((l, cin, cout))
        wt = jnp.transpose(w, (2, 3, 0, 1)).reshape(9, cout, cin)   # (tap, co, ci)
        blocks = [jnp.kron(eye, wt[ti]) for ti in range(9)]         # (Bt*cout, Bt*cin)
        w_layer = jnp.concatenate(blocks, axis=1)                   # (Bt*cout, 9*Bt*cin)
        w_all = w_all.at[l, :Bt * cout, :9 * Bt * cin].set(w_layer)
        b_all = b_all.at[l, :Bt * cout, 0].set(jnp.tile(b, (Bt,)))
    return w_all, b_all, cfgs


def _pick_batch_block(B, c_out):
    """Pack Bt batch elements per grid step so Bt*c_out fills 8 sublanes."""
    bt = max(1, min(B, 8 // max(1, c_out)))
    while B % bt:
        bt -= 1
    return max(bt, 1)


# ---------------------------------------------------------------------------
# Fused kernel: encoders (im2col MXU convs) -> T-step coRNN -> linear readout.
# ---------------------------------------------------------------------------
def _fused_kernel(x_ref, wall_ref, ball_ref, masks_ref, wr_ref,
                  logits_ref, yseq_ref, *, H, W, T, dt, cfgs, Bt, c_in, c_out):
    HW = H * W
    tap_masks = [masks_ref[ti:ti + 1, :] for ti in range(9)]        # 9 x (1, HW)
    w_first = masks_ref[9:10, :] > 0.5                              # (1, HW) bool
    w_last = masks_ref[10:11, :] > 0.5
    relu = lambda v: jnp.maximum(v, 0.0)

    def build_taps(h):
        # h: (Bt*cin, HW) packed activations -> (9*Bt*cin, HW) im2col slab.
        parts = []
        for ti, (dy, dx) in enumerate(_TAPS):
            # output[p] reads input[(p + dy*W + dx) % HW], zeroed outside image.
            shift = (-(dy * W + dx)) % HW
            sh = h if shift == 0 else pltpu.roll(h, shift=shift, axis=1)
            parts.append(sh * tap_masks[ti])
        return jnp.concatenate(parts, axis=0)

    def conv_layer(taps, lidx, cin, cout, act):
        rows, cols = Bt * cout, 9 * Bt * cin
        wl = wall_ref[lidx, :rows, :cols]                           # (rows, cols)
        bl = ball_ref[lidx, :rows, :]                               # (rows, 1)
        return act(jnp.dot(wl, taps, preferred_element_type=jnp.float32) + bl)

    def run_encoder(layer_cfgs, acts, first_taps):
        taps = first_taps
        h = None
        for i, ((lidx, cin, cout), act) in enumerate(zip(layer_cfgs, acts)):
            h = conv_layer(taps, lidx, cin, cout, act)
            if i + 1 < len(layer_cfgs):
                taps = build_taps(h)
        return h                                                    # (Bt*c_out, HW)

    x = x_ref[...].reshape(Bt * c_in, HW)
    taps_x = build_taps(x)                      # layer-1 taps shared by 3 encoders
    omega = run_encoder(cfgs["omega"], [relu] * 3, taps_x)
    alpha = run_encoder(cfgs["alpha"], [relu] * 3, taps_x)
    hy = run_encoder(cfgs["hy"], [relu] * 3 + [jnp.tanh], taps_x)
    hz = jnp.zeros_like(hy)

    # --- coRNN recurrence: circular 5-point Laplacian + symplectic update ---
    for t in range(T):
        north = pltpu.roll(hy, shift=W, axis=1)                 # hy[(h-1)%H, w]
        south = pltpu.roll(hy, shift=HW - W, axis=1)            # hy[(h+1)%H, w]
        west = jnp.where(w_first,
                         pltpu.roll(hy, shift=(1 - W) % HW, axis=1),
                         pltpu.roll(hy, shift=1, axis=1))       # hy[h, (w-1)%W]
        east = jnp.where(w_last,
                         pltpu.roll(hy, shift=W - 1, axis=1),
                         pltpu.roll(hy, shift=HW - 1, axis=1))  # hy[h, (w+1)%W]
        spring = jnp.tanh(north + south + west + east - 4.0 * hy)
        hz = hz + dt * (spring - omega * hy - alpha * hz)
        hy = hy + dt * hz
        yseq_ref[:, t, :, :] = hy.reshape(Bt, c_out, HW)        # single store / step

    # --- per-pixel linear readout over the T*c_out temporal features (MXU) ---
    # TODO(synk): the PyTorch module's `readout` is an externally supplied
    # callable (default string 'fft'); a deterministic per-pixel linear readout
    # is substituted here (fc_time / fc_readout unused).
    for bb in range(Bt):
        feats = yseq_ref[bb].reshape(T * c_out, HW)             # readout slab
        logits_ref[bb] = jnp.dot(wr_ref[...], feats,
                                 preferred_element_type=jnp.float32)


# ---------------------------------------------------------------------------
# Wrapper: single fused pallas_call.
# ---------------------------------------------------------------------------
def model_forward(params, x, *, dt, T):
    B, c_in, H, W = x.shape
    HW = H * W
    c_out = int(params["hy"][-1][0].shape[0])
    Bt = _pick_batch_block(B, c_out)
    w_all, b_all, cfgs = _build_weight_tables(params, Bt)
    masks = _make_mask_table(H, W)
    w_r = params["readout_w"]                                    # (num_classes, T*c_out)
    K = int(w_r.shape[0])
    n_layers, max_rows, max_cols = (int(s) for s in w_all.shape)

    x_flat = x.reshape(B, c_in, HW)
    kern = functools.partial(_fused_kernel, H=H, W=W, T=T, dt=dt,
                             cfgs=cfgs, Bt=Bt, c_in=c_in, c_out=c_out)

    logits_flat, yseq_flat = pl.pallas_call(
        kern,
        out_shape=(
            jax.ShapeDtypeStruct((B, K, HW), jnp.float32),
            jax.ShapeDtypeStruct((B, T, c_out, HW), jnp.float32),
        ),
        grid=(B // Bt,),
        in_specs=[
            pl.BlockSpec((Bt, c_in, HW), lambda g: (g, 0, 0)),           # input frame
            pl.BlockSpec((n_layers, max_rows, max_cols), lambda g: (0, 0, 0)),  # conv W
            pl.BlockSpec((n_layers, max_rows, 1), lambda g: (0, 0, 0)),  # conv bias
            pl.BlockSpec((11, HW), lambda g: (0, 0)),                    # masks
            pl.BlockSpec((K, T * c_out), lambda g: (0, 0)),              # readout W
        ],
        out_specs=(
            pl.BlockSpec((Bt, K, HW), lambda g: (g, 0, 0)),
            pl.BlockSpec((Bt, T, c_out, HW), lambda g: (g, 0, 0, 0)),
        ),
        compiler_params=pltpu.CompilerParams(
            dimension_semantics=("parallel",)),
    )(x_flat, w_all, b_all, masks, w_r)

    return (logits_flat.reshape(B, K, H, W),
            yseq_flat.reshape(B, T, c_out, H, W))


# ---------------------------------------------------------------------------
# Pure-JAX reference (for correctness check) + deterministic init + demo.
# ---------------------------------------------------------------------------
def _ref_forward(params, x, *, dt, T):
    def conv(h, w, b):
        out = jax.lax.conv_general_dilated(
            h, w, window_strides=(1, 1), padding=((1, 1), (1, 1)),
            dimension_numbers=("NCHW", "OIHW", "NCHW"))
        return out + b.reshape(1, -1, 1, 1)

    relu = lambda v: jnp.maximum(v, 0.0)

    def enc(layers, acts, h):
        for (w, b), a in zip(layers, acts):
            h = a(conv(h, w, b))
        return h

    omega = enc(params["omega"], [relu] * 3, x)
    alpha = enc(params["alpha"], [relu] * 3, x)
    hy = enc(params["hy"], [relu] * 3 + [jnp.tanh], x)
    hz = jnp.zeros_like(hy)
    ys = []
    for _ in range(T):
        lap = (jnp.roll(hy, 1, axis=2) + jnp.roll(hy, -1, axis=2)
               + jnp.roll(hy, 1, axis=3) + jnp.roll(hy, -1, axis=3) - 4.0 * hy)
        hz = hz + dt * (jnp.tanh(lap) - omega * hy - alpha * hz)
        hy = hy + dt * hz
        ys.append(hy)
    y_seq = jnp.stack(ys, axis=1)                               # (B, T, c, H, W)
    B, _, c, H, W = y_seq.shape
    feats = y_seq.reshape(B, T * c, H * W)
    logits = jnp.einsum("kf,bfp->bkp", params["readout_w"], feats)
    return logits.reshape(B, -1, H, W), y_seq


def _init_conv(key, cin, cout, scale=0.2):
    kw, kb = jax.random.split(key)
    w = scale * jax.random.normal(kw, (cout, cin, 3, 3), jnp.float32)
    b = 0.05 * jax.random.normal(kb, (cout,), jnp.float32)
    return w, b


def init_params(key, c_in, c_mid, c_out, num_classes, T):
    keys = jax.random.split(key, 11)
    return {
        "omega": [_init_conv(keys[0], c_in, c_mid), _init_conv(keys[1], c_mid, c_mid),
                  _init_conv(keys[2], c_mid, c_out)],
        "alpha": [_init_conv(keys[3], c_in, c_mid), _init_conv(keys[4], c_mid, c_mid),
                  _init_conv(keys[5], c_mid, c_out)],
        "hy": [_init_conv(keys[6], c_in, c_mid), _init_conv(keys[7], c_mid, c_mid),
               _init_conv(keys[8], c_mid, c_mid), _init_conv(keys[9], c_mid, c_out)],
        "readout_w": 0.1 * jax.random.normal(keys[10], (num_classes, T * c_out),
                                             jnp.float32),
    }


if __name__ == "__main__":
    B, c_in, c_mid, c_out = 2, 1, 4, 4
    img_size, num_classes, T, dt = 16, 7, 8, 0.5

    key = jax.random.PRNGKey(0)
    kp, kx = jax.random.split(key)
    params = init_params(kp, c_in, c_mid, c_out, num_classes, T)
    x = jax.random.normal(kx, (B, c_in, img_size, img_size), jnp.float32)

    fwd = jax.jit(functools.partial(model_forward, dt=dt, T=T))
    logits, y_seq = fwd(params, x)
    jax.block_until_ready((logits, y_seq))

    assert logits.shape == (B, num_classes, img_size, img_size)
    assert y_seq.shape == (B, T, c_out, img_size, img_size)
    assert bool(jnp.all(jnp.isfinite(logits))) and bool(jnp.all(jnp.isfinite(y_seq)))

    ref_logits, ref_y = jax.jit(functools.partial(_ref_forward, dt=dt, T=T))(params, x)
    assert bool(jnp.allclose(y_seq, ref_y, atol=3e-2, rtol=3e-2)), "y_seq mismatch"
    assert bool(jnp.allclose(logits, ref_logits, atol=3e-2, rtol=3e-2)), "logits mismatch"

    print("KERNEL_OK")
</pallas_src>

<mosaic_0001>
module attributes {stable_mosaic.version = 11 : i64} {
  func.func @_fused_kernel(%arg0: i32, %arg1: memref<2x1x256xf32, #tpu.memory_space<vmem>>, %arg2: memref<10x8x72xf32, #tpu.memory_space<vmem>>, %arg3: memref<10x8x1xf32, #tpu.memory_space<vmem>>, %arg4: memref<11x256xf32, #tpu.memory_space<vmem>>, %arg5: memref<7x32xf32, #tpu.memory_space<vmem>>, %arg6: memref<2x7x256xf32, #tpu.memory_space<vmem>>, %arg7: memref<2x8x4x256xf32, #tpu.memory_space<vmem>>) attributes {dimension_semantics = [#tpu.dimension_semantics<parallel>], iteration_bounds = array<i64: 1>, scalar_prefetch = 0 : i64, scratch_operands = 0 : i64, tpu.core_type = #tpu.core_type<tc>, window_params = [{transform_indices = @transform_0, window_bounds = array<i64: 2, 1, 256>}, {pipeline_mode = #tpu.pipeline_mode<synchronous>, transform_indices = @transform_1, window_bounds = array<i64: 10, 8, 72>}, {pipeline_mode = #tpu.pipeline_mode<synchronous>, transform_indices = @transform_2, window_bounds = array<i64: 10, 8, 1>}, {pipeline_mode = #tpu.pipeline_mode<synchronous>, transform_indices = @transform_3, window_bounds = array<i64: 11, 256>}, {pipeline_mode = #tpu.pipeline_mode<synchronous>, transform_indices = @transform_4, window_bounds = array<i64: 7, 32>}, {transform_indices = @transform_5, window_bounds = array<i64: 2, 7, 256>}, {transform_indices = @transform_6, window_bounds = array<i64: 2, 8, 4, 256>}]} {
    %c0 = arith.constant 0 : index
    %c0_0 = arith.constant 0 : index
    %0 = vector.load %arg4[%c0, %c0_0] : memref<11x256xf32, #tpu.memory_space<vmem>>, vector<1x256xf32>
    %c1 = arith.constant 1 : index
    %c0_1 = arith.constant 0 : index
    %1 = vector.load %arg4[%c1, %c0_1] : memref<11x256xf32, #tpu.memory_space<vmem>>, vector<1x256xf32>
    %c2 = arith.constant 2 : index
    %c0_2 = arith.constant 0 : index
    %2 = vector.load %arg4[%c2, %c0_2] : memref<11x256xf32, #tpu.memory_space<vmem>>, vector<1x256xf32>
    %c3 = arith.constant 3 : index
    %c0_3 = arith.constant 0 : index
    %3 = vector.load %arg4[%c3, %c0_3] : memref<11x256xf32, #tpu.memory_space<vmem>>, vector<1x256xf32>
    %c4 = arith.constant 4 : index
    %c0_4 = arith.constant 0 : index
    %4 = vector.load %arg4[%c4, %c0_4] : memref<11x256xf32, #tpu.memory_space<vmem>>, vector<1x256xf32>
    %c5 = arith.constant 5 : index
    %c0_5 = arith.constant 0 : index
    %5 = vector.load %arg4[%c5, %c0_5] : memref<11x256xf32, #tpu.memory_space<vmem>>, vector<1x256xf32>
    %c6 = arith.constant 6 : index
    %c0_6 = arith.constant 0 : index
    %6 = vector.load %arg4[%c6, %c0_6] : memref<11x256xf32, #tpu.memory_space<vmem>>, vector<1x256xf32>
    %c7 = arith.constant 7 : index
    %c0_7 = arith.constant 0 : index
    %7 = vector.load %arg4[%c7, %c0_7] : memref<11x256xf32, #tpu.memory_space<vmem>>, vector<1x256xf32>
    %c8 = arith.constant 8 : index
    %c0_8 = arith.constant 0 : index
    %8 = vector.load %arg4[%c8, %c0_8] : memref<11x256xf32, #tpu.memory_space<vmem>>, vector<1x256xf32>
    %c9 = arith.constant 9 : index
    %c0_9 = arith.constant 0 : index
    %9 = vector.load %arg4[%c9, %c0_9] : memref<11x256xf32, #tpu.memory_space<vmem>>, vector<1x256xf32>
    %cst = arith.constant 5.000000e-01 : f32
    %10 = vector.broadcast %cst : f32 to vector<1x256xf32>
    %11 = arith.cmpf ogt, %9, %10 : vector<1x256xf32>
    %c10 = arith.constant 10 : index
    %c0_10 = arith.constant 0 : index
    %12 = vector.load %arg4[%c10, %c0_10] : memref<11x256xf32, #tpu.memory_space<vmem>>, vector<1x256xf32>
    %cst_11 = arith.constant 5.000000e-01 : f32
    %13 = vector.broadcast %cst_11 : f32 to vector<1x256xf32>
    %14 = arith.cmpf ogt, %12, %13 : vector<1x256xf32>
    %c0_12 = arith.constant 0 : index
    %c0_13 = arith.constant 0 : index
    %c0_14 = arith.constant 0 : index
    %15 = vector.load %arg1[%c0_12, %c0_13, %c0_14] : memref<2x1x256xf32, #tpu.memory_space<vmem>>, vector<2x1x256xf32>
    %16 = vector.shape_cast %15 : vector<2x1x256xf32> to vector<2x256xf32>
    %c17_i32 = arith.constant 17 : i32
    %17 = tpu.dynamic_rotate %16 by %c17_i32 dim 1 : vector<2x256xf32>, i32 -> vector<2x256xf32>
    %18 = vector.broadcast %0 : vector<1x256xf32> to vector<2x256xf32>
    %19 = arith.mulf %17, %18 : vector<2x256xf32>
    %c16_i32 = arith.constant 16 : i32
    %20 = tpu.dynamic_rotate %16 by %c16_i32 dim 1 : vector<2x256xf32>, i32 -> vector<2x256xf32>
    %21 = vector.broadcast %1 : vector<1x256xf32> to vector<2x256xf32>
    %22 = arith.mulf %20, %21 : vector<2x256xf32>
    %c15_i32 = arith.constant 15 : i32
    %23 = tpu.dynamic_rotate %16 by %c15_i32 dim 1 : vector<2x256xf32>, i32 -> vector<2x256xf32>
    %24 = vector.broadcast %2 : vector<1x256xf32> to vector<2x256xf32>
    %25 = arith.mulf %23, %24 : vector<2x256xf32>
    %c1_i32 = arith.constant 1 : i32
    %26 = tpu.dynamic_rotate %16 by %c1_i32 dim 1 : vector<2x256xf32>, i32 -> vector<2x256xf32>
    %27 = vector.broadcast %3 : vector<1x256xf32> to vector<2x256xf32>
    %28 = arith.mulf %26, %27 : vector<2x256xf32>
    %29 = vector.broadcast %4 : vector<1x256xf32> to vector<2x256xf32>
    %30 = arith.mulf %16, %29 : vector<2x256xf32>
    %c255_i32 = arith.constant 255 : i32
    %31 = tpu.dynamic_rotate %16 by %c255_i32 dim 1 : vector<2x256xf32>, i32 -> vector<2x256xf32>
    %32 = vector.broadcast %5 : vector<1x256xf32> to vector<2x256xf32>
    %33 = arith.mulf %31, %32 : vector<2x256xf32>
    %c241_i32 = arith.constant 241 : i32
    %34 = tpu.dynamic_rotate %16 by %c241_i32 dim 1 : vector<2x256xf32>, i32 -> vector<2x256xf32>
    %35 = vector.broadcast %6 : vector<1x256xf32> to vector<2x256xf32>
    %36 = arith.mulf %34, %35 : vector<2x256xf32>
    %c240_i32 = arith.constant 240 : i32
    %37 = tpu.dynamic_rotate %16 by %c240_i32 dim 1 : vector<2x256xf32>, i32 -> vector<2x256xf32>
    %38 = vector.broadcast %7 : vector<1x256xf32> to vector<2x256xf32>
    %39 = arith.mulf %37, %38 : vector<2x256xf32>
    %c239_i32 = arith.constant 239 : i32
    %40 = tpu.dynamic_rotate %16 by %c239_i32 dim 1 : vector<2x256xf32>, i32 -> vector<2x256xf32>
    %41 = vector.broadcast %8 : vector<1x256xf32> to vector<2x256xf32>
    %42 = arith.mulf %40, %41 : vector<2x256xf32>
    %43 = tpu.concatenate %19, %22, %25, %28, %30, %33, %36, %39, %42 in 0 : vector<2x256xf32>, vector<2x256xf32>, vector<2x256xf32>, vector<2x256xf32>, vector<2x256xf32>, vector<2x256xf32>, vector<2x256xf32>, vector<2x256xf32>, vector<2x256xf32> -> vector<18x256xf32>
    %c0_15 = arith.constant 0 : index
    %c0_16 = arith.constant 0 : index
    %c0_17 = arith.constant 0 : index
    %44 = vector.load %arg2[%c0_15, %c0_16, %c0_17] : memref<10x8x72xf32, #tpu.memory_space<vmem>>, vector<1x8x18xf32>
    %45 = vector.shape_cast %44 : vector<1x8x18xf32> to vector<8x18xf32>
    %c0_18 = arith.constant 0 : index
    %c0_19 = arith.constant 0 : index
    %c0_20 = arith.constant 0 : index
    %46 = vector.load %arg3[%c0_18, %c0_19, %c0_20] : memref<10x8x1xf32, #tpu.memory_space<vmem>>, vector<1x8x1xf32>
    %47 = vector.shape_cast %46 : vector<1x8x1xf32> to vector<8x1xf32>
    %cst_21 = arith.constant dense<0.000000e+00> : vector<8x256xf32>
    %48 = tpu.matmul %45, %43, %cst_21 {dimension_numbers = #tpu.dot_dimension_numbers<[1], [0], [0], [1], [0, 0, 1, 1], [], []>} : vector<8x18xf32>, vector<18x256xf32>, vector<8x256xf32> -> vector<8x256xf32>
    %49 = vector.broadcast %47 : vector<8x1xf32> to vector<8x256xf32>
    %50 = arith.addf %48, %49 : vector<8x256xf32>
    %cst_22 = arith.constant 0.000000e+00 : f32
    %51 = vector.broadcast %cst_22 : f32 to vector<8x256xf32>
    %52 = arith.maximumf %50, %51 : vector<8x256xf32>
    %c17_i32_23 = arith.constant 17 : i32
    %53 = tpu.dynamic_rotate %52 by %c17_i32_23 dim 1 : vector<8x256xf32>, i32 -> vector<8x256xf32>
    %54 = vector.broadcast %0 : vector<1x256xf32> to vector<8x256xf32>
    %55 = arith.mulf %53, %54 : vector<8x256xf32>
    %c16_i32_24 = arith.constant 16 : i32
    %56 = tpu.dynamic_rotate %52 by %c16_i32_24 dim 1 : vector<8x256xf32>, i32 -> vector<8x256xf32>
    %57 = vector.broadcast %1 : vector<1x256xf32> to vector<8x256xf32>
    %58 = arith.mulf %56, %57 : vector<8x256xf32>
    %c15_i32_25 = arith.constant 15 : i32
    %59 = tpu.dynamic_rotate %52 by %c15_i32_25 dim 1 : vector<8x256xf32>, i32 -> vector<8x256xf32>
    %60 = vector.broadcast %2 : vector<1x256xf32> to vector<8x256xf32>
    %61 = arith.mulf %59, %60 : vector<8x256xf32>
    %c1_i32_26 = arith.constant 1 : i32
    %62 = tpu.dynamic_rotate %52 by %c1_i32_26 dim 1 : vector<8x256xf32>, i32 -> vector<8x256xf32>
    %63 = vector.broadcast %3 : vector<1x256xf32> to vector<8x256xf32>
    %64 = arith.mulf %62, %63 : vector<8x256xf32>
    %65 = vector.broadcast %4 : vector<1x256xf32> to vector<8x256xf32>
    %66 = arith.mulf %52, %65 : vector<8x256xf32>
    %c255_i32_27 = arith.constant 255 : i32
    %67 = tpu.dynamic_rotate %52 by %c255_i32_27 dim 1 : vector<8x256xf32>, i32 -> vector<8x256xf32>
    %68 = vector.broadcast %5 : vector<1x256xf32> to vector<8x256xf32>
    %69 = arith.mulf %67, %68 : vector<8x256xf32>
    %c241_i32_28 = arith.constant 241 : i32
    %70 = tpu.dynamic_rotate %52 by %c241_i32_28 dim 1 : vector<8x256xf32>, i32 -> vector<8x256xf32>
    %71 = vector.broadcast %6 : vector<1x256xf32> to vector<8x256xf32>
    %72 = arith.mulf %70, %71 : vector<8x256xf32>
    %c240_i32_29 = arith.constant 240 : i32
    %73 = tpu.dynamic_rotate %52 by %c240_i32_29 dim 1 : vector<8x256xf32>, i32 -> vector<8x256xf32>
    %74 = vector.broadcast %7 : vector<1x256xf32> to vector<8x256xf32>
    %75 = arith.mulf %73, %74 : vector<8x256xf32>
    %c239_i32_30 = arith.constant 239 : i32
    %76 = tpu.dynamic_rotate %52 by %c239_i32_30 dim 1 : vector<8x256xf32>, i32 -> vector<8x256xf32>
    %77 = vector.broadcast %8 : vector<1x256xf32> to vector<8x256xf32>
    %78 = arith.mulf %76, %77 : vector<8x256xf32>
    %79 = tpu.concatenate %55, %58, %61, %64, %66, %69, %72, %75, %78 in 0 : vector<8x256xf32>, vector<8x256xf32>, vector<8x256xf32>, vector<8x256xf32>, vector<8x256xf32>, vector<8x256xf32>, vector<8x256xf32>, vector<8x256xf32>, vector<8x256xf32> -> vector<72x256xf32>
    %c1_31 = arith.constant 1 : index
    %c0_32 = arith.constant 0 : index
    %c0_33 = arith.constant 0 : index
    %80 = vector.load %arg2[%c1_31, %c0_32, %c0_33] : memref<10x8x72xf32, #tpu.memory_space<vmem>>, vector<1x8x72xf32>
    %81 = vector.shape_cast %80 : vector<1x8x72xf32> to vector<8x72xf32>
    %c1_34 = arith.constant 1 : index
    %c0_35 = arith.constant 0 : index
    %c0_36 = arith.constant 0 : index
    %82 = vector.load %arg3[%c1_34, %c0_35, %c0_36] : memref<10x8x1xf32, #tpu.memory_space<vmem>>, vector<1x8x1xf32>
    %83 = vector.shape_cast %82 : vector<1x8x1xf32> to vector<8x1xf32>
    %cst_37 = arith.constant dense<0.000000e+00> : vector<8x256xf32>
    %84 = tpu.matmul %81, %79, %cst_37 {dimension_numbers = #tpu.dot_dimension_numbers<[1], [0], [0], [1], [0, 0, 1, 1], [], []>} : vector<8x72xf32>, vector<72x256xf32>, vector<8x256xf32> -> vector<8x256xf32>
    %85 = vector.broadcast %83 : vector<8x1xf32> to vector<8x256xf32>
    %86 = arith.addf %84, %85 : vector<8x256xf32>
    %cst_38 = arith.constant 0.000000e+00 : f32
    %87 = vector.broadcast %cst_38 : f32 to vector<8x256xf32>
    %88 = arith.maximumf %86, %87 : vector<8x256xf32>
    %c17_i32_39 = arith.constant 17 : i32
    %89 = tpu.dynamic_rotate %88 by %c17_i32_39 dim 1 : vector<8x256xf32>, i32 -> vector<8x256xf32>
    %90 = vector.broadcast %0 : vector<1x256xf32> to vector<8x256xf32>
    %91 = arith.mulf %89, %90 : vector<8x256xf32>
    %c16_i32_40 = arith.constant 16 : i32
    %92 = tpu.dynamic_rotate %88 by %c16_i32_40 dim 1 : vector<8x256xf32>, i32 -> vector<8x256xf32>
    %93 = vector.broadcast %1 : vector<1x256xf32> to vector<8x256xf32>
    %94 = arith.mulf %92, %93 : vector<8x256xf32>
    %c15_i32_41 = arith.constant 15 : i32
    %95 = tpu.dynamic_rotate %88 by %c15_i32_41 dim 1 : vector<8x256xf32>, i32 -> vector<8x256xf32>
    %96 = vector.broadcast %2 : vector<1x256xf32> to vector<8x256xf32>
    %97 = arith.mulf %95, %96 : vector<8x256xf32>
    %c1_i32_42 = arith.constant 1 : i32
    %98 = tpu.dynamic_rotate %88 by %c1_i32_42 dim 1 : vector<8x256xf32>, i32 -> vector<8x256xf32>
    %99 = vector.broadcast %3 : vector<1x256xf32> to vector<8x256xf32>
    %100 = arith.mulf %98, %99 : vector<8x256xf32>
    %101 = vector.broadcast %4 : vector<1x256xf32> to vector<8x256xf32>
    %102 = arith.mulf %88, %101 : vector<8x256xf32>
    %c255_i32_43 = arith.constant 255 : i32
    %103 = tpu.dynamic_rotate %88 by %c255_i32_43 dim 1 : vector<8x256xf32>, i32 -> vector<8x256xf32>
    %104 = vector.broadcast %5 : vector<1x256xf32> to vector<8x256xf32>
    %105 = arith.mulf %103, %104 : vector<8x256xf32>
    %c241_i32_44 = arith.constant 241 : i32
    %106 = tpu.dynamic_rotate %88 by %c241_i32_44 dim 1 : vector<8x256xf32>, i32 -> vector<8x256xf32>
    %107 = vector.broadcast %6 : vector<1x256xf32> to vector<8x256xf32>
    %108 = arith.mulf %106, %107 : vector<8x256xf32>
    %c240_i32_45 = arith.constant 240 : i32
    %109 = tpu.dynamic_rotate %88 by %c240_i32_45 dim 1 : vector<8x256xf32>, i32 -> vector<8x256xf32>
    %110 = vector.broadcast %7 : vector<1x256xf32> to vector<8x256xf32>
    %111 = arith.mulf %109, %110 : vector<8x256xf32>
    %c239_i32_46 = arith.constant 239 : i32
    %112 = tpu.dynamic_rotate %88 by %c239_i32_46 dim 1 : vector<8x256xf32>, i32 -> vector<8x256xf32>
    %113 = vector.broadcast %8 : vector<1x256xf32> to vector<8x256xf32>
    %114 = arith.mulf %112, %113 : vector<8x256xf32>
    %115 = tpu.concatenate %91, %94, %97, %100, %102, %105, %108, %111, %114 in 0 : vector<8x256xf32>, vector<8x256xf32>, vector<8x256xf32>, vector<8x256xf32>, vector<8x256xf32>, vector<8x256xf32>, vector<8x256xf32>, vector<8x256xf32>, vector<8x256xf32> -> vector<72x256xf32>
    %c2_47 = arith.constant 2 : index
    %c0_48 = arith.constant 0 : index
    %c0_49 = arith.constant 0 : index
    %116 = vector.load %arg2[%c2_47, %c0_48, %c0_49] : memref<10x8x72xf32, #tpu.memory_space<vmem>>, vector<1x8x72xf32>
    %117 = vector.shape_cast %116 : vector<1x8x72xf32> to vector<8x72xf32>
    %c2_50 = arith.constant 2 : index
    %c0_51 = arith.constant 0 : index
    %c0_52 = arith.constant 0 : index
    %118 = vector.load %arg3[%c2_50, %c0_51, %c0_52] : memref<10x8x1xf32, #tpu.memory_space<vmem>>, vector<1x8x1xf32>
    %119 = vector.shape_cast %118 : vector<1x8x1xf32> to vector<8x1xf32>
    %cst_53 = arith.constant dense<0.000000e+00> : vector<8x256xf32>
    %120 = tpu.matmul %117, %115, %cst_53 {dimension_numbers = #tpu.dot_dimension_numbers<[1], [0], [0], [1], [0, 0, 1, 1], [], []>} : vector<8x72xf32>, vector<72x256xf32>, vector<8x256xf32> -> vector<8x256xf32>
    %121 = vector.broadcast %119 : vector<8x1xf32> to vector<8x256xf32>
    %122 = arith.addf %120, %121 : vector<8x256xf32>
    %cst_54 = arith.constant 0.000000e+00 : f32
    %123 = vector.broadcast %cst_54 : f32 to vector<8x256xf32>
    %124 = arith.maximumf %122, %123 : vector<8x256xf32>
    %c3_55 = arith.constant 3 : index
    %c0_56 = arith.constant 0 : index
    %c0_57 = arith.constant 0 : index
    %125 = vector.load %arg2[%c3_55, %c0_56, %c0_57] : memref<10x8x72xf32, #tpu.memory_space<vmem>>, vector<1x8x18xf32>
    %126 = vector.shape_cast %125 : vector<1x8x18xf32> to vector<8x18xf32>
    %c3_58 = arith.constant 3 : index
    %c0_59 = arith.constant 0 : index
    %c0_60 = arith.constant 0 : index
    %127 = vector.load %arg3[%c3_58, %c0_59, %c0_60] : memref<10x8x1xf32, #tpu.memory_space<vmem>>, vector<1x8x1xf32>
    %128 = vector.shape_cast %127 : vector<1x8x1xf32> to vector<8x1xf32>
    %cst_61 = arith.constant dense<0.000000e+00> : vector<8x256xf32>
    %129 = tpu.matmul %126, %43, %cst_61 {dimension_numbers = #tpu.dot_dimension_numbers<[1], [0], [0], [1], [0, 0, 1, 1], [], []>} : vector<8x18xf32>, vector<18x256xf32>, vector<8x256xf32> -> vector<8x256xf32>
    %130 = vector.broadcast %128 : vector<8x1xf32> to vector<8x256xf32>
    %131 = arith.addf %129, %130 : vector<8x256xf32>
    %cst_62 = arith.constant 0.000000e+00 : f32
    %132 = vector.broadcast %cst_62 : f32 to vector<8x256xf32>
    %133 = arith.maximumf %131, %132 : vector<8x256xf32>
    %c17_i32_63 = arith.constant 17 : i32
    %134 = tpu.dynamic_rotate %133 by %c17_i32_63 dim 1 : vector<8x256xf32>, i32 -> vector<8x256xf32>
    %135 = vector.broadcast %0 : vector<1x256xf32> to vector<8x256xf32>
    %136 = arith.mulf %134, %135 : vector<8x256xf32>
    %c16_i32_64 = arith.constant 16 : i32
    %137 = tpu.dynamic_rotate %133 by %c16_i32_64 dim 1 : vector<8x256xf32>, i32 -> vector<8x256xf32>
    %138 = vector.broadcast %1 : vector<1x256xf32> to vector<8x256xf32>
    %139 = arith.mulf %137, %138 : vector<8x256xf32>
    %c15_i32_65 = arith.constant 15 : i32
    %140 = tpu.dynamic_rotate %133 by %c15_i32_65 dim 1 : vector<8x256xf32>, i32 -> vector<8x256xf32>
    %141 = vector.broadcast %2 : vector<1x256xf32> to vector<8x256xf32>
    %142 = arith.mulf %140, %141 : vector<8x256xf32>
    %c1_i32_66 = arith.constant 1 : i32
    %143 = tpu.dynamic_rotate %133 by %c1_i32_66 dim 1 : vector<8x256xf32>, i32 -> vector<8x256xf32>
    %144 = vector.broadcast %3 : vector<1x256xf32> to vector<8x256xf32>
    %145 = arith.mulf %143, %144 : vector<8x256xf32>
    %146 = vector.broadcast %4 : vector<1x256xf32> to vector<8x256xf32>
    %147 = arith.mulf %133, %146 : vector<8x256xf32>
    %c255_i32_67 = arith.constant 255 : i32
    %148 = tpu.dynamic_rotate %133 by %c255_i32_67 dim 1 : vector<8x256xf32>, i32 -> vector<8x256xf32>
    %149 = vector.broadcast %5 : vector<1x256xf32> to vector<8x256xf32>
    %150 = arith.mulf %148, %149 : vector<8x256xf32>
    %c241_i32_68 = arith.constant 241 : i32
    %151 = tpu.dynamic_rotate %133 by %c241_i32_68 dim 1 : vector<8x256xf32>, i32 -> vector<8x256xf32>
    %152 = vector.broadcast %6 : vector<1x256xf32> to vector<8x256xf32>
    %153 = arith.mulf %151, %152 : vector<8x256xf32>
    %c240_i32_69 = arith.constant 240 : i32
    %154 = tpu.dynamic_rotate %133 by %c240_i32_69 dim 1 : vector<8x256xf32>, i32 -> vector<8x256xf32>
    %155 = vector.broadcast %7 : vector<1x256xf32> to vector<8x256xf32>
    %156 = arith.mulf %154, %155 : vector<8x256xf32>
    %c239_i32_70 = arith.constant 239 : i32
    %157 = tpu.dynamic_rotate %133 by %c239_i32_70 dim 1 : vector<8x256xf32>, i32 -> vector<8x256xf32>
    %158 = vector.broadcast %8 : vector<1x256xf32> to vector<8x256xf32>
    %159 = arith.mulf %157, %158 : vector<8x256xf32>
    %160 = tpu.concatenate %136, %139, %142, %145, %147, %150, %153, %156, %159 in 0 : vector<8x256xf32>, vector<8x256xf32>, vector<8x256xf32>, vector<8x256xf32>, vector<8x256xf32>, vector<8x256xf32>, vector<8x256xf32>, vector<8x256xf32>, vector<8x256xf32> -> vector<72x256xf32>
    %c4_71 = arith.constant 4 : index
    %c0_72 = arith.constant 0 : index
    %c0_73 = arith.constant 0 : index
    %161 = vector.load %arg2[%c4_71, %c0_72, %c0_73] : memref<10x8x72xf32, #tpu.memory_space<vmem>>, vector<1x8x72xf32>
    %162 = vector.shape_cast %161 : vector<1x8x72xf32> to vector<8x72xf32>
    %c4_74 = arith.constant 4 : index
    %c0_75 = arith.constant 0 : index
    %c0_76 = arith.constant 0 : index
    %163 = vector.load %arg3[%c4_74, %c0_75, %c0_76] : memref<10x8x1xf32, #tpu.memory_space<vmem>>, vector<1x8x1xf32>
    %164 = vector.shape_cast %163 : vector<1x8x1xf32> to vector<8x1xf32>
    %cst_77 = arith.constant dense<0.000000e+00> : vector<8x256xf32>
    %165 = tpu.matmul %162, %160, %cst_77 {dimension_numbers = #tpu.dot_dimension_numbers<[1], [0], [0], [1], [0, 0, 1, 1], [], []>} : vector<8x72xf32>, vector<72x256xf32>, vector<8x256xf32> -> vector<8x256xf32>
    %166 = vector.broadcast %164 : vector<8x1xf32> to vector<8x256xf32>
    %167 = arith.addf %165, %166 : vector<8x256xf32>
    %cst_78 = arith.constant 0.000000e+00 : f32
    %168 = vector.broadcast %cst_78 : f32 to vector<8x256xf32>
    %169 = arith.maximumf %167, %168 : vector<8x256xf32>
    %c17_i32_79 = arith.constant 17 : i32
    %170 = tpu.dynamic_rotate %169 by %c17_i32_79 dim 1 : vector<8x256xf32>, i32 -> vector<8x256xf32>
    %171 = vector.broadcast %0 : vector<1x256xf32> to vector<8x256xf32>
    %172 = arith.mulf %170, %171 : vector<8x256xf32>
    %c16_i32_80 = arith.constant 16 : i32
    %173 = tpu.dynamic_rotate %169 by %c16_i32_80 dim 1 : vector<8x256xf32>, i32 -> vector<8x256xf32>
    %174 = vector.broadcast %1 : vector<1x256xf32> to vector<8x256xf32>
    %175 = arith.mulf %173, %174 : vector<8x256xf32>
    %c15_i32_81 = arith.constant 15 : i32
    %176 = tpu.dynamic_rotate %169 by %c15_i32_81 dim 1 : vector<8x256xf32>, i32 -> vector<8x256xf32>
    %177 = vector.broadcast %2 : vector<1x256xf32> to vector<8x256xf32>
    %178 = arith.mulf %176, %177 : vector<8x256xf32>
    %c1_i32_82 = arith.constant 1 : i32
    %179 = tpu.dynamic_rotate %169 by %c1_i32_82 dim 1 : vector<8x256xf32>, i32 -> vector<8x256xf32>
    %180 = vector.broadcast %3 : vector<1x256xf32> to vector<8x256xf32>
    %181 = arith.mulf %179, %180 : vector<8x256xf32>
    %182 = vector.broadcast %4 : vector<1x256xf32> to vector<8x256xf32>
    %183 = arith.mulf %169, %182 : vector<8x256xf32>
    %c255_i32_83 = arith.constant 255 : i32
    %184 = tpu.dynamic_rotate %169 by %c255_i32_83 dim 1 : vector<8x256xf32>, i32 -> vector<8x256xf32>
    %185 = vector.broadcast %5 : vector<1x256xf32> to vector<8x256xf32>
    %186 = arith.mulf %184, %185 : vector<8x256xf32>
    %c241_i32_84 = arith.constant 241 : i32
    %187 = tpu.dynamic_rotate %169 by %c241_i32_84 dim 1 : vector<8x256xf32>, i32 -> vector<8x256xf32>
    %188 = vector.broadcast %6 : vector<1x256xf32> to vector<8x256xf32>
    %189 = arith.mulf %187, %188 : vector<8x256xf32>
    %c240_i32_85 = arith.constant 240 : i32
    %190 = tpu.dynamic_rotate %169 by %c240_i32_85 dim 1 : vector<8x256xf32>, i32 -> vector<8x256xf32>
    %191 = vector.broadcast %7 : vector<1x256xf32> to vector<8x256xf32>
    %192 = arith.mulf %190, %191 : vector<8x256xf32>
    %c239_i32_86 = arith.constant 239 : i32
    %193 = tpu.dynamic_rotate %169 by %c239_i32_86 dim 1 : vector<8x256xf32>, i32 -> vector<8x256xf32>
    %194 = vector.broadcast %8 : vector<1x256xf32> to vector<8x256xf32>
    %195 = arith.mulf %193, %194 : vector<8x256xf32>
    %196 = tpu.concatenate %172, %175, %178, %181, %183, %186, %189, %192, %195 in 0 : vector<8x256xf32>, vector<8x256xf32>, vector<8x256xf32>, vector<8x256xf32>, vector<8x256xf32>, vector<8x256xf32>, vector<8x256xf32>, vector<8x256xf32>, vector<8x256xf32> -> vector<72x256xf32>
    %c5_87 = arith.constant 5 : index
    %c0_88 = arith.constant 0 : index
    %c0_89 = arith.constant 0 : index
    %197 = vector.load %arg2[%c5_87, %c0_88, %c0_89] : memref<10x8x72xf32, #tpu.memory_space<vmem>>, vector<1x8x72xf32>
    %198 = vector.shape_cast %197 : vector<1x8x72xf32> to vector<8x72xf32>
    %c5_90 = arith.constant 5 : index
    %c0_91 = arith.constant 0 : index
    %c0_92 = arith.constant 0 : index
    %199 = vector.load %arg3[%c5_90, %c0_91, %c0_92] : memref<10x8x1xf32, #tpu.memory_space<vmem>>, vector<1x8x1xf32>
    %200 = vector.shape_cast %199 : vector<1x8x1xf32> to vector<8x1xf32>
    %cst_93 = arith.constant dense<0.000000e+00> : vector<8x256xf32>
    %201 = tpu.matmul %198, %196, %cst_93 {dimension_numbers = #tpu.dot_dimension_numbers<[1], [0], [0], [1], [0, 0, 1, 1], [], []>} : vector<8x72xf32>, vector<72x256xf32>, vector<8x256xf32> -> vector<8x256xf32>
    %202 = vector.broadcast %200 : vector<8x1xf32> to vector<8x256xf32>
    %203 = arith.addf %201, %202 : vector<8x256xf32>
    %cst_94 = arith.constant 0.000000e+00 : f32
    %204 = vector.broadcast %cst_94 : f32 to vector<8x256xf32>
    %205 = arith.maximumf %203, %204 : vector<8x256xf32>
    %c6_95 = arith.constant 6 : index
    %c0_96 = arith.constant 0 : index
    %c0_97 = arith.constant 0 : index
    %206 = vector.load %arg2[%c6_95, %c0_96, %c0_97] : memref<10x8x72xf32, #tpu.memory_space<vmem>>, vector<1x8x18xf32>
    %207 = vector.shape_cast %206 : vector<1x8x18xf32> to vector<8x18xf32>
    %c6_98 = arith.constant 6 : index
    %c0_99 = arith.constant 0 : index
    %c0_100 = arith.constant 0 : index
    %208 = vector.load %arg3[%c6_98, %c0_99, %c0_100] : memref<10x8x1xf32, #tpu.memory_space<vmem>>, vector<1x8x1xf32>
    %209 = vector.shape_cast %208 : vector<1x8x1xf32> to vector<8x1xf32>
    %cst_101 = arith.constant dense<0.000000e+00> : vector<8x256xf32>
    %210 = tpu.matmul %207, %43, %cst_101 {dimension_numbers = #tpu.dot_dimension_numbers<[1], [0], [0], [1], [0, 0, 1, 1], [], []>} : vector<8x18xf32>, vector<18x256xf32>, vector<8x256xf32> -> vector<8x256xf32>
    %211 = vector.broadcast %209 : vector<8x1xf32> to vector<8x256xf32>
    %212 = arith.addf %210, %211 : vector<8x256xf32>
    %cst_102 = arith.constant 0.000000e+00 : f32
    %213 = vector.broadcast %cst_102 : f32 to vector<8x256xf32>
    %214 = arith.maximumf %212, %213 : vector<8x256xf32>
    %c17_i32_103 = arith.constant 17 : i32
    %215 = tpu.dynamic_rotate %214 by %c17_i32_103 dim 1 : vector<8x256xf32>, i32 -> vector<8x256xf32>
    %216 = vector.broadcast %0 : vector<1x256xf32> to vector<8x256xf32>
    %217 = arith.mulf %215, %216 : vector<8x256xf32>
    %c16_i32_104 = arith.constant 16 : i32
    %218 = tpu.dynamic_rotate %214 by %c16_i32_104 dim 1 : vector<8x256xf32>, i32 -> vector<8x256xf32>
    %219 = vector.broadcast %1 : vector<1x256xf32> to vector<8x256xf32>
    %220 = arith.mulf %218, %219 : vector<8x256xf32>
    %c15_i32_105 = arith.constant 15 : i32
    %221 = tpu.dynamic_rotate %214 by %c15_i32_105 dim 1 : vector<8x256xf32>, i32 -> vector<8x256xf32>
    %222 = vector.broadcast %2 : vector<1x256xf32> to vector<8x256xf32>
    %223 = arith.mulf %221, %222 : vector<8x256xf32>
    %c1_i32_106 = arith.constant 1 : i32
    %224 = tpu.dynamic_rotate %214 by %c1_i32_106 dim 1 : vector<8x256xf32>, i32 -> vector<8x256xf32>
    %225 = vector.broadcast %3 : vector<1x256xf32> to vector<8x256xf32>
    %226 = arith.mulf %224, %225 : vector<8x256xf32>
    %227 = vector.broadcast %4 : vector<1x256xf32> to vector<8x256xf32>
    %228 = arith.mulf %214, %227 : vector<8x256xf32>
    %c255_i32_107 = arith.constant 255 : i32
    %229 = tpu.dynamic_rotate %214 by %c255_i32_107 dim 1 : vector<8x256xf32>, i32 -> vector<8x256xf32>
    %230 = vector.broadcast %5 : vector<1x256xf32> to vector<8x256xf32>
    %231 = arith.mulf %229, %230 : vector<8x256xf32>
    %c241_i32_108 = arith.constant 241 : i32
    %232 = tpu.dynamic_rotate %214 by %c241_i32_108 dim 1 : vector<8x256xf32>, i32 -> vector<8x256xf32>
    %233 = vector.broadcast %6 : vector<1x256xf32> to vector<8x256xf32>
    %234 = arith.mulf %232, %233 : vector<8x256xf32>
    %c240_i32_109 = arith.constant 240 : i32
    %235 = tpu.dynamic_rotate %214 by %c240_i32_109 dim 1 : vector<8x256xf32>, i32 -> vector<8x256xf32>
    %236 = vector.broadcast %7 : vector<1x256xf32> to vector<8x256xf32>
    %237 = arith.mulf %235, %236 : vector<8x256xf32>
    %c239_i32_110 = arith.constant 239 : i32
    %238 = tpu.dynamic_rotate %214 by %c239_i32_110 dim 1 : vector<8x256xf32>, i32 -> vector<8x256xf32>
    %239 = vector.broadcast %8 : vector<1x256xf32> to vector<8x256xf32>
    %240 = arith.mulf %238, %239 : vector<8x256xf32>
    %241 = tpu.concatenate %217, %220, %223, %226, %228, %231, %234, %237, %240 in 0 : vector<8x256xf32>, vector<8x256xf32>, vector<8x256xf32>, vector<8x256xf32>, vector<8x256xf32>, vector<8x256xf32>, vector<8x256xf32>, vector<8x256xf32>, vector<8x256xf32> -> vector<72x256xf32>
    %c7_111 = arith.constant 7 : index
    %c0_112 = arith.constant 0 : index
    %c0_113 = arith.constant 0 : index
    %242 = vector.load %arg2[%c7_111, %c0_112, %c0_113] : memref<10x8x72xf32, #tpu.memory_space<vmem>>, vector<1x8x72xf32>
    %243 = vector.shape_cast %242 : vector<1x8x72xf32> to vector<8x72xf32>
    %c7_114 = arith.constant 7 : index
    %c0_115 = arith.constant 0 : index
    %c0_116 = arith.constant 0 : index
    %244 = vector.load %arg3[%c7_114, %c0_115, %c0_116] : memref<10x8x1xf32, #tpu.memory_space<vmem>>, vector<1x8x1xf32>
    %245 = vector.shape_cast %244 : vector<1x8x1xf32> to vector<8x1xf32>
    %cst_117 = arith.constant dense<0.000000e+00> : vector<8x256xf32>
    %246 = tpu.matmul %243, %241, %cst_117 {dimension_numbers = #tpu.dot_dimension_numbers<[1], [0], [0], [1], [0, 0, 1, 1], [], []>} : vector<8x72xf32>, vector<72x256xf32>, vector<8x256xf32> -> vector<8x256xf32>
    %247 = vector.broadcast %245 : vector<8x1xf32> to vector<8x256xf32>
    %248 = arith.addf %246, %247 : vector<8x256xf32>
    %cst_118 = arith.constant 0.000000e+00 : f32
    %249 = vector.broadcast %cst_118 : f32 to vector<8x256xf32>
    %250 = arith.maximumf %248, %249 : vector<8x256xf32>
    %c17_i32_119 = arith.constant 17 : i32
    %251 = tpu.dynamic_rotate %250 by %c17_i32_119 dim 1 : vector<8x256xf32>, i32 -> vector<8x256xf32>
    %252 = vector.broadcast %0 : vector<1x256xf32> to vector<8x256xf32>
    %253 = arith.mulf %251, %252 : vector<8x256xf32>
    %c16_i32_120 = arith.constant 16 : i32
    %254 = tpu.dynamic_rotate %250 by %c16_i32_120 dim 1 : vector<8x256xf32>, i32 -> vector<8x256xf32>
    %255 = vector.broadcast %1 : vector<1x256xf32> to vector<8x256xf32>
    %256 = arith.mulf %254, %255 : vector<8x256xf32>
    %c15_i32_121 = arith.constant 15 : i32
    %257 = tpu.dynamic_rotate %250 by %c15_i32_121 dim 1 : vector<8x256xf32>, i32 -> vector<8x256xf32>
    %258 = vector.broadcast %2 : vector<1x256xf32> to vector<8x256xf32>
    %259 = arith.mulf %257, %258 : vector<8x256xf32>
    %c1_i32_122 = arith.constant 1 : i32
    %260 = tpu.dynamic_rotate %250 by %c1_i32_122 dim 1 : vector<8x256xf32>, i32 -> vector<8x256xf32>
    %261 = vector.broadcast %3 : vector<1x256xf32> to vector<8x256xf32>
    %262 = arith.mulf %260, %261 : vector<8x256xf32>
    %263 = vector.broadcast %4 : vector<1x256xf32> to vector<8x256xf32>
    %264 = arith.mulf %250, %263 : vector<8x256xf32>
    %c255_i32_123 = arith.constant 255 : i32
    %265 = tpu.dynamic_rotate %250 by %c255_i32_123 dim 1 : vector<8x256xf32>, i32 -> vector<8x256xf32>
    %266 = vector.broadcast %5 : vector<1x256xf32> to vector<8x256xf32>
    %267 = arith.mulf %265, %266 : vector<8x256xf32>
    %c241_i32_124 = arith.constant 241 : i32
    %268 = tpu.dynamic_rotate %250 by %c241_i32_124 dim 1 : vector<8x256xf32>, i32 -> vector<8x256xf32>
    %269 = vector.broadcast %6 : vector<1x256xf32> to vector<8x256xf32>
    %270 = arith.mulf %268, %269 : vector<8x256xf32>
    %c240_i32_125 = arith.constant 240 : i32
    %271 = tpu.dynamic_rotate %250 by %c240_i32_125 dim 1 : vector<8x256xf32>, i32 -> vector<8x256xf32>
    %272 = vector.broadcast %7 : vector<1x256xf32> to vector<8x256xf32>
    %273 = arith.mulf %271, %272 : vector<8x256xf32>
    %c239_i32_126 = arith.constant 239 : i32
    %274 = tpu.dynamic_rotate %250 by %c239_i32_126 dim 1 : vector<8x256xf32>, i32 -> vector<8x256xf32>
    %275 = vector.broadcast %8 : vector<1x256xf32> to vector<8x256xf32>
    %276 = arith.mulf %274, %275 : vector<8x256xf32>
    %277 = tpu.concatenate %253, %256, %259, %262, %264, %267, %270, %273, %276 in 0 : vector<8x256xf32>, vector<8x256xf32>, vector<8x256xf32>, vector<8x256xf32>, vector<8x256xf32>, vector<8x256xf32>, vector<8x256xf32>, vector<8x256xf32>, vector<8x256xf32> -> vector<72x256xf32>
    %c8_127 = arith.constant 8 : index
    %c0_128 = arith.constant 0 : index
    %c0_129 = arith.constant 0 : index
    %278 = vector.load %arg2[%c8_127, %c0_128, %c0_129] : memref<10x8x72xf32, #tpu.memory_space<vmem>>, vector<1x8x72xf32>
    %279 = vector.shape_cast %278 : vector<1x8x72xf32> to vector<8x72xf32>
    %c8_130 = arith.constant 8 : index
    %c0_131 = arith.constant 0 : index
    %c0_132 = arith.constant 0 : index
    %280 = vector.load %arg3[%c8_130, %c0_131, %c0_132] : memref<10x8x1xf32, #tpu.memory_space<vmem>>, vector<1x8x1xf32>
    %281 = vector.shape_cast %280 : vector<1x8x1xf32> to vector<8x1xf32>
    %cst_133 = arith.constant dense<0.000000e+00> : vector<8x256xf32>
    %282 = tpu.matmul %279, %277, %cst_133 {dimension_numbers = #tpu.dot_dimension_numbers<[1], [0], [0], [1], [0, 0, 1, 1], [], []>} : vector<8x72xf32>, vector<72x256xf32>, vector<8x256xf32> -> vector<8x256xf32>
    %283 = vector.broadcast %281 : vector<8x1xf32> to vector<8x256xf32>
    %284 = arith.addf %282, %283 : vector<8x256xf32>
    %cst_134 = arith.constant 0.000000e+00 : f32
    %285 = vector.broadcast %cst_134 : f32 to vector<8x256xf32>
    %286 = arith.maximumf %284, %285 : vector<8x256xf32>
    %c17_i32_135 = arith.constant 17 : i32
    %287 = tpu.dynamic_rotate %286 by %c17_i32_135 dim 1 : vector<8x256xf32>, i32 -> vector<8x256xf32>
    %288 = vector.broadcast %0 : vector<1x256xf32> to vector<8x256xf32>
    %289 = arith.mulf %287, %288 : vector<8x256xf32>
    %c16_i32_136 = arith.constant 16 : i32
    %290 = tpu.dynamic_rotate %286 by %c16_i32_136 dim 1 : vector<8x256xf32>, i32 -> vector<8x256xf32>
    %291 = vector.broadcast %1 : vector<1x256xf32> to vector<8x256xf32>
    %292 = arith.mulf %290, %291 : vector<8x256xf32>
    %c15_i32_137 = arith.constant 15 : i32
    %293 = tpu.dynamic_rotate %286 by %c15_i32_137 dim 1 : vector<8x256xf32>, i32 -> vector<8x256xf32>
    %294 = vector.broadcast %2 : vector<1x256xf32> to vector<8x256xf32>
    %295 = arith.mulf %293, %294 : vector<8x256xf32>
    %c1_i32_138 = arith.constant 1 : i32
    %296 = tpu.dynamic_rotate %286 by %c1_i32_138 dim 1 : vector<8x256xf32>, i32 -> vector<8x256xf32>
    %297 = vector.broadcast %3 : vector<1x256xf32> to vector<8x256xf32>
    %298 = arith.mulf %296, %297 : vector<8x256xf32>
    %299 = vector.broadcast %4 : vector<1x256xf32> to vector<8x256xf32>
    %300 = arith.mulf %286, %299 : vector<8x256xf32>
    %c255_i32_139 = arith.constant 255 : i32
    %301 = tpu.dynamic_rotate %286 by %c255_i32_139 dim 1 : vector<8x256xf32>, i32 -> vector<8x256xf32>
    %302 = vector.broadcast %5 : vector<1x256xf32> to vector<8x256xf32>
    %303 = arith.mulf %301, %302 : vector<8x256xf32>
    %c241_i32_140 = arith.constant 241 : i32
    %304 = tpu.dynamic_rotate %286 by %c241_i32_140 dim 1 : vector<8x256xf32>, i32 -> vector<8x256xf32>
    %305 = vector.broadcast %6 : vector<1x256xf32> to vector<8x256xf32>
    %306 = arith.mulf %304, %305 : vector<8x256xf32>
    %c240_i32_141 = arith.constant 240 : i32
    %307 = tpu.dynamic_rotate %286 by %c240_i32_141 dim 1 : vector<8x256xf32>, i32 -> vector<8x256xf32>
    %308 = vector.broadcast %7 : vector<1x256xf32> to vector<8x256xf32>
    %309 = arith.mulf %307, %308 : vector<8x256xf32>
    %c239_i32_142 = arith.constant 239 : i32
    %310 = tpu.dynamic_rotate %286 by %c239_i32_142 dim 1 : vector<8x256xf32>, i32 -> vector<8x256xf32>
    %311 = vector.broadcast %8 : vector<1x256xf32> to vector<8x256xf32>
    %312 = arith.mulf %310, %311 : vector<8x256xf32>
    %313 = tpu.concatenate %289, %292, %295, %298, %300, %303, %306, %309, %312 in 0 : vector<8x256xf32>, vector<8x256xf32>, vector<8x256xf32>, vector<8x256xf32>, vector<8x256xf32>, vector<8x256xf32>, vector<8x256xf32>, vector<8x256xf32>, vector<8x256xf32> -> vector<72x256xf32>
    %c9_143 = arith.constant 9 : index
    %c0_144 = arith.constant 0 : index
    %c0_145 = arith.constant 0 : index
    %314 = vector.load %arg2[%c9_143, %c0_144, %c0_145] : memref<10x8x72xf32, #tpu.memory_space<vmem>>, vector<1x8x72xf32>
    %315 = vector.shape_cast %314 : vector<1x8x72xf32> to vector<8x72xf32>
    %c9_146 = arith.constant 9 : index
    %c0_147 = arith.constant 0 : index
    %c0_148 = arith.constant 0 : index
    %316 = vector.load %arg3[%c9_146, %c0_147, %c0_148] : memref<10x8x1xf32, #tpu.memory_space<vmem>>, vector<1x8x1xf32>
    %317 = vector.shape_cast %316 : vector<1x8x1xf32> to vector<8x1xf32>
    %cst_149 = arith.constant dense<0.000000e+00> : vector<8x256xf32>
    %318 = tpu.matmul %315, %313, %cst_149 {dimension_numbers = #tpu.dot_dimension_numbers<[1], [0], [0], [1], [0, 0, 1, 1], [], []>} : vector<8x72xf32>, vector<72x256xf32>, vector<8x256xf32> -> vector<8x256xf32>
    %319 = vector.broadcast %317 : vector<8x1xf32> to vector<8x256xf32>
    %320 = arith.addf %318, %319 : vector<8x256xf32>
    %321 = math.tanh %320 : vector<8x256xf32>
    %cst_150 = arith.constant 0.000000e+00 : f32
    %322 = vector.broadcast %cst_150 : f32 to vector<8x256xf32>
    %c16_i32_151 = arith.constant 16 : i32
    %323 = tpu.dynamic_rotate %321 by %c16_i32_151 dim 1 : vector<8x256xf32>, i32 -> vector<8x256xf32>
    %c240_i32_152 = arith.constant 240 : i32
    %324 = tpu.dynamic_rotate %321 by %c240_i32_152 dim 1 : vector<8x256xf32>, i32 -> vector<8x256xf32>
    %c241_i32_153 = arith.constant 241 : i32
    %325 = tpu.dynamic_rotate %321 by %c241_i32_153 dim 1 : vector<8x256xf32>, i32 -> vector<8x256xf32>
    %c1_i32_154 = arith.constant 1 : i32
    %326 = tpu.dynamic_rotate %321 by %c1_i32_154 dim 1 : vector<8x256xf32>, i32 -> vector<8x256xf32>
    %327 = vector.shape_cast %11 : vector<1x256xi1> to vector<1x256xi1>
    %328 = vector.broadcast %327 : vector<1x256xi1> to vector<8x256xi1>
    %329 = arith.select %328, %325, %326 : vector<8x256xi1>, vector<8x256xf32>
    %c15_i32_155 = arith.constant 15 : i32
    %330 = tpu.dynamic_rotate %321 by %c15_i32_155 dim 1 : vector<8x256xf32>, i32 -> vector<8x256xf32>
    %c255_i32_156 = arith.constant 255 : i32
    %331 = tpu.dynamic_rotate %321 by %c255_i32_156 dim 1 : vector<8x256xf32>, i32 -> vector<8x256xf32>
    %332 = vector.shape_cast %14 : vector<1x256xi1> to vector<1x256xi1>
    %333 = vector.broadcast %332 : vector<1x256xi1> to vector<8x256xi1>
    %334 = arith.select %333, %330, %331 : vector<8x256xi1>, vector<8x256xf32>
    %335 = arith.addf %323, %324 : vector<8x256xf32>
    %336 = arith.addf %335, %329 : vector<8x256xf32>
    %337 = arith.addf %336, %334 : vector<8x256xf32>
    %cst_157 = arith.constant 4.000000e+00 : f32
    %338 = vector.broadcast %cst_157 : f32 to vector<8x256xf32>
    %339 = arith.mulf %338, %321 : vector<8x256xf32>
    %340 = arith.subf %337, %339 : vector<8x256xf32>
    %341 = math.tanh %340 : vector<8x256xf32>
    %342 = arith.mulf %124, %321 : vector<8x256xf32>
    %343 = arith.subf %341, %342 : vector<8x256xf32>
    %344 = arith.mulf %205, %322 : vector<8x256xf32>
    %345 = arith.subf %343, %344 : vector<8x256xf32>
    %cst_158 = arith.constant 5.000000e-01 : f32
    %346 = vector.broadcast %cst_158 : f32 to vector<8x256xf32>
    %347 = arith.mulf %346, %345 : vector<8x256xf32>
    %348 = arith.addf %322, %347 : vector<8x256xf32>
    %cst_159 = arith.constant 5.000000e-01 : f32
    %349 = vector.broadcast %cst_159 : f32 to vector<8x256xf32>
    %350 = arith.mulf %349, %348 : vector<8x256xf32>
    %351 = arith.addf %321, %350 : vector<8x256xf32>
    %352 = vector.shape_cast %351 : vector<8x256xf32> to vector<2x4x256xf32>
    %c0_160 = arith.constant 0 : index
    %c0_161 = arith.constant 0 : index
    %c0_162 = arith.constant 0 : index
    %c0_163 = arith.constant 0 : index
    %353 = vector.load %arg7[%c0_160, %c0_161, %c0_162, %c0_163] : memref<2x8x4x256xf32, #tpu.memory_space<vmem>>, vector<2x1x4x256xf32>
    %354 = vector.shape_cast %353 : vector<2x1x4x256xf32> to vector<2x4x256xf32>
    %355 = vector.shape_cast %352 : vector<2x4x256xf32> to vector<2x1x4x256xf32>
    tpu.vector_store %arg7[%c0_160, %c0_161, %c0_162, %c0_163], %355 {strides = array<i32>} : memref<2x8x4x256xf32, #tpu.memory_space<vmem>>, vector<2x1x4x256xf32>,
    %c16_i32_164 = arith.constant 16 : i32
    %356 = tpu.dynamic_rotate %351 by %c16_i32_164 dim 1 : vector<8x256xf32>, i32 -> vector<8x256xf32>
    %c240_i32_165 = arith.constant 240 : i32
    %357 = tpu.dynamic_rotate %351 by %c240_i32_165 dim 1 : vector<8x256xf32>, i32 -> vector<8x256xf32>
    %c241_i32_166 = arith.constant 241 : i32
    %358 = tpu.dynamic_rotate %351 by %c241_i32_166 dim 1 : vector<8x256xf32>, i32 -> vector<8x256xf32>
    %c1_i32_167 = arith.constant 1 : i32
    %359 = tpu.dynamic_rotate %351 by %c1_i32_167 dim 1 : vector<8x256xf32>, i32 -> vector<8x256xf32>
    %360 = vector.shape_cast %11 : vector<1x256xi1> to vector<1x256xi1>
    %361 = vector.broadcast %360 : vector<1x256xi1> to vector<8x256xi1>
    %362 = arith.select %361, %358, %359 : vector<8x256xi1>, vector<8x256xf32>
    %c15_i32_168 = arith.constant 15 : i32
    %363 = tpu.dynamic_rotate %351 by %c15_i32_168 dim 1 : vector<8x256xf32>, i32 -> vector<8x256xf32>
    %c255_i32_169 = arith.constant 255 : i32
    %364 = tpu.dynamic_rotate %351 by %c255_i32_169 dim 1 : vector<8x256xf32>, i32 -> vector<8x256xf32>
    %365 = vector.shape_cast %14 : vector<1x256xi1> to vector<1x256xi1>
    %366 = vector.broadcast %365 : vector<1x256xi1> to vector<8x256xi1>
    %367 = arith.select %366, %363, %364 : vector<8x256xi1>, vector<8x256xf32>
    %368 = arith.addf %356, %357 : vector<8x256xf32>
    %369 = arith.addf %368, %362 : vector<8x256xf32>
    %370 = arith.addf %369, %367 : vector<8x256xf32>
    %cst_170 = arith.constant 4.000000e+00 : f32
    %371 = vector.broadcast %cst_170 : f32 to vector<8x256xf32>
    %372 = arith.mulf %371, %351 : vector<8x256xf32>
    %373 = arith.subf %370, %372 : vector<8x256xf32>
    %374 = math.tanh %373 : vector<8x256xf32>
    %375 = arith.mulf %124, %351 : vector<8x256xf32>
    %376 = arith.subf %374, %375 : vector<8x256xf32>
    %377 = arith.mulf %205, %348 : vector<8x256xf32>
    %378 = arith.subf %376, %377 : vector<8x256xf32>
    %cst_171 = arith.constant 5.000000e-01 : f32
    %379 = vector.broadcast %cst_171 : f32 to vector<8x256xf32>
    %380 = arith.mulf %379, %378 : vector<8x256xf32>
    %381 = arith.addf %348, %380 : vector<8x256xf32>
    %cst_172 = arith.constant 5.000000e-01 : f32
    %382 = vector.broadcast %cst_172 : f32 to vector<8x256xf32>
    %383 = arith.mulf %382, %381 : vector<8x256xf32>
    %384 = arith.addf %351, %383 : vector<8x256xf32>
    %385 = vector.shape_cast %384 : vector<8x256xf32> to vector<2x4x256xf32>
    %c0_173 = arith.constant 0 : index
    %c1_174 = arith.constant 1 : index
    %c0_175 = arith.constant 0 : index
    %c0_176 = arith.constant 0 : index
    %386 = vector.load %arg7[%c0_173, %c1_174, %c0_175, %c0_176] : memref<2x8x4x256xf32, #tpu.memory_space<vmem>>, vector<2x1x4x256xf32>
    %387 = vector.shape_cast %386 : vector<2x1x4x256xf32> to vector<2x4x256xf32>
    %388 = vector.shape_cast %385 : vector<2x4x256xf32> to vector<2x1x4x256xf32>
    tpu.vector_store %arg7[%c0_173, %c1_174, %c0_175, %c0_176], %388 {strides = array<i32>} : memref<2x8x4x256xf32, #tpu.memory_space<vmem>>, vector<2x1x4x256xf32>,
    %c16_i32_177 = arith.constant 16 : i32
    %389 = tpu.dynamic_rotate %384 by %c16_i32_177 dim 1 : vector<8x256xf32>, i32 -> vector<8x256xf32>
    %c240_i32_178 = arith.constant 240 : i32
    %390 = tpu.dynamic_rotate %384 by %c240_i32_178 dim 1 : vector<8x256xf32>, i32 -> vector<8x256xf32>
    %c241_i32_179 = arith.constant 241 : i32
    %391 = tpu.dynamic_rotate %384 by %c241_i32_179 dim 1 : vector<8x256xf32>, i32 -> vector<8x256xf32>
    %c1_i32_180 = arith.constant 1 : i32
    %392 = tpu.dynamic_rotate %384 by %c1_i32_180 dim 1 : vector<8x256xf32>, i32 -> vector<8x256xf32>
    %393 = vector.shape_cast %11 : vector<1x256xi1> to vector<1x256xi1>
    %394 = vector.broadcast %393 : vector<1x256xi1> to vector<8x256xi1>
    %395 = arith.select %394, %391, %392 : vector<8x256xi1>, vector<8x256xf32>
    %c15_i32_181 = arith.constant 15 : i32
    %396 = tpu.dynamic_rotate %384 by %c15_i32_181 dim 1 : vector<8x256xf32>, i32 -> vector<8x256xf32>
    %c255_i32_182 = arith.constant 255 : i32
    %397 = tpu.dynamic_rotate %384 by %c255_i32_182 dim 1 : vector<8x256xf32>, i32 -> vector<8x256xf32>
    %398 = vector.shape_cast %14 : vector<1x256xi1> to vector<1x256xi1>
    %399 = vector.broadcast %398 : vector<1x256xi1> to vector<8x256xi1>
    %400 = arith.select %399, %396, %397 : vector<8x256xi1>, vector<8x256xf32>
    %401 = arith.addf %389, %390 : vector<8x256xf32>
    %402 = arith.addf %401, %395 : vector<8x256xf32>
    %403 = arith.addf %402, %400 : vector<8x256xf32>
    %cst_183 = arith.constant 4.000000e+00 : f32
    %404 = vector.broadcast %cst_183 : f32 to vector<8x256xf32>
    %405 = arith.mulf %404, %384 : vector<8x256xf32>
    %406 = arith.subf %403, %405 : vector<8x256xf32>
    %407 = math.tanh %406 : vector<8x256xf32>
    %408 = arith.mulf %124, %384 : vector<8x256xf32>
    %409 = arith.subf %407, %408 : vector<8x256xf32>
    %410 = arith.mulf %205, %381 : vector<8x256xf32>
    %411 = arith.subf %409, %410 : vector<8x256xf32>
    %cst_184 = arith.constant 5.000000e-01 : f32
    %412 = vector.broadcast %cst_184 : f32 to vector<8x256xf32>
    %413 = arith.mulf %412, %411 : vector<8x256xf32>
    %414 = arith.addf %381, %413 : vector<8x256xf32>
    %cst_185 = arith.constant 5.000000e-01 : f32
    %415 = vector.broadcast %cst_185 : f32 to vector<8x256xf32>
    %416 = arith.mulf %415, %414 : vector<8x256xf32>
    %417 = arith.addf %384, %416 : vector<8x256xf32>
    %418 = vector.shape_cast %417 : vector<8x256xf32> to vector<2x4x256xf32>
    %c0_186 = arith.constant 0 : index
    %c2_187 = arith.constant 2 : index
    %c0_188 = arith.constant 0 : index
    %c0_189 = arith.constant 0 : index
    %419 = vector.load %arg7[%c0_186, %c2_187, %c0_188, %c0_189] : memref<2x8x4x256xf32, #tpu.memory_space<vmem>>, vector<2x1x4x256xf32>
    %420 = vector.shape_cast %419 : vector<2x1x4x256xf32> to vector<2x4x256xf32>
    %421 = vector.shape_cast %418 : vector<2x4x256xf32> to vector<2x1x4x256xf32>
    tpu.vector_store %arg7[%c0_186, %c2_187, %c0_188, %c0_189], %421 {strides = array<i32>} : memref<2x8x4x256xf32, #tpu.memory_space<vmem>>, vector<2x1x4x256xf32>,
    %c16_i32_190 = arith.constant 16 : i32
    %422 = tpu.dynamic_rotate %417 by %c16_i32_190 dim 1 : vector<8x256xf32>, i32 -> vector<8x256xf32>
    %c240_i32_191 = arith.constant 240 : i32
    %423 = tpu.dynamic_rotate %417 by %c240_i32_191 dim 1 : vector<8x256xf32>, i32 -> vector<8x256xf32>
    %c241_i32_192 = arith.constant 241 : i32
    %424 = tpu.dynamic_rotate %417 by %c241_i32_192 dim 1 : vector<8x256xf32>, i32 -> vector<8x256xf32>
    %c1_i32_193 = arith.constant 1 : i32
    %425 = tpu.dynamic_rotate %417 by %c1_i32_193 dim 1 : vector<8x256xf32>, i32 -> vector<8x256xf32>
    %426 = vector.shape_cast %11 : vector<1x256xi1> to vector<1x256xi1>
    %427 = vector.broadcast %426 : vector<1x256xi1> to vector<8x256xi1>
    %428 = arith.select %427, %424, %425 : vector<8x256xi1>, vector<8x256xf32>
    %c15_i32_194 = arith.constant 15 : i32
    %429 = tpu.dynamic_rotate %417 by %c15_i32_194 dim 1 : vector<8x256xf32>, i32 -> vector<8x256xf32>
    %c255_i32_195 = arith.constant 255 : i32
    %430 = tpu.dynamic_rotate %417 by %c255_i32_195 dim 1 : vector<8x256xf32>, i32 -> vector<8x256xf32>
    %431 = vector.shape_cast %14 : vector<1x256xi1> to vector<1x256xi1>
    %432 = vector.broadcast %431 : vector<1x256xi1> to vector<8x256xi1>
    %433 = arith.select %432, %429, %430 : vector<8x256xi1>, vector<8x256xf32>
    %434 = arith.addf %422, %423 : vector<8x256xf32>
    %435 = arith.addf %434, %428 : vector<8x256xf32>
    %436 = arith.addf %435, %433 : vector<8x256xf32>
    %cst_196 = arith.constant 4.000000e+00 : f32
    %437 = vector.broadcast %cst_196 : f32 to vector<8x256xf32>
    %438 = arith.mulf %437, %417 : vector<8x256xf32>
    %439 = arith.subf %436, %438 : vector<8x256xf32>
    %440 = math.tanh %439 : vector<8x256xf32>
    %441 = arith.mulf %124, %417 : vector<8x256xf32>
    %442 = arith.subf %440, %441 : vector<8x256xf32>
    %443 = arith.mulf %205, %414 : vector<8x256xf32>
    %444 = arith.subf %442, %443 : vector<8x256xf32>
    %cst_197 = arith.constant 5.000000e-01 : f32
    %445 = vector.broadcast %cst_197 : f32 to vector<8x256xf32>
    %446 = arith.mulf %445, %444 : vector<8x256xf32>
    %447 = arith.addf %414, %446 : vector<8x256xf32>
    %cst_198 = arith.constant 5.000000e-01 : f32
    %448 = vector.broadcast %cst_198 : f32 to vector<8x256xf32>
    %449 = arith.mulf %448, %447 : vector<8x256xf32>
    %450 = arith.addf %417, %449 : vector<8x256xf32>
    %451 = vector.shape_cast %450 : vector<8x256xf32> to vector<2x4x256xf32>
    %c0_199 = arith.constant 0 : index
    %c3_200 = arith.constant 3 : index
    %c0_201 = arith.constant 0 : index
    %c0_202 = arith.constant 0 : index
    %452 = vector.load %arg7[%c0_199, %c3_200, %c0_201, %c0_202] : memref<2x8x4x256xf32, #tpu.memory_space<vmem>>, vector<2x1x4x256xf32>
    %453 = vector.shape_cast %452 : vector<2x1x4x256xf32> to vector<2x4x256xf32>
    %454 = vector.shape_cast %451 : vector<2x4x256xf32> to vector<2x1x4x256xf32>
    tpu.vector_store %arg7[%c0_199, %c3_200, %c0_201, %c0_202], %454 {strides = array<i32>} : memref<2x8x4x256xf32, #tpu.memory_space<vmem>>, vector<2x1x4x256xf32>,
    %c16_i32_203 = arith.constant 16 : i32
    %455 = tpu.dynamic_rotate %450 by %c16_i32_203 dim 1 : vector<8x256xf32>, i32 -> vector<8x256xf32>
    %c240_i32_204 = arith.constant 240 : i32
    %456 = tpu.dynamic_rotate %450 by %c240_i32_204 dim 1 : vector<8x256xf32>, i32 -> vector<8x256xf32>
    %c241_i32_205 = arith.constant 241 : i32
    %457 = tpu.dynamic_rotate %450 by %c241_i32_205 dim 1 : vector<8x256xf32>, i32 -> vector<8x256xf32>
    %c1_i32_206 = arith.constant 1 : i32
    %458 = tpu.dynamic_rotate %450 by %c1_i32_206 dim 1 : vector<8x256xf32>, i32 -> vector<8x256xf32>
    %459 = vector.shape_cast %11 : vector<1x256xi1> to vector<1x256xi1>
    %460 = vector.broadcast %459 : vector<1x256xi1> to vector<8x256xi1>
    %461 = arith.select %460, %457, %458 : vector<8x256xi1>, vector<8x256xf32>
    %c15_i32_207 = arith.constant 15 : i32
    %462 = tpu.dynamic_rotate %450 by %c15_i32_207 dim 1 : vector<8x256xf32>, i32 -> vector<8x256xf32>
    %c255_i32_208 = arith.constant 255 : i32
    %463 = tpu.dynamic_rotate %450 by %c255_i32_208 dim 1 : vector<8x256xf32>, i32 -> vector<8x256xf32>
    %464 = vector.shape_cast %14 : vector<1x256xi1> to vector<1x256xi1>
    %465 = vector.broadcast %464 : vector<1x256xi1> to vector<8x256xi1>
    %466 = arith.select %465, %462, %463 : vector<8x256xi1>, vector<8x256xf32>
    %467 = arith.addf %455, %456 : vector<8x256xf32>
    %468 = arith.addf %467, %461 : vector<8x256xf32>
    %469 = arith.addf %468, %466 : vector<8x256xf32>
    %cst_209 = arith.constant 4.000000e+00 : f32
    %470 = vector.broadcast %cst_209 : f32 to vector<8x256xf32>
    %471 = arith.mulf %470, %450 : vector<8x256xf32>
    %472 = arith.subf %469, %471 : vector<8x256xf32>
    %473 = math.tanh %472 : vector<8x256xf32>
    %474 = arith.mulf %124, %450 : vector<8x256xf32>
    %475 = arith.subf %473, %474 : vector<8x256xf32>
    %476 = arith.mulf %205, %447 : vector<8x256xf32>
    %477 = arith.subf %475, %476 : vector<8x256xf32>
    %cst_210 = arith.constant 5.000000e-01 : f32
    %478 = vector.broadcast %cst_210 : f32 to vector<8x256xf32>
    %479 = arith.mulf %478, %477 : vector<8x256xf32>
    %480 = arith.addf %447, %479 : vector<8x256xf32>
    %cst_211 = arith.constant 5.000000e-01 : f32
    %481 = vector.broadcast %cst_211 : f32 to vector<8x256xf32>
    %482 = arith.mulf %481, %480 : vector<8x256xf32>
    %483 = arith.addf %450, %482 : vector<8x256xf32>
    %484 = vector.shape_cast %483 : vector<8x256xf32> to vector<2x4x256xf32>
    %c0_212 = arith.constant 0 : index
    %c4_213 = arith.constant 4 : index
    %c0_214 = arith.constant 0 : index
    %c0_215 = arith.constant 0 : index
    %485 = vector.load %arg7[%c0_212, %c4_213, %c0_214, %c0_215] : memref<2x8x4x256xf32, #tpu.memory_space<vmem>>, vector<2x1x4x256xf32>
    %486 = vector.shape_cast %485 : vector<2x1x4x256xf32> to vector<2x4x256xf32>
    %487 = vector.shape_cast %484 : vector<2x4x256xf32> to vector<2x1x4x256xf32>
    tpu.vector_store %arg7[%c0_212, %c4_213, %c0_214, %c0_215], %487 {strides = array<i32>} : memref<2x8x4x256xf32, #tpu.memory_space<vmem>>, vector<2x1x4x256xf32>,
    %c16_i32_216 = arith.constant 16 : i32
    %488 = tpu.dynamic_rotate %483 by %c16_i32_216 dim 1 : vector<8x256xf32>, i32 -> vector<8x256xf32>
    %c240_i32_217 = arith.constant 240 : i32
    %489 = tpu.dynamic_rotate %483 by %c240_i32_217 dim 1 : vector<8x256xf32>, i32 -> vector<8x256xf32>
    %c241_i32_218 = arith.constant 241 : i32
    %490 = tpu.dynamic_rotate %483 by %c241_i32_218 dim 1 : vector<8x256xf32>, i32 -> vector<8x256xf32>
    %c1_i32_219 = arith.constant 1 : i32
    %491 = tpu.dynamic_rotate %483 by %c1_i32_219 dim 1 : vector<8x256xf32>, i32 -> vector<8x256xf32>
    %492 = vector.shape_cast %11 : vector<1x256xi1> to vector<1x256xi1>
    %493 = vector.broadcast %492 : vector<1x256xi1> to vector<8x256xi1>
    %494 = arith.select %493, %490, %491 : vector<8x256xi1>, vector<8x256xf32>
    %c15_i32_220 = arith.constant 15 : i32
    %495 = tpu.dynamic_rotate %483 by %c15_i32_220 dim 1 : vector<8x256xf32>, i32 -> vector<8x256xf32>
    %c255_i32_221 = arith.constant 255 : i32
    %496 = tpu.dynamic_rotate %483 by %c255_i32_221 dim 1 : vector<8x256xf32>, i32 -> vector<8x256xf32>
    %497 = vector.shape_cast %14 : vector<1x256xi1> to vector<1x256xi1>
    %498 = vector.broadcast %497 : vector<1x256xi1> to vector<8x256xi1>
    %499 = arith.select %498, %495, %496 : vector<8x256xi1>, vector<8x256xf32>
    %500 = arith.addf %488, %489 : vector<8x256xf32>
    %501 = arith.addf %500, %494 : vector<8x256xf32>
    %502 = arith.addf %501, %499 : vector<8x256xf32>
    %cst_222 = arith.constant 4.000000e+00 : f32
    %503 = vector.broadcast %cst_222 : f32 to vector<8x256xf32>
    %504 = arith.mulf %503, %483 : vector<8x256xf32>
    %505 = arith.subf %502, %504 : vector<8x256xf32>
    %506 = math.tanh %505 : vector<8x256xf32>
    %507 = arith.mulf %124, %483 : vector<8x256xf32>
    %508 = arith.subf %506, %507 : vector<8x256xf32>
    %509 = arith.mulf %205, %480 : vector<8x256xf32>
    %510 = arith.subf %508, %509 : vector<8x256xf32>
    %cst_223 = arith.constant 5.000000e-01 : f32
    %511 = vector.broadcast %cst_223 : f32 to vector<8x256xf32>
    %512 = arith.mulf %511, %510 : vector<8x256xf32>
    %513 = arith.addf %480, %512 : vector<8x256xf32>
    %cst_224 = arith.constant 5.000000e-01 : f32
    %514 = vector.broadcast %cst_224 : f32 to vector<8x256xf32>
    %515 = arith.mulf %514, %513 : vector<8x256xf32>
    %516 = arith.addf %483, %515 : vector<8x256xf32>
    %517 = vector.shape_cast %516 : vector<8x256xf32> to vector<2x4x256xf32>
    %c0_225 = arith.constant 0 : index
    %c5_226 = arith.constant 5 : index
    %c0_227 = arith.constant 0 : index
    %c0_228 = arith.constant 0 : index
    %518 = vector.load %arg7[%c0_225, %c5_226, %c0_227, %c0_228] : memref<2x8x4x256xf32, #tpu.memory_space<vmem>>, vector<2x1x4x256xf32>
    %519 = vector.shape_cast %518 : vector<2x1x4x256xf32> to vector<2x4x256xf32>
    %520 = vector.shape_cast %517 : vector<2x4x256xf32> to vector<2x1x4x256xf32>
    tpu.vector_store %arg7[%c0_225, %c5_226, %c0_227, %c0_228], %520 {strides = array<i32>} : memref<2x8x4x256xf32, #tpu.memory_space<vmem>>, vector<2x1x4x256xf32>,
    %c16_i32_229 = arith.constant 16 : i32
    %521 = tpu.dynamic_rotate %516 by %c16_i32_229 dim 1 : vector<8x256xf32>, i32 -> vector<8x256xf32>
    %c240_i32_230 = arith.constant 240 : i32
    %522 = tpu.dynamic_rotate %516 by %c240_i32_230 dim 1 : vector<8x256xf32>, i32 -> vector<8x256xf32>
    %c241_i32_231 = arith.constant 241 : i32
    %523 = tpu.dynamic_rotate %516 by %c241_i32_231 dim 1 : vector<8x256xf32>, i32 -> vector<8x256xf32>
    %c1_i32_232 = arith.constant 1 : i32
    %524 = tpu.dynamic_rotate %516 by %c1_i32_232 dim 1 : vector<8x256xf32>, i32 -> vector<8x256xf32>
    %525 = vector.shape_cast %11 : vector<1x256xi1> to vector<1x256xi1>
    %526 = vector.broadcast %525 : vector<1x256xi1> to vector<8x256xi1>
    %527 = arith.select %526, %523, %524 : vector<8x256xi1>, vector<8x256xf32>
    %c15_i32_233 = arith.constant 15 : i32
    %528 = tpu.dynamic_rotate %516 by %c15_i32_233 dim 1 : vector<8x256xf32>, i32 -> vector<8x256xf32>
    %c255_i32_234 = arith.constant 255 : i32
    %529 = tpu.dynamic_rotate %516 by %c255_i32_234 dim 1 : vector<8x256xf32>, i32 -> vector<8x256xf32>
    %530 = vector.shape_cast %14 : vector<1x256xi1> to vector<1x256xi1>
    %531 = vector.broadcast %530 : vector<1x256xi1> to vector<8x256xi1>
    %532 = arith.select %531, %528, %529 : vector<8x256xi1>, vector<8x256xf32>
    %533 = arith.addf %521, %522 : vector<8x256xf32>
    %534 = arith.addf %533, %527 : vector<8x256xf32>
    %535 = arith.addf %534, %532 : vector<8x256xf32>
    %cst_235 = arith.constant 4.000000e+00 : f32
    %536 = vector.broadcast %cst_235 : f32 to vector<8x256xf32>
    %537 = arith.mulf %536, %516 : vector<8x256xf32>
    %538 = arith.subf %535, %537 : vector<8x256xf32>
    %539 = math.tanh %538 : vector<8x256xf32>
    %540 = arith.mulf %124, %516 : vector<8x256xf32>
    %541 = arith.subf %539, %540 : vector<8x256xf32>
    %542 = arith.mulf %205, %513 : vector<8x256xf32>
    %543 = arith.subf %541, %542 : vector<8x256xf32>
    %cst_236 = arith.constant 5.000000e-01 : f32
    %544 = vector.broadcast %cst_236 : f32 to vector<8x256xf32>
    %545 = arith.mulf %544, %543 : vector<8x256xf32>
    %546 = arith.addf %513, %545 : vector<8x256xf32>
    %cst_237 = arith.constant 5.000000e-01 : f32
    %547 = vector.broadcast %cst_237 : f32 to vector<8x256xf32>
    %548 = arith.mulf %547, %546 : vector<8x256xf32>
    %549 = arith.addf %516, %548 : vector<8x256xf32>
    %550 = vector.shape_cast %549 : vector<8x256xf32> to vector<2x4x256xf32>
    %c0_238 = arith.constant 0 : index
    %c6_239 = arith.constant 6 : index
    %c0_240 = arith.constant 0 : index
    %c0_241 = arith.constant 0 : index
    %551 = vector.load %arg7[%c0_238, %c6_239, %c0_240, %c0_241] : memref<2x8x4x256xf32, #tpu.memory_space<vmem>>, vector<2x1x4x256xf32>
    %552 = vector.shape_cast %551 : vector<2x1x4x256xf32> to vector<2x4x256xf32>
    %553 = vector.shape_cast %550 : vector<2x4x256xf32> to vector<2x1x4x256xf32>
    tpu.vector_store %arg7[%c0_238, %c6_239, %c0_240, %c0_241], %553 {strides = array<i32>} : memref<2x8x4x256xf32, #tpu.memory_space<vmem>>, vector<2x1x4x256xf32>,
    %c16_i32_242 = arith.constant 16 : i32
    %554 = tpu.dynamic_rotate %549 by %c16_i32_242 dim 1 : vector<8x256xf32>, i32 -> vector<8x256xf32>
    %c240_i32_243 = arith.constant 240 : i32
    %555 = tpu.dynamic_rotate %549 by %c240_i32_243 dim 1 : vector<8x256xf32>, i32 -> vector<8x256xf32>
    %c241_i32_244 = arith.constant 241 : i32
    %556 = tpu.dynamic_rotate %549 by %c241_i32_244 dim 1 : vector<8x256xf32>, i32 -> vector<8x256xf32>
    %c1_i32_245 = arith.constant 1 : i32
    %557 = tpu.dynamic_rotate %549 by %c1_i32_245 dim 1 : vector<8x256xf32>, i32 -> vector<8x256xf32>
    %558 = vector.shape_cast %11 : vector<1x256xi1> to vector<1x256xi1>
    %559 = vector.broadcast %558 : vector<1x256xi1> to vector<8x256xi1>
    %560 = arith.select %559, %556, %557 : vector<8x256xi1>, vector<8x256xf32>
    %c15_i32_246 = arith.constant 15 : i32
    %561 = tpu.dynamic_rotate %549 by %c15_i32_246 dim 1 : vector<8x256xf32>, i32 -> vector<8x256xf32>
    %c255_i32_247 = arith.constant 255 : i32
    %562 = tpu.dynamic_rotate %549 by %c255_i32_247 dim 1 : vector<8x256xf32>, i32 -> vector<8x256xf32>
    %563 = vector.shape_cast %14 : vector<1x256xi1> to vector<1x256xi1>
    %564 = vector.broadcast %563 : vector<1x256xi1> to vector<8x256xi1>
    %565 = arith.select %564, %561, %562 : vector<8x256xi1>, vector<8x256xf32>
    %566 = arith.addf %554, %555 : vector<8x256xf32>
    %567 = arith.addf %566, %560 : vector<8x256xf32>
    %568 = arith.addf %567, %565 : vector<8x256xf32>
    %cst_248 = arith.constant 4.000000e+00 : f32
    %569 = vector.broadcast %cst_248 : f32 to vector<8x256xf32>
    %570 = arith.mulf %569, %549 : vector<8x256xf32>
    %571 = arith.subf %568, %570 : vector<8x256xf32>
    %572 = math.tanh %571 : vector<8x256xf32>
    %573 = arith.mulf %124, %549 : vector<8x256xf32>
    %574 = arith.subf %572, %573 : vector<8x256xf32>
    %575 = arith.mulf %205, %546 : vector<8x256xf32>
    %576 = arith.subf %574, %575 : vector<8x256xf32>
    %cst_249 = arith.constant 5.000000e-01 : f32
    %577 = vector.broadcast %cst_249 : f32 to vector<8x256xf32>
    %578 = arith.mulf %577, %576 : vector<8x256xf32>
    %579 = arith.addf %546, %578 : vector<8x256xf32>
    %cst_250 = arith.constant 5.000000e-01 : f32
    %580 = vector.broadcast %cst_250 : f32 to vector<8x256xf32>
    %581 = arith.mulf %580, %579 : vector<8x256xf32>
    %582 = arith.addf %549, %581 : vector<8x256xf32>
    %583 = vector.shape_cast %582 : vector<8x256xf32> to vector<2x4x256xf32>
    %c0_251 = arith.constant 0 : index
    %c7_252 = arith.constant 7 : index
    %c0_253 = arith.constant 0 : index
    %c0_254 = arith.constant 0 : index
    %584 = vector.load %arg7[%c0_251, %c7_252, %c0_253, %c0_254] : memref<2x8x4x256xf32, #tpu.memory_space<vmem>>, vector<2x1x4x256xf32>
    %585 = vector.shape_cast %584 : vector<2x1x4x256xf32> to vector<2x4x256xf32>
    %586 = vector.shape_cast %583 : vector<2x4x256xf32> to vector<2x1x4x256xf32>
    tpu.vector_store %arg7[%c0_251, %c7_252, %c0_253, %c0_254], %586 {strides = array<i32>} : memref<2x8x4x256xf32, #tpu.memory_space<vmem>>, vector<2x1x4x256xf32>,
    %c0_255 = arith.constant 0 : index
    %c0_256 = arith.constant 0 : index
    %c0_257 = arith.constant 0 : index
    %c0_258 = arith.constant 0 : index
    %587 = vector.load %arg7[%c0_255, %c0_256, %c0_257, %c0_258] : memref<2x8x4x256xf32, #tpu.memory_space<vmem>>, vector<1x8x4x256xf32>
    %588 = vector.shape_cast %587 : vector<1x8x4x256xf32> to vector<8x4x256xf32>
    %589 = vector.shape_cast %588 : vector<8x4x256xf32> to vector<32x256xf32>
    %c0_259 = arith.constant 0 : index
    %c0_260 = arith.constant 0 : index
    %590 = vector.load %arg5[%c0_259, %c0_260] : memref<7x32xf32, #tpu.memory_space<vmem>>, vector<7x32xf32>
    %cst_261 = arith.constant dense<0.000000e+00> : vector<7x256xf32>
    %591 = tpu.matmul %590, %589, %cst_261 {dimension_numbers = #tpu.dot_dimension_numbers<[1], [0], [0], [1], [0, 0, 1, 1], [], []>} : vector<7x32xf32>, vector<32x256xf32>, vector<7x256xf32> -> vector<7x256xf32>
    %c0_262 = arith.constant 0 : index
    %c0_263 = arith.constant 0 : index
    %c0_264 = arith.constant 0 : index
    %592 = vector.load %arg6[%c0_262, %c0_263, %c0_264] : memref<2x7x256xf32, #tpu.memory_space<vmem>>, vector<1x7x256xf32>
    %593 = vector.shape_cast %592 : vector<1x7x256xf32> to vector<7x256xf32>
    %594 = vector.shape_cast %591 : vector<7x256xf32> to vector<1x7x256xf32>
    tpu.vector_store %arg6[%c0_262, %c0_263, %c0_264], %594 {strides = array<i32>} : memref<2x7x256xf32, #tpu.memory_space<vmem>>, vector<1x7x256xf32>,
    %c1_265 = arith.constant 1 : index
    %c0_266 = arith.constant 0 : index
    %c0_267 = arith.constant 0 : index
    %c0_268 = arith.constant 0 : index
    %595 = vector.load %arg7[%c1_265, %c0_266, %c0_267, %c0_268] : memref<2x8x4x256xf32, #tpu.memory_space<vmem>>, vector<1x8x4x256xf32>
    %596 = vector.shape_cast %595 : vector<1x8x4x256xf32> to vector<8x4x256xf32>
    %597 = vector.shape_cast %596 : vector<8x4x256xf32> to vector<32x256xf32>
    %c0_269 = arith.constant 0 : index
    %c0_270 = arith.constant 0 : index
    %598 = vector.load %arg5[%c0_269, %c0_270] : memref<7x32xf32, #tpu.memory_space<vmem>>, vector<7x32xf32>
    %cst_271 = arith.constant dense<0.000000e+00> : vector<7x256xf32>
    %599 = tpu.matmul %598, %597, %cst_271 {dimension_numbers = #tpu.dot_dimension_numbers<[1], [0], [0], [1], [0, 0, 1, 1], [], []>} : vector<7x32xf32>, vector<32x256xf32>, vector<7x256xf32> -> vector<7x256xf32>
    %c1_272 = arith.constant 1 : index
    %c0_273 = arith.constant 0 : index
    %c0_274 = arith.constant 0 : index
    %600 = vector.load %arg6[%c1_272, %c0_273, %c0_274] : memref<2x7x256xf32, #tpu.memory_space<vmem>>, vector<1x7x256xf32>
    %601 = vector.shape_cast %600 : vector<1x7x256xf32> to vector<7x256xf32>
    %602 = vector.shape_cast %599 : vector<7x256xf32> to vector<1x7x256xf32>
    tpu.vector_store %arg6[%c1_272, %c0_273, %c0_274], %602 {strides = array<i32>} : memref<2x7x256xf32, #tpu.memory_space<vmem>>, vector<1x7x256xf32>,
    return
  }
  func.func @transform_0(%arg0: i32) -> (i32, i32, i32) {
    %c0_i32 = arith.constant 0 : i32
    %c0_i32_0 = arith.constant 0 : i32
    %c0_i32_1 = arith.constant 0 : i32
    return %arg0, %c0_i32, %c0_i32_0 : i32, i32, i32
  }
  func.func @transform_1(%arg0: i32) -> (i32, i32, i32) {
    %c0_i32 = arith.constant 0 : i32
    %c0_i32_0 = arith.constant 0 : i32
    %c0_i32_1 = arith.constant 0 : i32
    %c0_i32_2 = arith.constant 0 : i32
    return %c0_i32, %c0_i32_0, %c0_i32_1 : i32, i32, i32
  }
  func.func @transform_2(%arg0: i32) -> (i32, i32, i32) {
    %c0_i32 = arith.constant 0 : i32
    %c0_i32_0 = arith.constant 0 : i32
    %c0_i32_1 = arith.constant 0 : i32
    %c0_i32_2 = arith.constant 0 : i32
    return %c0_i32, %c0_i32_0, %c0_i32_1 : i32, i32, i32
  }
  func.func @transform_3(%arg0: i32) -> (i32, i32) {
    %c0_i32 = arith.constant 0 : i32
    %c0_i32_0 = arith.constant 0 : i32
    %c0_i32_1 = arith.constant 0 : i32
    return %c0_i32, %c0_i32_0 : i32, i32
  }
  func.func @transform_4(%arg0: i32) -> (i32, i32) {
    %c0_i32 = arith.constant 0 : i32
    %c0_i32_0 = arith.constant 0 : i32
    %c0_i32_1 = arith.constant 0 : i32
    return %c0_i32, %c0_i32_0 : i32, i32
  }
  func.func @transform_5(%arg0: i32) -> (i32, i32, i32) {
    %c0_i32 = arith.constant 0 : i32
    %c0_i32_0 = arith.constant 0 : i32
    %c0_i32_1 = arith.constant 0 : i32
    return %arg0, %c0_i32, %c0_i32_0 : i32, i32, i32
  }
  func.func @transform_6(%arg0: i32) -> (i32, i32, i32, i32) {
    %c0_i32 = arith.constant 0 : i32
    %c0_i32_0 = arith.constant 0 : i32
    %c0_i32_1 = arith.constant 0 : i32
    %c0_i32_2 = arith.constant 0 : i32
    return %arg0, %c0_i32, %c0_i32_0, %c0_i32_1 : i32, i32, i32, i32
  }
}

</mosaic_0001>

<bundles_post_ra>
// kernel: model_forward.1
= control target key start
LH: loop header
LB: loop body
LE: loop exit
PB: predicated region body
PF: predicated region fallthrough
CT: control target
= control target key end

     0   :  { %v53_v0 = vlaneseq  ;;  %v2811_v3 = vmov 1966171168   ;;  %s2813_s27 = smov 16   ;;  %s2814_s28 = smov 15   ;;  %v2819_v30 = vmov 0.0   ;;  %v2820_v32 = vmov 0   ;;  %s4542_s0 = inlined_call_operand.vmem [shape: f32[2,1,256], index: 0, kind: input, shape index: {}]   ;;  %s4543_s3 = inlined_call_operand.vmem [shape: f32[11,256], index: 3, kind: input, shape index: {}]   ;;  %s4544_s2 = inlined_call_operand.vmem [shape: f32[10,8,1], index: 2, kind: input, shape index: {}]   ;;  %s4545_s1 = inlined_call_operand.vmem [shape: f32[10,8,72], index: 1, kind: input, shape index: {}]   ;;  %s4546_s6 = inlined_call_operand.vmem [shape: f32[2,8,4,256], index: 6, kind: output, shape index: {1}]   ;;  %s4547_s4 = inlined_call_operand.vmem [shape: f32[7,32], index: 4, kind: input, shape index: {}]   ;;  %s4548_s5 = inlined_call_operand.vmem [shape: f32[2,7,256], index: 5, kind: output, shape index: {0}]  }
   0x1   :  { %v45_v1 = vld [vmem:[%s4542_s0] sm:$0x3]  ;;  %v46_v2 = vld [vmem:[%s4542_s0 + $0x2] sm:$0x3]  ;;  %v51_v4 = vunpack.c.l.s4 %v2811_v3  ;;  %s2812_s0 = smov 127   ;;  %s2815_s29 = smov 113   ;;  %431 = vmatprep.mubr.f32.mxu0 %v2819_v30  ;;  %585 = vmatprep.mubr.f32.mxu1 %v2819_v30 }
   0x2   :  { %v54_v5 = vshrl.u32 %v53_v0, 7  ;;  %v49_v6 = vcombine.low %v45_v1, %v46_v2  ;;  %v2539_v11 = vld [vmem:[%s4543_s3 + $0x4] ss:$8 sm:$0x3]  ;;  %s2816_s30 = smov 17   ;;  %s2817_s7 = smov 1   ;;  %2757 = vset.pattern.permute.xlu0 %v2820_v32  ;;  %2758 = vset.pattern.permute.xlu1 %v2820_v32 }
   0x3   :  { %v52_v7 = vunpack.c.0.s8 %v51_v4  ;;  %s2818_s8 = smov 112   ;;  %v2544_v31 = vld [vmem:[%s4543_s3 + $0x11] ss:$8 sm:$0x3]  ;;  %s2821_s13 = smov 111   ;;  %v351_v40 = vld [vmem:[%s4544_s2] sm:$0xff] }
   0x4   :  { %v2864_v8 = vsub.s32 0, %v54_v5  ;;  %v2866_v9 = vsub.s32 1, %v54_v5  ;;  %vm41_vm0 = vcmp.gt.f32.partialorder %v2544_v31, 0.5  ;;  %v2545_v33 = vld [vmem:[%s4543_s3 + $0x12] ss:$8 sm:$0x3] }
   0x5   :  { %v2868_v10 = vsub.s32 %v52_v7, %v54_v5  ;;  %vm44_vm1 = vcmp.gt.f32.partialorder %v2545_v33, 0.5  ;;  %v2919_v34 = vsel %vm41_vm0, 1, %v2820_v32  ;;  %v2937_v45 = vand.u32 127, %v53_v0  ;;  %v2540_v48 = vld [vmem:[%s4543_s3 + $0x5] ss:$8 sm:$0x3] }
   0x6   :  { %v2875_v13 = vrot.slane %v2539_v11, %v2864_v8  ;;  %v2878_v14 = vrot.slane %v2539_v11, %v2866_v9  ;;  %v1698_v35 = vrot.slane %v2919_v34, %v2864_v8  ;;  %v1702_v36 = vrot.slane %v2919_v34, %v2866_v9  ;;  %v2537_v49 = vld [vmem:[%s4543_s3 + $0x2] ss:$8 sm:$0x3]  ;;  %v2541_v50 = vld [vmem:[%s4543_s3 + $0x6] ss:$8 sm:$0x3] }
   0x7   :  { %v56_v12 = vrot.slane %v49_v6, %v2868_v10  ;;  %v2927_v37 = vsel %vm44_vm1, 1, %v2820_v32  ;;  %vm100_vm2 = vcmp.lt.s32.totalorder %v2937_v45, 16  ;;  %vm120_vm3 = vcmp.lt.s32.totalorder %v2937_v45, 15  ;;  %v2536_v51 = vld [vmem:[%s4543_s3 + $0x1] ss:$8 sm:$0x3] }
   0x8   :  { %v165_v17 = vcombine.low %v2875_v13, %v2878_v14  ;;  %v1723_v38 = vrot.slane %v2927_v37, %v2864_v8  ;;  %v1727_v39 = vrot.slane %v2927_v37, %v2866_v9  ;;  %vm140_vm4 = vcmp.lt.s32.totalorder %v2937_v45, 1  ;;  %v22_v54 = vld [vmem:[%s4543_s3] ss:$8 sm:$0x3] }
   0x9   :  { %v64_v15 = vrot.slane %v56_v12, %v2868_v10  ;;  %v57_v16 = vcombine.high %v56_v12, %v56_v12  ;;  %vm196_vm5 = vcmp.lt.s32.totalorder %v2937_v45, 127  ;;  %vm216_vm6 = vcmp.lt.s32.totalorder %v2937_v45, 113  ;;  %v2538_v59 = vld [vmem:[%s4543_s3 + $0x3] ss:$8 sm:$0x3] }
   0xa   :  { %v172_v19 = vrot.slane %v165_v17, %v2868_v10  ;;  %v2960_v55 = vrot.slane %v2540_v48, %v2864_v8  ;;  %v2963_v56 = vrot.slane %v2540_v48, %v2866_v9  ;;  %v2966_v57 = vrot.slane %v2537_v49, %v2864_v8  ;;  %v2542_v0 = vld [vmem:[%s4543_s3 + $0x7] ss:$8 sm:$0x3] }
   0xb   :  { %192 = vrot.lane.b32.xlu1 %v64_v15, %s2812_s0  ;;  %96 = vrot.lane.b32.xlu0 %v64_v15, %s2813_s27  ;;  %v71_v18 = vrot.slane %v57_v16, %v2868_v10  ;;  %v2969_v58 = vrot.slane %v2537_v49, %v2866_v9  ;;  %vm236_vm7 = vcmp.lt.s32.totalorder %v2937_v45, 112  ;;  %v2976_v60 = vrot.slane %v2541_v50, %v2864_v8 }
   0xc   :  { %v173_v20 = vcombine.high %v172_v19, %v172_v19  ;;  %v180_v21 = vrot.slane %v172_v19, %v2868_v10  ;;  %v2979_v61 = vrot.slane %v2541_v50, %v2866_v9  ;;  %v2982_v62 = vrot.slane %v2536_v51, %v2864_v8 }
   0xd   :  { %v2985_v63 = vrot.slane %v2536_v51, %v2866_v9  ;;  %vm80_vm8 = vcmp.lt.s32.totalorder %v2937_v45, 17  ;;  %v2997_v3 = vrot.slane %v22_v54, %v2866_v9  ;;  %vm335_vm9 = vcmask 1041408  }
   0xe   :  { %v187_v22 = vrot.slane %v173_v20, %v2868_v10  ;;  %v190_v23 = vmul.f32 %v180_v21, %v45_v1  ;;  %v3006_v12 = vrot.slane %v2538_v59, %v2864_v8  ;;  %v3013_v17 = vrot.slane %v2538_v59, %v2866_v9 }
   0xf   :  { %116 = vrot.lane.b32.xlu0 %v64_v15, %s2814_s28  ;;  %194 = vrot.lane.b32.xlu1 %v71_v18, %s2812_s0  ;;  %vm338_vm10 = vcmask 1043456   ;;  %vm341_vm11 = vcmask 1045504   ;;  %vm256_vm12 = vcmp.lt.s32.totalorder %v2937_v45, 111  ;;  %vm357_vm13 = vcmask 146432  }
  0x10   :  { %v191_v24 = vmul.f32 %v187_v22, %v46_v2  ;;  %v2994_v2 = vrot.slane %v22_v54, %v2864_v8  ;;  %v3024_v22 = vrot.slane %v2542_v0, %v2866_v9  ;;  %vm517_vm14 = vcmask 588800  }
  0x11   :  { %vm3774_vm15 = vcmp.eq.s32.totalorder %v1698_v35, 1  ;;  %vm3785_vm0 = vcmp.eq.s32.totalorder %v1702_v36, 1  ;;  %vm3804_vm1 = vcmp.eq.s32.totalorder %v1723_v38, 1 }
  0x12   :  { %v292_v25 = vcombine.low %v190_v23, %v191_v24 }
  0x13   :  { %212 = vrot.lane.b32.xlu0 %v64_v15, %s2815_s29  ;;  %118 = vrot.lane.b32.xlu1 %v71_v18, %s2814_s28 }
  0x14   :  { %v2894_v26 = vrot.slane %v292_v25, %v2868_v10 }
  0x16   :  { %v300_v27 = vcombine.high %v2894_v26, %v2894_v26  ;;  %v307_v28 = vrot.slane %v2894_v26, %v2868_v10 }
  0x17   :  { %214 = vrot.lane.b32.xlu1 %v71_v18, %s2815_s29  ;;  %98 = vrot.lane.b32.xlu0 %v71_v18, %s2813_s27 }
  0x18   :  { %v2903_v29 = vrot.slane %v300_v27, %v2868_v10 }
  0x1b   :  { %76 = vrot.lane.b32.xlu1 %v71_v18, %s2816_s30  ;;  %74 = vrot.lane.b32.xlu0 %v64_v15, %s2816_s30 }
  0x1f   :  { %138 = vrot.lane.b32.xlu1 %v71_v18, %s2817_s7  ;;  %136 = vrot.lane.b32.xlu0 %v64_v15, %s2817_s7 }
  0x23   :  { %234 = vrot.lane.b32.xlu1 %v71_v18, %s2818_s8  ;;  %232 = vrot.lane.b32.xlu0 %v64_v15, %s2818_s8 }
  0x27   :  { %254 = vrot.lane.b32.xlu1 %v71_v18, %s2821_s13  ;;  %252 = vrot.lane.b32.xlu0 %v64_v15, %s2821_s13  ;;  %v3016_v18 = vrot.slane %v2542_v0, %v2864_v8 }
  0x2b   :  { %354 = vperm.xlu0 %2757, %v351_v40  }
  0x7d   :  { %v193_v41 = vpop.permute.xlu1 %192  ;;  %v97_v42 = vpop.permute.xlu0 %96 }
  0x81   :  { %v117_v43 = vpop.permute.xlu0 %116  ;;  %v195_v44 = vpop.permute.xlu1 %194 }
  0x82   :  { %v198_v1 = vsel %vm196_vm5, %v195_v44, %v193_v41  ;;  %v197_v4 = vsel %vm196_vm5, %v193_v41, %v195_v44 }
  0x83   :  { %v211_v19 = vmul.f32 %v2963_v56, %v198_v1  ;;  %v210_v23 = vmul.f32 %v2960_v55, %v197_v4 }
  0x85   :  { %v213_v46 = vpop.permute.xlu0 %212  ;;  %v119_v47 = vpop.permute.xlu1 %118  ;;  %v319_v59 = vrot.slane %v210_v23, 6 }
  0x86   :  { %v121_v27 = vsel %vm120_vm3, %v117_v43, %v119_v47  ;;  %v122_v31 = vsel %vm120_vm3, %v119_v47, %v117_v43  ;;  %v2543_v43 = vld [vmem:[%s4543_s3 + $0x10] ss:$8 sm:$0x3]  ;;  %v320_v47 = vrot.slane %v211_v19, 6 }
  0x87   :  { %v134_v51 = vmul.f32 %v2966_v57, %v122_v31  ;;  %v3063_v31 = vrot.slane %v2543_v43, %v2866_v9 }
  0x89   :  { %v215_v52 = vpop.permute.xlu1 %214  ;;  %v99_v53 = vpop.permute.xlu0 %98 }
  0x8a   :  { %v101_v5 = vsel %vm100_vm2, %v97_v42, %v99_v53  ;;  %v102_v6 = vsel %vm100_vm2, %v99_v53, %v97_v42  ;;  %v217_v15 = vsel %vm216_vm6, %v213_v46, %v215_v52  ;;  %v218_v16 = vsel %vm216_vm6, %v215_v52, %v213_v46 }
  0x8b   :  { %v114_v24 = vmul.f32 %v2982_v62, %v102_v6  ;;  %v115_v25 = vmul.f32 %v2985_v63, %v101_v5  ;;  %v230_v32 = vmul.f32 %v2976_v60, %v217_v15  ;;  %v231_v33 = vmul.f32 %v2979_v61, %v218_v16 }
  0x8c   :  { %v135_v52 = vmul.f32 %v2969_v58, %v121_v27  ;;  %v3050_v6 = vrot.slane %v2543_v43, %v2864_v8  ;;  %v345_v27 = vsel %vm335_vm9, %v2903_v29, %v320_v47 }
  0x8d   :  { %v77_v7 = vpop.permute.xlu1 %76  ;;  %v75_v11 = vpop.permute.xlu0 %74  ;;  %v274_v53 = vrot.slane %v114_v24, 6  ;;  %v275_v54 = vrot.slane %v115_v25, 6  ;;  %v325_v0 = vrot.slane %v230_v32, 4  ;;  %v326_v1 = vrot.slane %v231_v33, 4 }
  0x8e   :  { %v81_v20 = vsel %vm80_vm8, %v75_v11, %v77_v7  ;;  %v82_v21 = vsel %vm80_vm8, %v77_v7, %v75_v11  ;;  %v280_v24 = vrot.slane %v134_v51, 4  ;;  %v281_v25 = vrot.slane %v135_v52, 4 }
  0x8f   :  { %v94_v42 = vmul.f32 %v2994_v2, %v82_v21  ;;  %v95_v44 = vmul.f32 %v2997_v3, %v81_v20 }
  0x91   :  { %v139_v40 = vpop.permute.xlu1 %138  ;;  %v137_v41 = vpop.permute.xlu0 %136  ;;  %v336_v7 = vsel %vm335_vm9, %v94_v42, %v274_v53  ;;  %v337_v11 = vsel %vm335_vm9, %v95_v44, %v275_v54  ;;  %v344_v44 = vsel %vm335_vm9, %v307_v28, %v319_v59  ;;  %v350_v54 = vld [vmem:[%s4545_s1] sm:$0xff] }
  0x92   :  { %v141_v46 = vsel %vm140_vm4, %v137_v41, %v139_v40  ;;  %v142_v48 = vsel %vm140_vm4, %v139_v40, %v137_v41  ;;  %v347_v41 = vsel %vm338_vm10, %v345_v27, %v326_v1  ;;  %v339_v29 = vsel %vm338_vm10, %v336_v7, %v280_v24 }
  0x93   :  { %v154_v49 = vmul.f32 %v3006_v12, %v142_v48  ;;  %v155_v50 = vmul.f32 %v3013_v17, %v141_v46  ;;  %v340_v46 = vsel %vm338_vm10, %v337_v11, %v281_v25  ;;  %v346_v43 = vsel %vm338_vm10, %v344_v44, %v325_v0 }
  0x95   :  { %v235_v4 = vpop.permute.xlu1 %234  ;;  %v233_v5 = vpop.permute.xlu0 %232  ;;  %v286_v19 = vrot.slane %v154_v49, 2  ;;  %v287_v20 = vrot.slane %v155_v50, 2 }
  0x96   :  { %v237_v15 = vsel %vm236_vm7, %v233_v5, %v235_v4  ;;  %v238_v16 = vsel %vm236_vm7, %v235_v4, %v233_v5 }
  0x97   :  { %v250_v21 = vmul.f32 %v3016_v18, %v237_v15  ;;  %v251_v23 = vmul.f32 %v3024_v22, %v238_v16  ;;  %v343_v47 = vsel %vm341_vm11, %v340_v46, %v287_v20  ;;  %v342_v50 = vsel %vm341_vm11, %v339_v29, %v286_v19  ;;  %v2550_v15 = vld [vmem:[%s4544_s2 + $0x8] sm:$0xff]  ;;  %v2556_v16 = vld [vmem:[%s4544_s2 + $0x18] sm:$0xff] }
  0x99   :  { %v331_v32 = vrot.slane %v250_v21, 2  ;;  %v332_v33 = vrot.slane %v251_v23, 2  ;;  %v255_v40 = vpop.permute.xlu1 %254  ;;  %v253_v42 = vpop.permute.xlu0 %252 }
  0x9a   :  { %v258_v48 = vsel %vm256_vm12, %v255_v40, %v253_v42  ;;  %v257_v26 = vsel %vm256_vm12, %v253_v42, %v255_v40 }
  0x9b   :  { %v349_v49 = vsel %vm341_vm11, %v347_v41, %v332_v33  ;;  %v348_v51 = vsel %vm341_vm11, %v346_v43, %v331_v32  ;;  %v3084_v28 = vmul.f32 %v3063_v31, %v258_v48  ;;  %v3090_v53 = vmul.f32 %v3050_v6, %v257_v26 }
  0x9c   :  { %v3079_v10 = vpack.c.bf16 %v349_v49, %v343_v47  ;;  %v3086_v52 = vpack.c.bf16 %v348_v51, %v342_v50 }
  0x9e   :  { %2607 = vmatprep.subr.bf16.mxu0 %v3079_v10 }
  0x9f   :  { %2609 = vmatpush1.bf16.msra.mxu0 %v3086_v52 }
  0xa0   :  { %2546 = vmatprep.subr.msk.mxu0 %vm335_vm9, %v3084_v28 }
  0xa3   :  { %2547 = vmatpush1.msk.msra.mxu0 %vm335_vm9, %v3090_v53 }
  0xa4   :  { %2548 = vmatmul.mubr.msk.f32.vlgmr.msra.gmra.mrb[0].mxu0 %vm357_vm13, %v350_v54 }
  0xa5   :  { %736 = vmatprep.mubr.f32.mxu0 %v2819_v30 }
  0xaa   :  { %v355_v59 = vpop.permute.xlu0 %354 }
 0x177   :  { %v433_v0 = vpop.f32.mrb[0].mxu0 }
 0x178   :  { %v434_v1 = vadd.f32 %v433_v0, %v355_v59  ;;  %v435_v4 = vpop.f32.mrb[1].mxu0 }
 0x179   :  { %v436_v7 = vadd.f32 %v435_v4, %v355_v59 }
 0x17a   :  { %v438_v5 = vmax.f32 %v434_v1, 0.0 }
 0x17b   :  { %v439_v11 = vmax.f32 %v436_v7, 0.0 }
 0x17c   :  { %448 = vrot.lane.b32.xlu0 %v438_v5, %s2813_s27  ;;  %440 = vrot.lane.b32.xlu1 %v438_v5, %s2816_s30 }
 0x180   :  { %456 = vrot.lane.b32.xlu0 %v438_v5, %s2814_s28  ;;  %442 = vrot.lane.b32.xlu1 %v439_v11, %s2816_s30 }
 0x184   :  { %464 = vrot.lane.b32.xlu0 %v438_v5, %s2817_s7  ;;  %450 = vrot.lane.b32.xlu1 %v439_v11, %s2813_s27 }
 0x188   :  { %476 = vrot.lane.b32.xlu0 %v438_v5, %s2812_s0  ;;  %458 = vrot.lane.b32.xlu1 %v439_v11, %s2814_s28 }
 0x18c   :  { %484 = vrot.lane.b32.xlu0 %v438_v5, %s2815_s29  ;;  %466 = vrot.lane.b32.xlu1 %v439_v11, %s2817_s7 }
 0x190   :  { %492 = vrot.lane.b32.xlu0 %v438_v5, %s2818_s8  ;;  %478 = vrot.lane.b32.xlu1 %v439_v11, %s2812_s0 }
 0x194   :  { %500 = vrot.lane.b32.xlu0 %v438_v5, %s2821_s13  ;;  %486 = vrot.lane.b32.xlu1 %v439_v11, %s2815_s29 }
 0x198   :  { %514 = vperm.xlu0 %2757, %v2550_v15   ;;  %494 = vrot.lane.b32.xlu1 %v439_v11, %s2818_s8 }
 0x19c   :  { %502 = vrot.lane.b32.xlu1 %v439_v11, %s2821_s13 }
 0x1a0   :  { %751 = vperm.xlu1 %2758, %v2556_v16  }
 0x1ee   :  { %v449_v19 = vpop.permute.xlu0 %448  ;;  %v441_v20 = vpop.permute.xlu1 %440 }
 0x1f2   :  { %v457_v21 = vpop.permute.xlu0 %456  ;;  %v443_v23 = vpop.permute.xlu1 %442 }
 0x1f3   :  { %v445_v24 = vsel %vm80_vm8, %v443_v23, %v441_v20  ;;  %v444_v25 = vsel %vm80_vm8, %v441_v20, %v443_v23 }
 0x1f4   :  { %v447_v41 = vmul.f32 %v444_v25, %v2997_v3  ;;  %v446_v44 = vmul.f32 %v445_v24, %v2994_v2  ;;  %v475_v25 = vmul.f32 %v439_v11, %v2878_v14 }
 0x1f6   :  { %v465_v27 = vpop.permute.xlu0 %464  ;;  %v451_v32 = vpop.permute.xlu1 %450 }
 0x1f7   :  { %v453_v33 = vsel %vm100_vm2, %v451_v32, %v449_v19  ;;  %v452_v40 = vsel %vm100_vm2, %v449_v19, %v451_v32 }
 0x1f8   :  { %v455_v42 = vmul.f32 %v452_v40, %v2985_v63  ;;  %v454_v46 = vmul.f32 %v453_v33, %v2982_v62 }
 0x1fa   :  { %v459_v48 = vpop.permute.xlu1 %458  ;;  %v2610_v29 = vpack.c.bf16 %v455_v42, %v447_v41  ;;  %v2612_v43 = vpack.c.bf16 %v454_v46, %v446_v44  ;;  %v477_v47 = vpop.permute.xlu0 %476 }
 0x1fb   :  { %v460_v49 = vsel %vm120_vm3, %v457_v21, %v459_v48  ;;  %v461_v50 = vsel %vm120_vm3, %v459_v48, %v457_v21 }
 0x1fc   :  { %2611 = vmatprep.subr.bf16.mxu1 %v2610_v29  ;;  %v462_v59 = vmul.f32 %v461_v50, %v2966_v57  ;;  %v463_v0 = vmul.f32 %v460_v49, %v2969_v58 }
 0x1fd   :  { %2613 = vmatpush1.bf16.msra.mxu1 %v2612_v43 }
 0x1fe   :  { %v467_v51 = vpop.permute.xlu1 %466  ;;  %v485_v7 = vpop.permute.xlu0 %484 }
 0x1ff   :  { %v468_v26 = vsel %vm140_vm4, %v465_v27, %v467_v51  ;;  %v469_v54 = vsel %vm140_vm4, %v467_v51, %v465_v27  ;;  %v474_v27 = vmul.f32 %v438_v5, %v2875_v13 }
 0x200   :  { %v470_v1 = vmul.f32 %v469_v54, %v3006_v12  ;;  %v471_v4 = vmul.f32 %v468_v26, %v3013_v17 }
 0x202   :  { %v479_v15 = vpop.permute.xlu1 %478  ;;  %v2614_v16 = vpack.c.bf16 %v471_v4, %v463_v0  ;;  %v2616_v19 = vpack.c.bf16 %v470_v1, %v462_v59  ;;  %v493_v41 = vpop.permute.xlu0 %492  ;;  %v2549_v4 = vld [vmem:[%s4545_s1 + $0x8] sm:$0xff] }
 0x203   :  { %v480_v20 = vsel %vm196_vm5, %v477_v47, %v479_v15  ;;  %v481_v21 = vsel %vm196_vm5, %v479_v15, %v477_v47 }
 0x204   :  { %v482_v23 = vmul.f32 %v480_v20, %v2960_v55  ;;  %v483_v24 = vmul.f32 %v481_v21, %v2963_v56  ;;  %2615 = vmatprep.subr.bf16.mxu1 %v2614_v16 }
 0x205   :  { %2617 = vmatpush1.bf16.msra.mxu1 %v2616_v19 }
 0x206   :  { %v487_v32 = vpop.permute.xlu1 %486  ;;  %v2618_v33 = vpack.c.bf16 %v483_v24, %v475_v25  ;;  %v2620_v40 = vpack.c.bf16 %v482_v23, %v474_v27  ;;  %v501_v49 = vpop.permute.xlu0 %500 }
 0x207   :  { %v488_v42 = vsel %vm216_vm6, %v485_v7, %v487_v32  ;;  %v489_v44 = vsel %vm216_vm6, %v487_v32, %v485_v7  ;;  %v2555_v7 = vld [vmem:[%s4545_s1 + $0x18] sm:$0xff] }
 0x208   :  { %2619 = vmatprep.subr.bf16.mxu1 %v2618_v33  ;;  %v490_v11 = vmul.f32 %v488_v42, %v2976_v60  ;;  %v491_v29 = vmul.f32 %v489_v44, %v2979_v61  ;;  %v2561_v44 = vld [vmem:[%s4544_s2 + $0x20] sm:$0xff] }
 0x209   :  { %2621 = vmatpush1.bf16.msra.mxu1 %v2620_v40 }
 0x20a   :  { %v495_v46 = vpop.permute.xlu1 %494 }
 0x20b   :  { %v496_v48 = vsel %vm236_vm7, %v493_v41, %v495_v46  ;;  %v497_v5 = vsel %vm236_vm7, %v495_v46, %v493_v41  ;;  %v2567_v46 = vld [vmem:[%s4544_s2 + $0x30] sm:$0xff] }
 0x20c   :  { %v498_v43 = vmul.f32 %v496_v48, %v3016_v18  ;;  %v499_v47 = vmul.f32 %v497_v5, %v3024_v22 }
 0x20e   :  { %v503_v50 = vpop.permute.xlu1 %502  ;;  %v2622_v51 = vpack.c.bf16 %v499_v47, %v491_v29  ;;  %v2624_v26 = vpack.c.bf16 %v498_v43, %v490_v11 }
 0x20f   :  { %v505_v54 = vsel %vm256_vm12, %v503_v50, %v501_v49  ;;  %v504_v59 = vsel %vm256_vm12, %v501_v49, %v503_v50 }
 0x210   :  { %2623 = vmatprep.subr.bf16.mxu1 %v2622_v51  ;;  %v507_v0 = vmul.f32 %v505_v54, %v3063_v31  ;;  %v506_v1 = vmul.f32 %v504_v59, %v3050_v6 }
 0x211   :  { %2625 = vmatpush1.bf16.msra.mxu1 %v2624_v26 }
 0x212   :  { %537 = vmatprep.subr.mxu1 %v507_v0 }
 0x215   :  { %538 = vmatpush1.msra.mxu1 %v506_v1 }
 0x216   :  { %2551 = vmatmul.mubr.msk.f32.vlgmr.msra.gmra.mrb[0].mxu1 %vm517_vm14, %v2549_v4  ;;  %2643 = vmatprep.subr.bf16.mxu1 %v3079_v10 }
 0x217   :  { %2645 = vmatpush1.bf16.msra.mxu1 %v3086_v52  ;;  %821 = vmatprep.mubr.f32.mxu1 %v2819_v30  ;;  %v515_v15 = vpop.permute.xlu0 %514 }
 0x218   :  { %2557 = vmatprep.subr.msk.mxu1 %vm335_vm9, %v3084_v28 }
 0x21b   :  { %2558 = vmatpush1.msk.msra.mxu1 %vm335_vm9, %v3090_v53 }
 0x21c   :  { %2559 = vmatmul.mubr.msk.f32.vlgmr.msra.gmra.mrb[2].mxu1 %vm357_vm13, %v2555_v7 }
 0x21d   :  { %1123 = vmatprep.mubr.f32.mxu1 %v2819_v30 }
 0x21f   :  { %v752_v32 = vpop.permute.xlu1 %751 }
 0x2e9   :  { %v587_v16 = vpop.f32.mrb[0].mxu1 }
 0x2ea   :  { %v588_v19 = vadd.f32 %v587_v16, %v515_v15  ;;  %v589_v20 = vpop.f32.mrb[1].mxu1 }
 0x2eb   :  { %v590_v21 = vadd.f32 %v589_v20, %v515_v15 }
 0x2ec   :  { %v3190_v23 = vmax.f32 %v588_v19, 0.0 }
 0x2ed   :  { %v3192_v24 = vmax.f32 %v590_v21, 0.0 }
 0x2ee   :  { %594 = vrot.lane.b32.xlu0 %v3190_v23, %s2816_s30 }
 0x2ef   :  { %596 = vrot.lane.b32.xlu1 %v3192_v24, %s2816_s30  ;;  %v823_v25 = vpop.f32.mrb[2].mxu1 }
 0x2f0   :  { %v825_v27 = vpop.f32.mrb[3].mxu1  ;;  %v824_v33 = vadd.f32 %v823_v25, %v752_v32 }
 0x2f1   :  { %v826_v40 = vadd.f32 %v825_v27, %v752_v32 }
 0x2f2   :  { %602 = vrot.lane.b32.xlu0 %v3190_v23, %s2813_s27  ;;  %v3222_v41 = vmax.f32 %v824_v33, 0.0 }
 0x2f3   :  { %604 = vrot.lane.b32.xlu1 %v3192_v24, %s2813_s27  ;;  %v3226_v42 = vmax.f32 %v826_v40, 0.0 }
 0x2f6   :  { %610 = vrot.lane.b32.xlu0 %v3190_v23, %s2814_s28 }
 0x2f7   :  { %612 = vrot.lane.b32.xlu1 %v3192_v24, %s2814_s28 }
 0x2fa   :  { %618 = vrot.lane.b32.xlu0 %v3190_v23, %s2817_s7 }
 0x2fb   :  { %620 = vrot.lane.b32.xlu1 %v3192_v24, %s2817_s7 }
 0x2fe   :  { %628 = vrot.lane.b32.xlu0 %v3190_v23, %s2812_s0 }
 0x2ff   :  { %630 = vrot.lane.b32.xlu1 %v3192_v24, %s2812_s0 }
 0x302   :  { %636 = vrot.lane.b32.xlu0 %v3190_v23, %s2815_s29 }
 0x303   :  { %638 = vrot.lane.b32.xlu1 %v3192_v24, %s2815_s29 }
 0x306   :  { %644 = vrot.lane.b32.xlu0 %v3190_v23, %s2818_s8 }
 0x307   :  { %646 = vrot.lane.b32.xlu1 %v3192_v24, %s2818_s8 }
 0x30a   :  { %652 = vrot.lane.b32.xlu0 %v3190_v23, %s2821_s13 }
 0x30b   :  { %654 = vrot.lane.b32.xlu1 %v3192_v24, %s2821_s13 }
 0x30e   :  { %830 = vrot.lane.b32.xlu0 %v3222_v41, %s2816_s30 }
 0x30f   :  { %832 = vrot.lane.b32.xlu1 %v3226_v42, %s2816_s30 }
 0x312   :  { %838 = vrot.lane.b32.xlu0 %v3222_v41, %s2813_s27 }
 0x313   :  { %840 = vrot.lane.b32.xlu1 %v3226_v42, %s2813_s27 }
 0x316   :  { %846 = vrot.lane.b32.xlu0 %v3222_v41, %s2814_s28 }
 0x317   :  { %848 = vrot.lane.b32.xlu1 %v3226_v42, %s2814_s28 }
 0x31a   :  { %854 = vrot.lane.b32.xlu0 %v3222_v41, %s2817_s7 }
 0x31b   :  { %856 = vrot.lane.b32.xlu1 %v3226_v42, %s2817_s7 }
 0x31e   :  { %864 = vrot.lane.b32.xlu0 %v3222_v41, %s2812_s0 }
 0x31f   :  { %866 = vrot.lane.b32.xlu1 %v3226_v42, %s2812_s0 }
 0x322   :  { %872 = vrot.lane.b32.xlu0 %v3222_v41, %s2815_s29 }
 0x323   :  { %874 = vrot.lane.b32.xlu1 %v3226_v42, %s2815_s29 }
 0x326   :  { %880 = vrot.lane.b32.xlu0 %v3222_v41, %s2818_s8 }
 0x327   :  { %882 = vrot.lane.b32.xlu1 %v3226_v42, %s2818_s8 }
 0x32a   :  { %888 = vrot.lane.b32.xlu0 %v3222_v41, %s2821_s13 }
 0x32b   :  { %890 = vrot.lane.b32.xlu1 %v3226_v42, %s2821_s13 }
 0x32e   :  { %902 = vperm.xlu0 %2757, %v2561_v44  }
 0x32f   :  { %1138 = vperm.xlu1 %2758, %v2567_v46  }
 0x360   :  { %v595_v48 = vpop.permute.xlu0 %594 }
 0x361   :  { %v597_v5 = vpop.permute.xlu1 %596 }
 0x362   :  { %v598_v11 = vsel %vm80_vm8, %v595_v48, %v597_v5  ;;  %v599_v29 = vsel %vm80_vm8, %v597_v5, %v595_v48 }
 0x363   :  { %v600_v51 = vmul.f32 %v599_v29, %v2994_v2  ;;  %v601_v26 = vmul.f32 %v598_v11, %v2997_v3 }
 0x364   :  { %v603_v43 = vpop.permute.xlu0 %602 }
 0x365   :  { %v605_v47 = vpop.permute.xlu1 %604 }
 0x366   :  { %v606_v49 = vsel %vm100_vm2, %v603_v43, %v605_v47  ;;  %v607_v50 = vsel %vm100_vm2, %v605_v47, %v603_v43  ;;  %v626_v43 = vmul.f32 %v3190_v23, %v2875_v13 }
 0x367   :  { %v608_v54 = vmul.f32 %v607_v50, %v2982_v62  ;;  %v609_v59 = vmul.f32 %v606_v49, %v2985_v63  ;;  %v627_v50 = vmul.f32 %v3192_v24, %v2878_v14 }
 0x368   :  { %v611_v0 = vpop.permute.xlu0 %610 }
 0x369   :  { %v2628_v1 = vpack.c.bf16 %v608_v54, %v600_v51  ;;  %v613_v4 = vpop.permute.xlu1 %612  ;;  %v2626_v7 = vpack.c.bf16 %v609_v59, %v601_v26 }
 0x36a   :  { %v614_v15 = vsel %vm120_vm3, %v611_v0, %v613_v4  ;;  %v615_v16 = vsel %vm120_vm3, %v613_v4, %v611_v0 }
 0x36b   :  { %2627 = vmatprep.subr.bf16.mxu0 %v2626_v7  ;;  %v616_v27 = vmul.f32 %v615_v16, %v2966_v57  ;;  %v617_v32 = vmul.f32 %v614_v15, %v2969_v58 }
 0x36c   :  { %2629 = vmatpush1.bf16.msra.mxu0 %v2628_v1  ;;  %v619_v19 = vpop.permute.xlu0 %618 }
 0x36d   :  { %v621_v20 = vpop.permute.xlu1 %620 }
 0x36e   :  { %v622_v21 = vsel %vm140_vm4, %v619_v19, %v621_v20  ;;  %v623_v25 = vsel %vm140_vm4, %v621_v20, %v619_v19 }
 0x36f   :  { %v624_v33 = vmul.f32 %v623_v25, %v3006_v12  ;;  %v625_v40 = vmul.f32 %v622_v21, %v3013_v17 }
 0x370   :  { %v629_v44 = vpop.permute.xlu0 %628 }
 0x371   :  { %v2632_v46 = vpack.c.bf16 %v624_v33, %v616_v27  ;;  %v631_v48 = vpop.permute.xlu1 %630  ;;  %v2630_v5 = vpack.c.bf16 %v625_v40, %v617_v32 }
 0x372   :  { %v632_v11 = vsel %vm196_vm5, %v629_v44, %v631_v48  ;;  %v633_v29 = vsel %vm196_vm5, %v631_v48, %v629_v44 }
 0x373   :  { %v634_v47 = vmul.f32 %v632_v11, %v2960_v55  ;;  %v635_v49 = vmul.f32 %v633_v29, %v2963_v56  ;;  %2631 = vmatprep.subr.bf16.mxu0 %v2630_v5  ;;  %v2552_v11 = vld [vmem:[%s4545_s1 + $0x10] sm:$0xff] }
 0x374   :  { %2633 = vmatpush1.bf16.msra.mxu0 %v2632_v46  ;;  %v637_v51 = vpop.permute.xlu0 %636 }
 0x375   :  { %v2636_v26 = vpack.c.bf16 %v634_v47, %v626_v43  ;;  %v639_v54 = vpop.permute.xlu1 %638  ;;  %v2634_v59 = vpack.c.bf16 %v635_v49, %v627_v50 }
 0x376   :  { %v640_v0 = vsel %vm216_vm6, %v637_v51, %v639_v54  ;;  %v641_v23 = vsel %vm216_vm6, %v639_v54, %v637_v51 }
 0x377   :  { %2635 = vmatprep.subr.bf16.mxu0 %v2634_v59  ;;  %v642_v15 = vmul.f32 %v640_v0, %v2976_v60  ;;  %v643_v16 = vmul.f32 %v641_v23, %v2979_v61 }
 0x378   :  { %v645_v1 = vpop.permute.xlu0 %644  ;;  %2637 = vmatpush1.bf16.msra.mxu0 %v2636_v26 }
 0x379   :  { %v647_v4 = vpop.permute.xlu1 %646 }
 0x37a   :  { %v648_v7 = vsel %vm236_vm7, %v645_v1, %v647_v4  ;;  %v649_v24 = vsel %vm236_vm7, %v647_v4, %v645_v1 }
 0x37b   :  { %v650_v19 = vmul.f32 %v648_v7, %v3016_v18  ;;  %v651_v20 = vmul.f32 %v649_v24, %v3024_v22 }
 0x37c   :  { %v653_v21 = vpop.permute.xlu0 %652 }
 0x37d   :  { %v2640_v25 = vpack.c.bf16 %v650_v19, %v642_v15  ;;  %v655_v27 = vpop.permute.xlu1 %654  ;;  %v2638_v32 = vpack.c.bf16 %v651_v20, %v643_v16 }
 0x37e   :  { %v657_v33 = vsel %vm256_vm12, %v655_v27, %v653_v21  ;;  %v656_v40 = vsel %vm256_vm12, %v653_v21, %v655_v27 }
 0x37f   :  { %2639 = vmatprep.subr.bf16.mxu0 %v2638_v32  ;;  %v659_v44 = vmul.f32 %v657_v33, %v3063_v31  ;;  %v658_v5 = vmul.f32 %v656_v40, %v3050_v6 }
 0x380   :  { %v831_v46 = vpop.permute.xlu0 %830  ;;  %2641 = vmatpush1.bf16.msra.mxu0 %v2640_v25 }
 0x381   :  { %v833_v48 = vpop.permute.xlu1 %832  ;;  %688 = vmatprep.subr.mxu0 %v659_v44 }
 0x382   :  { %v834_v29 = vsel %vm80_vm8, %v831_v46, %v833_v48  ;;  %v835_v43 = vsel %vm80_vm8, %v833_v48, %v831_v46 }
 0x383   :  { %v836_v26 = vmul.f32 %v835_v43, %v2994_v2  ;;  %v837_v54 = vmul.f32 %v834_v29, %v2997_v3  ;;  %v862_v29 = vmul.f32 %v3222_v41, %v2875_v13 }
 0x384   :  { %v839_v47 = vpop.permute.xlu0 %838  ;;  %689 = vmatpush1.msra.mxu0 %v658_v5 }
 0x385   :  { %v841_v49 = vpop.permute.xlu1 %840  ;;  %2554 = vmatmul.mubr.msk.f32.vlgmr.msra.gmra.mrb[2].mxu0 %vm517_vm14, %v2552_v11 }
 0x386   :  { %v842_v50 = vsel %vm100_vm2, %v839_v47, %v841_v49  ;;  %v843_v51 = vsel %vm100_vm2, %v841_v49, %v839_v47  ;;  %972 = vmatprep.mubr.f32.mxu0 %v2819_v30  ;;  %v863_v49 = vmul.f32 %v3226_v42, %v2878_v14 }
 0x387   :  { %v844_v59 = vmul.f32 %v843_v51, %v2982_v62  ;;  %v845_v0 = vmul.f32 %v842_v50, %v2985_v63 }
 0x388   :  { %v847_v23 = vpop.permute.xlu0 %846 }
 0x389   :  { %v2648_v1 = vpack.c.bf16 %v844_v59, %v836_v26  ;;  %v849_v4 = vpop.permute.xlu1 %848  ;;  %v2646_v7 = vpack.c.bf16 %v845_v0, %v837_v54 }
 0x38a   :  { %v850_v24 = vsel %vm120_vm3, %v847_v23, %v849_v4  ;;  %v851_v15 = vsel %vm120_vm3, %v849_v4, %v847_v23 }
 0x38b   :  { %2647 = vmatprep.subr.bf16.mxu0 %v2646_v7  ;;  %v852_v25 = vmul.f32 %v851_v15, %v2966_v57  ;;  %v853_v27 = vmul.f32 %v850_v24, %v2969_v58 }
 0x38c   :  { %v855_v16 = vpop.permute.xlu0 %854  ;;  %2649 = vmatpush1.bf16.msra.mxu0 %v2648_v1 }
 0x38d   :  { %v857_v19 = vpop.permute.xlu1 %856 }
 0x38e   :  { %v858_v20 = vsel %vm140_vm4, %v855_v16, %v857_v19  ;;  %v859_v21 = vsel %vm140_vm4, %v857_v19, %v855_v16 }
 0x38f   :  { %v860_v32 = vmul.f32 %v859_v21, %v3006_v12  ;;  %v861_v33 = vmul.f32 %v858_v20, %v3013_v17 }
 0x390   :  { %v865_v40 = vpop.permute.xlu0 %864 }
 0x391   :  { %v2652_v44 = vpack.c.bf16 %v860_v32, %v852_v25  ;;  %v867_v46 = vpop.permute.xlu1 %866  ;;  %v2650_v48 = vpack.c.bf16 %v861_v33, %v853_v27 }
 0x392   :  { %v868_v5 = vsel %vm196_vm5, %v865_v40, %v867_v46  ;;  %v869_v11 = vsel %vm196_vm5, %v867_v46, %v865_v40  ;;  %v2560_v40 = vld [vmem:[%s4545_s1 + $0x20] sm:$0xff] }
 0x393   :  { %v870_v43 = vmul.f32 %v868_v5, %v2960_v55  ;;  %v871_v47 = vmul.f32 %v869_v11, %v2963_v56  ;;  %2651 = vmatprep.subr.bf16.mxu0 %v2650_v48 }
 0x394   :  { %v873_v50 = vpop.permute.xlu0 %872  ;;  %2653 = vmatpush1.bf16.msra.mxu0 %v2652_v44  ;;  %v2566_v44 = vld [vmem:[%s4545_s1 + $0x30] sm:$0xff] }
 0x395   :  { %v2656_v51 = vpack.c.bf16 %v870_v43, %v862_v29  ;;  %v875_v26 = vpop.permute.xlu1 %874  ;;  %v2654_v54 = vpack.c.bf16 %v871_v47, %v863_v49 }
 0x396   :  { %v876_v59 = vsel %vm216_vm6, %v873_v50, %v875_v26  ;;  %v877_v41 = vsel %vm216_vm6, %v875_v26, %v873_v50 }
 0x397   :  { %2655 = vmatprep.subr.bf16.mxu0 %v2654_v54  ;;  %v878_v4 = vmul.f32 %v876_v59, %v2976_v60  ;;  %v879_v7 = vmul.f32 %v877_v41, %v2979_v61  ;;  %v2572_v59 = vld [vmem:[%s4544_s2 + $0x38] sm:$0xff] }
 0x398   :  { %v881_v0 = vpop.permute.xlu0 %880  ;;  %2657 = vmatpush1.bf16.msra.mxu0 %v2656_v51 }
 0x399   :  { %v883_v23 = vpop.permute.xlu1 %882 }
 0x39a   :  { %v884_v1 = vsel %vm236_vm7, %v881_v0, %v883_v23  ;;  %v885_v42 = vsel %vm236_vm7, %v883_v23, %v881_v0 }
 0x39b   :  { %v886_v24 = vmul.f32 %v884_v1, %v3016_v18  ;;  %v887_v15 = vmul.f32 %v885_v42, %v3024_v22 }
 0x39c   :  { %v889_v16 = vpop.permute.xlu0 %888 }
 0x39d   :  { %v2660_v19 = vpack.c.bf16 %v886_v24, %v878_v4  ;;  %v891_v20 = vpop.permute.xlu1 %890  ;;  %v2658_v21 = vpack.c.bf16 %v887_v15, %v879_v7 }
 0x39e   :  { %v893_v25 = vsel %vm256_vm12, %v891_v20, %v889_v16  ;;  %v892_v27 = vsel %vm256_vm12, %v889_v16, %v891_v20 }
 0x39f   :  { %2659 = vmatprep.subr.bf16.mxu0 %v2658_v21  ;;  %v895_v32 = vmul.f32 %v893_v25, %v3063_v31  ;;  %v894_v33 = vmul.f32 %v892_v27, %v3050_v6 }
 0x3a0   :  { %2661 = vmatpush1.bf16.msra.mxu0 %v2660_v19 }
 0x3a1   :  { %924 = vmatprep.subr.mxu0 %v895_v32 }
 0x3a4   :  { %925 = vmatpush1.msra.mxu0 %v894_v33 }
 0x3a5   :  { %2562 = vmatmul.mubr.msk.f32.vlgmr.msra.gmra.mrb[4].mxu0 %vm517_vm14, %v2560_v40  ;;  %2679 = vmatprep.subr.bf16.mxu0 %v3079_v10 }
 0x3a6   :  { %2681 = vmatpush1.bf16.msra.mxu0 %v3086_v52  ;;  %1208 = vmatprep.mubr.f32.mxu0 %v2819_v30 }
 0x3a7   :  { %2568 = vmatprep.subr.msk.mxu0 %vm335_vm9, %v3084_v28 }
 0x3aa   :  { %2569 = vmatpush1.msk.msra.mxu0 %vm335_vm9, %v3090_v53 }
 0x3ab   :  { %2570 = vmatmul.mubr.msk.f32.vlgmr.msra.gmra.mrb[6].mxu0 %vm357_vm13, %v2566_v44 }
 0x3ac   :  { %1510 = vmatprep.mubr.f32.mxu0 %v2819_v30 }
 0x3ad   :  { %v903_v52 = vpop.permute.xlu0 %902 }
 0x3ae   :  { %v1139_v49 = vpop.permute.xlu1 %1138 }
 0x458   :  { %v3393_v46 = vpop.f32.mrb[2].mxu0 }
 0x459   :  { %v3395_v10 = vpop.f32.mrb[3].mxu0 }
 0x478   :  { %v974_v48 = vpop.f32.mrb[4].mxu0 }
 0x479   :  { %v975_v5 = vadd.f32 %v974_v48, %v903_v52  ;;  %v976_v11 = vpop.f32.mrb[5].mxu0 }
 0x47a   :  { %v977_v28 = vadd.f32 %v976_v11, %v903_v52 }
 0x47b   :  { %v3397_v29 = vmax.f32 %v975_v5, 0.0 }
 0x47c   :  { %v3399_v43 = vmax.f32 %v977_v28, 0.0 }
 0x47d   :  { %981 = vrot.lane.b32.xlu0 %v3397_v29, %s2816_s30 }
 0x47e   :  { %v1210_v53 = vpop.f32.mrb[6].mxu0  ;;  %983 = vrot.lane.b32.xlu1 %v3399_v43, %s2816_s30 }
 0x47f   :  { %v1212_v47 = vpop.f32.mrb[7].mxu0  ;;  %v1211_v50 = vadd.f32 %v1210_v53, %v1139_v49 }
 0x480   :  { %v1213_v51 = vadd.f32 %v1212_v47, %v1139_v49 }
 0x481   :  { %989 = vrot.lane.b32.xlu0 %v3397_v29, %s2813_s27  ;;  %v3433_v26 = vmax.f32 %v1211_v50, 0.0 }
 0x482   :  { %991 = vrot.lane.b32.xlu1 %v3399_v43, %s2813_s27  ;;  %v3435_v54 = vmax.f32 %v1213_v51, 0.0 }
 0x485   :  { %997 = vrot.lane.b32.xlu0 %v3397_v29, %s2814_s28 }
 0x486   :  { %999 = vrot.lane.b32.xlu1 %v3399_v43, %s2814_s28 }
 0x489   :  { %1005 = vrot.lane.b32.xlu0 %v3397_v29, %s2817_s7 }
 0x48a   :  { %1007 = vrot.lane.b32.xlu1 %v3399_v43, %s2817_s7 }
 0x48d   :  { %1015 = vrot.lane.b32.xlu0 %v3397_v29, %s2812_s0 }
 0x48e   :  { %1017 = vrot.lane.b32.xlu1 %v3399_v43, %s2812_s0 }
 0x491   :  { %1023 = vrot.lane.b32.xlu0 %v3397_v29, %s2815_s29 }
 0x492   :  { %1025 = vrot.lane.b32.xlu1 %v3399_v43, %s2815_s29 }
 0x495   :  { %1031 = vrot.lane.b32.xlu0 %v3397_v29, %s2818_s8 }
 0x496   :  { %1033 = vrot.lane.b32.xlu1 %v3399_v43, %s2818_s8 }
 0x499   :  { %1039 = vrot.lane.b32.xlu0 %v3397_v29, %s2821_s13 }
 0x49a   :  { %1041 = vrot.lane.b32.xlu1 %v3399_v43, %s2821_s13 }
 0x49d   :  { %1217 = vrot.lane.b32.xlu0 %v3433_v26, %s2816_s30 }
 0x49e   :  { %1219 = vrot.lane.b32.xlu1 %v3435_v54, %s2816_s30 }
 0x4a1   :  { %1225 = vrot.lane.b32.xlu0 %v3433_v26, %s2813_s27 }
 0x4a2   :  { %1227 = vrot.lane.b32.xlu1 %v3435_v54, %s2813_s27 }
 0x4a5   :  { %1233 = vrot.lane.b32.xlu0 %v3433_v26, %s2814_s28 }
 0x4a6   :  { %1235 = vrot.lane.b32.xlu1 %v3435_v54, %s2814_s28 }
 0x4a9   :  { %1241 = vrot.lane.b32.xlu0 %v3433_v26, %s2817_s7 }
 0x4aa   :  { %1243 = vrot.lane.b32.xlu1 %v3435_v54, %s2817_s7 }
 0x4ad   :  { %1251 = vrot.lane.b32.xlu0 %v3433_v26, %s2812_s0 }
 0x4ae   :  { %1253 = vrot.lane.b32.xlu1 %v3435_v54, %s2812_s0 }
 0x4b1   :  { %1259 = vrot.lane.b32.xlu0 %v3433_v26, %s2815_s29 }
 0x4b2   :  { %1261 = vrot.lane.b32.xlu1 %v3435_v54, %s2815_s29 }
 0x4b5   :  { %1267 = vrot.lane.b32.xlu0 %v3433_v26, %s2818_s8 }
 0x4b6   :  { %1269 = vrot.lane.b32.xlu1 %v3435_v54, %s2818_s8 }
 0x4b9   :  { %1275 = vrot.lane.b32.xlu0 %v3433_v26, %s2821_s13 }
 0x4ba   :  { %1277 = vrot.lane.b32.xlu1 %v3435_v54, %s2821_s13 }
 0x4bd   :  { %1289 = vperm.xlu0 %2757, %v2572_v59  }
 0x4ef   :  { %v982_v41 = vpop.permute.xlu0 %981 }
 0x4f0   :  { %v984_v0 = vpop.permute.xlu1 %983 }
 0x4f1   :  { %v985_v23 = vsel %vm80_vm8, %v982_v41, %v984_v0  ;;  %v986_v1 = vsel %vm80_vm8, %v984_v0, %v982_v41 }
 0x4f2   :  { %v987_v15 = vmul.f32 %v986_v1, %v2994_v2  ;;  %v988_v16 = vmul.f32 %v985_v23, %v2997_v3  ;;  %v1013_v23 = vmul.f32 %v3397_v29, %v2875_v13 }
 0x4f3   :  { %v990_v42 = vpop.permute.xlu0 %989 }
 0x4f4   :  { %v992_v4 = vpop.permute.xlu1 %991 }
 0x4f5   :  { %v993_v7 = vsel %vm100_vm2, %v990_v42, %v992_v4  ;;  %v994_v24 = vsel %vm100_vm2, %v992_v4, %v990_v42  ;;  %v1014_v4 = vmul.f32 %v3399_v43, %v2878_v14 }
 0x4f6   :  { %v995_v19 = vmul.f32 %v994_v24, %v2982_v62  ;;  %v996_v20 = vmul.f32 %v993_v7, %v2985_v63 }
 0x4f7   :  { %v998_v21 = vpop.permute.xlu0 %997 }
 0x4f8   :  { %v2664_v25 = vpack.c.bf16 %v995_v19, %v987_v15  ;;  %v1000_v27 = vpop.permute.xlu1 %999  ;;  %v2662_v32 = vpack.c.bf16 %v996_v20, %v988_v16 }
 0x4f9   :  { %v1001_v33 = vsel %vm120_vm3, %v998_v21, %v1000_v27  ;;  %v1002_v40 = vsel %vm120_vm3, %v1000_v27, %v998_v21 }
 0x4fa   :  { %2663 = vmatprep.subr.bf16.mxu1 %v2662_v32  ;;  %v1003_v11 = vmul.f32 %v1002_v40, %v2966_v57  ;;  %v1004_v28 = vmul.f32 %v1001_v33, %v2969_v58 }
 0x4fb   :  { %2665 = vmatpush1.bf16.msra.mxu1 %v2664_v25  ;;  %v1006_v44 = vpop.permute.xlu0 %1005 }
 0x4fc   :  { %v1008_v52 = vpop.permute.xlu1 %1007 }
 0x4fd   :  { %v1009_v48 = vsel %vm140_vm4, %v1006_v44, %v1008_v52  ;;  %v1010_v5 = vsel %vm140_vm4, %v1008_v52, %v1006_v44 }
 0x4fe   :  { %v1011_v53 = vmul.f32 %v1010_v5, %v3006_v12  ;;  %v1012_v47 = vmul.f32 %v1009_v48, %v3013_v17 }
 0x4ff   :  { %v1016_v49 = vpop.permute.xlu0 %1015 }
 0x500   :  { %v2668_v50 = vpack.c.bf16 %v1011_v53, %v1003_v11  ;;  %v1018_v51 = vpop.permute.xlu1 %1017  ;;  %v2666_v59 = vpack.c.bf16 %v1012_v47, %v1004_v28 }
 0x501   :  { %v1019_v41 = vsel %vm196_vm5, %v1016_v49, %v1018_v51  ;;  %v1020_v0 = vsel %vm196_vm5, %v1018_v51, %v1016_v49  ;;  %v2563_v51 = vld [vmem:[%s4545_s1 + $0x28] sm:$0xff] }
 0x502   :  { %v1021_v1 = vmul.f32 %v1019_v41, %v2960_v55  ;;  %v1022_v42 = vmul.f32 %v1020_v0, %v2963_v56  ;;  %2667 = vmatprep.subr.bf16.mxu1 %v2666_v59 }
 0x503   :  { %2669 = vmatpush1.bf16.msra.mxu1 %v2668_v50  ;;  %v1024_v7 = vpop.permute.xlu0 %1023 }
 0x504   :  { %v2672_v24 = vpack.c.bf16 %v1021_v1, %v1013_v23  ;;  %v1026_v15 = vpop.permute.xlu1 %1025  ;;  %v2670_v16 = vpack.c.bf16 %v1022_v42, %v1014_v4 }
 0x505   :  { %v1027_v19 = vsel %vm216_vm6, %v1024_v7, %v1026_v15  ;;  %v1028_v29 = vsel %vm216_vm6, %v1026_v15, %v1024_v7 }
 0x506   :  { %2671 = vmatprep.subr.bf16.mxu1 %v2670_v16  ;;  %v1029_v27 = vmul.f32 %v1027_v19, %v2976_v60  ;;  %v1030_v32 = vmul.f32 %v1028_v29, %v2979_v61 }
 0x507   :  { %v1032_v20 = vpop.permute.xlu0 %1031  ;;  %2673 = vmatpush1.bf16.msra.mxu1 %v2672_v24 }
 0x508   :  { %v1034_v21 = vpop.permute.xlu1 %1033 }
 0x509   :  { %v1035_v25 = vsel %vm236_vm7, %v1032_v20, %v1034_v21  ;;  %v1036_v43 = vsel %vm236_vm7, %v1034_v21, %v1032_v20 }
 0x50a   :  { %v1037_v33 = vmul.f32 %v1035_v25, %v3016_v18  ;;  %v1038_v40 = vmul.f32 %v1036_v43, %v3024_v22 }
 0x50b   :  { %v1040_v44 = vpop.permute.xlu0 %1039 }
 0x50c   :  { %v2676_v52 = vpack.c.bf16 %v1037_v33, %v1029_v27  ;;  %v1042_v48 = vpop.permute.xlu1 %1041  ;;  %v2674_v5 = vpack.c.bf16 %v1038_v40, %v1030_v32 }
 0x50d   :  { %v1044_v11 = vsel %vm256_vm12, %v1042_v48, %v1040_v44  ;;  %v1043_v28 = vsel %vm256_vm12, %v1040_v44, %v1042_v48 }
 0x50e   :  { %2675 = vmatprep.subr.bf16.mxu1 %v2674_v5  ;;  %v1046_v53 = vmul.f32 %v1044_v11, %v3063_v31  ;;  %v1045_v50 = vmul.f32 %v1043_v28, %v3050_v6 }
 0x50f   :  { %v1218_v47 = vpop.permute.xlu0 %1217  ;;  %2677 = vmatpush1.bf16.msra.mxu1 %v2676_v52 }
 0x510   :  { %v1220_v49 = vpop.permute.xlu1 %1219  ;;  %1075 = vmatprep.subr.mxu1 %v1046_v53 }
 0x511   :  { %v1221_v59 = vsel %vm80_vm8, %v1218_v47, %v1220_v49  ;;  %v1222_v41 = vsel %vm80_vm8, %v1220_v49, %v1218_v47 }
 0x512   :  { %v1223_v4 = vmul.f32 %v1222_v41, %v2994_v2  ;;  %v1224_v7 = vmul.f32 %v1221_v59, %v2997_v3  ;;  %v1250_v41 = vmul.f32 %v3435_v54, %v2878_v14 }
 0x513   :  { %v1226_v0 = vpop.permute.xlu0 %1225  ;;  %1076 = vmatpush1.msra.mxu1 %v1045_v50  ;;  %v1249_v50 = vmul.f32 %v3433_v26, %v2875_v13 }
 0x514   :  { %v1228_v23 = vpop.permute.xlu1 %1227  ;;  %2565 = vmatmul.mubr.msk.f32.vlgmr.msra.gmra.mrb[4].mxu1 %vm517_vm14, %v2563_v51 }
 0x515   :  { %v1229_v1 = vsel %vm100_vm2, %v1226_v0, %v1228_v23  ;;  %v1230_v42 = vsel %vm100_vm2, %v1228_v23, %v1226_v0  ;;  %1359 = vmatprep.mubr.f32.mxu1 %v2819_v30 }
 0x516   :  { %v1231_v24 = vmul.f32 %v1230_v42, %v2982_v62  ;;  %v1232_v15 = vmul.f32 %v1229_v1, %v2985_v63 }
 0x517   :  { %v1234_v16 = vpop.permute.xlu0 %1233 }
 0x518   :  { %v2684_v19 = vpack.c.bf16 %v1231_v24, %v1223_v4  ;;  %v1236_v29 = vpop.permute.xlu1 %1235  ;;  %v2682_v20 = vpack.c.bf16 %v1232_v15, %v1224_v7 }
 0x519   :  { %v1237_v21 = vsel %vm120_vm3, %v1234_v16, %v1236_v29  ;;  %v1238_v25 = vsel %vm120_vm3, %v1236_v29, %v1234_v16 }
 0x51a   :  { %2683 = vmatprep.subr.bf16.mxu1 %v2682_v20  ;;  %v1239_v40 = vmul.f32 %v1238_v25, %v2966_v57  ;;  %v1240_v44 = vmul.f32 %v1237_v21, %v2969_v58 }
 0x51b   :  { %v1242_v43 = vpop.permute.xlu0 %1241  ;;  %2685 = vmatpush1.bf16.msra.mxu1 %v2684_v19 }
 0x51c   :  { %v1244_v27 = vpop.permute.xlu1 %1243 }
 0x51d   :  { %v1245_v32 = vsel %vm140_vm4, %v1242_v43, %v1244_v27  ;;  %v1246_v33 = vsel %vm140_vm4, %v1244_v27, %v1242_v43 }
 0x51e   :  { %v1247_v52 = vmul.f32 %v1246_v33, %v3006_v12  ;;  %v1248_v48 = vmul.f32 %v1245_v32, %v3013_v17 }
 0x51f   :  { %v1252_v5 = vpop.permute.xlu0 %1251 }
 0x520   :  { %v2688_v11 = vpack.c.bf16 %v1247_v52, %v1239_v40  ;;  %v1254_v28 = vpop.permute.xlu1 %1253  ;;  %v2686_v53 = vpack.c.bf16 %v1248_v48, %v1240_v44  ;;  %v2571_v52 = vld [vmem:[%s4545_s1 + $0x38] sm:$0xff] }
 0x521   :  { %v1255_v47 = vsel %vm196_vm5, %v1252_v5, %v1254_v28  ;;  %v1256_v49 = vsel %vm196_vm5, %v1254_v28, %v1252_v5 }
 0x522   :  { %v1257_v51 = vmul.f32 %v1255_v47, %v2960_v55  ;;  %v1258_v59 = vmul.f32 %v1256_v49, %v2963_v56  ;;  %2687 = vmatprep.subr.bf16.mxu1 %v2686_v53 }
 0x523   :  { %v1260_v0 = vpop.permute.xlu0 %1259  ;;  %2689 = vmatpush1.bf16.msra.mxu1 %v2688_v11 }
 0x524   :  { %v2692_v23 = vpack.c.bf16 %v1257_v51, %v1249_v50  ;;  %v1262_v1 = vpop.permute.xlu1 %1261  ;;  %v2690_v42 = vpack.c.bf16 %v1258_v59, %v1250_v41  ;;  %v2575_v59 = vld [vmem:[%s4544_s2 + $0x40] sm:$0xff] }
 0x525   :  { %v1263_v4 = vsel %vm216_vm6, %v1260_v0, %v1262_v1  ;;  %v1264_v26 = vsel %vm216_vm6, %v1262_v1, %v1260_v0 }
 0x526   :  { %2691 = vmatprep.subr.bf16.mxu1 %v2690_v42  ;;  %v1265_v16 = vmul.f32 %v1263_v4, %v2976_v60  ;;  %v1266_v19 = vmul.f32 %v1264_v26, %v2979_v61 }
 0x527   :  { %v1268_v7 = vpop.permute.xlu0 %1267  ;;  %2693 = vmatpush1.bf16.msra.mxu1 %v2692_v23 }
 0x528   :  { %v1270_v24 = vpop.permute.xlu1 %1269 }
 0x529   :  { %v1271_v15 = vsel %vm236_vm7, %v1268_v7, %v1270_v24  ;;  %v1272_v54 = vsel %vm236_vm7, %v1270_v24, %v1268_v7 }
 0x52a   :  { %v1273_v29 = vmul.f32 %v1271_v15, %v3016_v18  ;;  %v1274_v20 = vmul.f32 %v1272_v54, %v3024_v22 }
 0x52b   :  { %v1276_v21 = vpop.permute.xlu0 %1275 }
 0x52c   :  { %v2696_v25 = vpack.c.bf16 %v1273_v29, %v1265_v16  ;;  %v1278_v43 = vpop.permute.xlu1 %1277  ;;  %v2694_v27 = vpack.c.bf16 %v1274_v20, %v1266_v19 }
 0x52d   :  { %v1280_v32 = vsel %vm256_vm12, %v1278_v43, %v1276_v21  ;;  %v1279_v33 = vsel %vm256_vm12, %v1276_v21, %v1278_v43 }
 0x52e   :  { %2695 = vmatprep.subr.bf16.mxu1 %v2694_v27  ;;  %v1282_v40 = vmul.f32 %v1280_v32, %v3063_v31  ;;  %v1281_v44 = vmul.f32 %v1279_v33, %v3050_v6 }
 0x52f   :  { %2697 = vmatpush1.bf16.msra.mxu1 %v2696_v25 }
 0x530   :  { %1311 = vmatprep.subr.mxu1 %v1282_v40 }
 0x533   :  { %1312 = vmatpush1.msra.mxu1 %v1281_v44 }
 0x534   :  { %2573 = vmatmul.mubr.msk.f32.vlgmr.msra.gmra.mrb[6].mxu1 %vm517_vm14, %v2571_v52 }
 0x535   :  { %1661 = vmatprep.mubr.f32.mxu1 %v2819_v30 }
 0x53c   :  { %v1290_v11 = vpop.permute.xlu0 %1289 }
 0x5e7   :  { %v3586_v48 = vpop.f32.mrb[4].mxu1 }
 0x5e8   :  { %v3588_v5 = vpop.f32.mrb[5].mxu1 }
 0x607   :  { %v1361_v28 = vpop.f32.mrb[6].mxu1 }
 0x608   :  { %v1362_v53 = vadd.f32 %v1361_v28, %v1290_v11  ;;  %v1363_v47 = vpop.f32.mrb[7].mxu1 }
 0x609   :  { %v1364_v49 = vadd.f32 %v1363_v47, %v1290_v11 }
 0x60a   :  { %v1366_v50 = vmax.f32 %v1362_v53, 0.0 }
 0x60b   :  { %v1367_v51 = vmax.f32 %v1364_v49, 0.0 }
 0x60c   :  { %1368 = vrot.lane.b32.xlu1 %v1366_v50, %s2816_s30 }
 0x60d   :  { %1370 = vrot.lane.b32.xlu0 %v1367_v51, %s2816_s30 }
 0x610   :  { %1376 = vrot.lane.b32.xlu1 %v1366_v50, %s2813_s27 }
 0x611   :  { %1378 = vrot.lane.b32.xlu0 %v1367_v51, %s2813_s27 }
 0x614   :  { %1384 = vrot.lane.b32.xlu1 %v1366_v50, %s2814_s28 }
 0x615   :  { %1386 = vrot.lane.b32.xlu0 %v1367_v51, %s2814_s28 }
 0x618   :  { %1392 = vrot.lane.b32.xlu1 %v1366_v50, %s2817_s7 }
 0x619   :  { %1394 = vrot.lane.b32.xlu0 %v1367_v51, %s2817_s7 }
 0x61c   :  { %1402 = vrot.lane.b32.xlu1 %v1366_v50, %s2812_s0 }
 0x61d   :  { %1404 = vrot.lane.b32.xlu0 %v1367_v51, %s2812_s0 }
 0x620   :  { %1410 = vrot.lane.b32.xlu1 %v1366_v50, %s2815_s29 }
 0x621   :  { %1412 = vrot.lane.b32.xlu0 %v1367_v51, %s2815_s29 }
 0x624   :  { %1418 = vrot.lane.b32.xlu1 %v1366_v50, %s2818_s8 }
 0x625   :  { %1420 = vrot.lane.b32.xlu0 %v1367_v51, %s2818_s8 }
 0x628   :  { %1426 = vrot.lane.b32.xlu1 %v1366_v50, %s2821_s13 }
 0x629   :  { %1428 = vrot.lane.b32.xlu0 %v1367_v51, %s2821_s13 }
 0x62c   :  { %1440 = vperm.xlu1 %2758, %v2575_v59  }
 0x67e   :  { %v1369_v41 = vpop.permute.xlu1 %1368 }
 0x67f   :  { %v1371_v0 = vpop.permute.xlu0 %1370 }
 0x680   :  { %v1372_v23 = vsel %vm80_vm8, %v1369_v41, %v1371_v0  ;;  %v1373_v1 = vsel %vm80_vm8, %v1371_v0, %v1369_v41 }
 0x681   :  { %v1374_v24 = vmul.f32 %v1373_v1, %v2994_v2  ;;  %v1375_v15 = vmul.f32 %v1372_v23, %v2997_v3  ;;  %v1400_v23 = vmul.f32 %v1366_v50, %v2875_v13 }
 0x682   :  { %v1377_v42 = vpop.permute.xlu1 %1376 }
 0x683   :  { %v1379_v4 = vpop.permute.xlu0 %1378 }
 0x684   :  { %v1380_v26 = vsel %vm100_vm2, %v1377_v42, %v1379_v4  ;;  %v1381_v7 = vsel %vm100_vm2, %v1379_v4, %v1377_v42  ;;  %v1401_v4 = vmul.f32 %v1367_v51, %v2878_v14 }
 0x685   :  { %v1382_v54 = vmul.f32 %v1381_v7, %v2982_v62  ;;  %v1383_v16 = vmul.f32 %v1380_v26, %v2985_v63 }
 0x686   :  { %v1385_v19 = vpop.permute.xlu1 %1384 }
 0x687   :  { %v2700_v29 = vpack.c.bf16 %v1382_v54, %v1374_v24  ;;  %v1387_v20 = vpop.permute.xlu0 %1386  ;;  %v2698_v21 = vpack.c.bf16 %v1383_v16, %v1375_v15 }
 0x688   :  { %v1388_v25 = vsel %vm120_vm3, %v1385_v19, %v1387_v20  ;;  %v1389_v43 = vsel %vm120_vm3, %v1387_v20, %v1385_v19 }
 0x689   :  { %2699 = vmatprep.subr.bf16.mxu0 %v2698_v21  ;;  %v1390_v44 = vmul.f32 %v1389_v43, %v2966_v57  ;;  %v1391_v52 = vmul.f32 %v1388_v25, %v2969_v58 }
 0x68a   :  { %2701 = vmatpush1.bf16.msra.mxu0 %v2700_v29  ;;  %v1393_v27 = vpop.permute.xlu1 %1392 }
 0x68b   :  { %v1395_v32 = vpop.permute.xlu0 %1394 }
 0x68c   :  { %v1396_v33 = vsel %vm140_vm4, %v1393_v27, %v1395_v32  ;;  %v1397_v40 = vsel %vm140_vm4, %v1395_v32, %v1393_v27 }
 0x68d   :  { %v1398_v11 = vmul.f32 %v1397_v40, %v3006_v12  ;;  %v1399_v28 = vmul.f32 %v1396_v33, %v3013_v17 }
 0x68e   :  { %v1403_v53 = vpop.permute.xlu1 %1402 }
 0x68f   :  { %v2704_v47 = vpack.c.bf16 %v1398_v11, %v1390_v44  ;;  %v1405_v49 = vpop.permute.xlu0 %1404  ;;  %v2702_v59 = vpack.c.bf16 %v1399_v28, %v1391_v52 }
 0x690   :  { %v1406_v41 = vsel %vm196_vm5, %v1403_v53, %v1405_v49  ;;  %v1407_v0 = vsel %vm196_vm5, %v1405_v49, %v1403_v53  ;;  %v2574_v53 = vld [vmem:[%s4545_s1 + $0x40] sm:$0xff] }
 0x691   :  { %v1408_v1 = vmul.f32 %v1406_v41, %v2960_v55  ;;  %v1409_v42 = vmul.f32 %v1407_v0, %v2963_v56  ;;  %2703 = vmatprep.subr.bf16.mxu0 %v2702_v59 }
 0x692   :  { %2705 = vmatpush1.bf16.msra.mxu0 %v2704_v47  ;;  %v1411_v26 = vpop.permute.xlu1 %1410 }
 0x693   :  { %v2708_v7 = vpack.c.bf16 %v1408_v1, %v1400_v23  ;;  %v1413_v24 = vpop.permute.xlu0 %1412  ;;  %v2706_v15 = vpack.c.bf16 %v1409_v42, %v1401_v4  ;;  %v2578_v42 = vld [vmem:[%s4544_s2 + $0x48] sm:$0xff] }
 0x694   :  { %v1414_v54 = vsel %vm216_vm6, %v1411_v26, %v1413_v24  ;;  %v1415_v16 = vsel %vm216_vm6, %v1413_v24, %v1411_v26 }
 0x695   :  { %2707 = vmatprep.subr.bf16.mxu0 %v2706_v15  ;;  %v1416_v20 = vmul.f32 %v1414_v54, %v2976_v60  ;;  %v1417_v21 = vmul.f32 %v1415_v16, %v2979_v61 }
 0x696   :  { %v1419_v50 = vpop.permute.xlu1 %1418  ;;  %2709 = vmatpush1.bf16.msra.mxu0 %v2708_v7 }
 0x697   :  { %v1421_v19 = vpop.permute.xlu0 %1420 }
 0x698   :  { %v1422_v29 = vsel %vm236_vm7, %v1419_v50, %v1421_v19  ;;  %v1423_v51 = vsel %vm236_vm7, %v1421_v19, %v1419_v50 }
 0x699   :  { %v1424_v25 = vmul.f32 %v1422_v29, %v3016_v18  ;;  %v1425_v43 = vmul.f32 %v1423_v51, %v3024_v22 }
 0x69a   :  { %v1427_v27 = vpop.permute.xlu1 %1426 }
 0x69b   :  { %v2712_v32 = vpack.c.bf16 %v1424_v25, %v1416_v20  ;;  %v1429_v33 = vpop.permute.xlu0 %1428  ;;  %v2710_v40 = vpack.c.bf16 %v1425_v43, %v1417_v21 }
 0x69c   :  { %v1431_v44 = vsel %vm256_vm12, %v1429_v33, %v1427_v27  ;;  %v1430_v52 = vsel %vm256_vm12, %v1427_v27, %v1429_v33 }
 0x69d   :  { %2711 = vmatprep.subr.bf16.mxu0 %v2710_v40  ;;  %v1433_v11 = vmul.f32 %v1431_v44, %v3063_v31  ;;  %v1432_v28 = vmul.f32 %v1430_v52, %v3050_v6 }
 0x69e   :  { %2713 = vmatpush1.bf16.msra.mxu0 %v2712_v32 }
 0x69f   :  { %1462 = vmatprep.subr.mxu0 %v1433_v11 }
 0x6a2   :  { %1463 = vmatpush1.msra.mxu0 %v1432_v28 }
 0x6a3   :  { %2576 = vmatmul.mubr.msk.f32.vlgmr.msra.gmra.mrb[8].mxu0 %vm517_vm14, %v2574_v53 }
 0x6a4   :  { %2408 = vmatprep.mubr.f32.mxu0 %v2819_v30 }
 0x6ab   :  { %v1441_v47 = vpop.permute.xlu1 %1440 }
 0x776   :  { %v1512_v49 = vpop.f32.mrb[8].mxu0 }
 0x777   :  { %v1513_v59 = vadd.f32 %v1512_v49, %v1441_v47  ;;  %v1514_v41 = vpop.f32.mrb[9].mxu0 }
 0x778   :  { %v1515_v0 = vadd.f32 %v1514_v41, %v1441_v47 }
 0x779   :  { %v1517_v23 = vmax.f32 %v1513_v59, 0.0 }
 0x77a   :  { %v1518_v1 = vmax.f32 %v1515_v0, 0.0 }
 0x77b   :  { %1519 = vrot.lane.b32.xlu0 %v1517_v23, %s2816_s30  ;;  %v1551_v0 = vmul.f32 %v1517_v23, %v2875_v13 }
 0x77c   :  { %1521 = vrot.lane.b32.xlu1 %v1518_v1, %s2816_s30 }
 0x77f   :  { %1527 = vrot.lane.b32.xlu0 %v1517_v23, %s2813_s27 }
 0x780   :  { %1529 = vrot.lane.b32.xlu1 %v1518_v1, %s2813_s27 }
 0x783   :  { %1535 = vrot.lane.b32.xlu0 %v1517_v23, %s2814_s28 }
 0x784   :  { %1537 = vrot.lane.b32.xlu1 %v1518_v1, %s2814_s28 }
 0x787   :  { %1543 = vrot.lane.b32.xlu0 %v1517_v23, %s2817_s7 }
 0x788   :  { %1545 = vrot.lane.b32.xlu1 %v1518_v1, %s2817_s7 }
 0x78b   :  { %1553 = vrot.lane.b32.xlu0 %v1517_v23, %s2812_s0 }
 0x78c   :  { %1555 = vrot.lane.b32.xlu1 %v1518_v1, %s2812_s0 }
 0x78f   :  { %1561 = vrot.lane.b32.xlu0 %v1517_v23, %s2815_s29 }
 0x790   :  { %1563 = vrot.lane.b32.xlu1 %v1518_v1, %s2815_s29 }
 0x793   :  { %1569 = vrot.lane.b32.xlu0 %v1517_v23, %s2818_s8 }
 0x794   :  { %1571 = vrot.lane.b32.xlu1 %v1518_v1, %s2818_s8 }
 0x797   :  { %1577 = vrot.lane.b32.xlu0 %v1517_v23, %s2821_s13 }
 0x798   :  { %1579 = vrot.lane.b32.xlu1 %v1518_v1, %s2821_s13 }
 0x79b   :  { %1591 = vperm.xlu0 %2757, %v2578_v42  }
 0x7ed   :  { %v1520_v4 = vpop.permute.xlu0 %1519 }
 0x7ee   :  { %v1522_v26 = vpop.permute.xlu1 %1521 }
 0x7ef   :  { %v1523_v7 = vsel %vm80_vm8, %v1520_v4, %v1522_v26  ;;  %v1524_v24 = vsel %vm80_vm8, %v1522_v26, %v1520_v4  ;;  %vm3811_vm8 = vcmp.eq.s32.totalorder %v1727_v39, 1 }
 0x7f0   :  { %v1525_v19 = vmul.f32 %v1524_v24, %v2994_v2  ;;  %v1526_v29 = vmul.f32 %v1523_v7, %v2997_v3 }
 0x7f1   :  { %v1528_v15 = vpop.permute.xlu0 %1527 }
 0x7f2   :  { %v1530_v54 = vpop.permute.xlu1 %1529 }
 0x7f3   :  { %v1531_v16 = vsel %vm100_vm2, %v1528_v15, %v1530_v54  ;;  %v1532_v50 = vsel %vm100_vm2, %v1530_v54, %v1528_v15 }
 0x7f4   :  { %v1533_v51 = vmul.f32 %v1532_v50, %v2982_v62  ;;  %v1534_v20 = vmul.f32 %v1531_v16, %v2985_v63 }
 0x7f5   :  { %v1536_v21 = vpop.permute.xlu0 %1535 }
 0x7f6   :  { %v2716_v25 = vpack.c.bf16 %v1533_v51, %v1525_v19  ;;  %v1538_v43 = vpop.permute.xlu1 %1537  ;;  %v2714_v27 = vpack.c.bf16 %v1534_v20, %v1526_v29 }
 0x7f7   :  { %v1539_v32 = vsel %vm120_vm3, %v1536_v21, %v1538_v43  ;;  %v1540_v33 = vsel %vm120_vm3, %v1538_v43, %v1536_v21 }
 0x7f8   :  { %2715 = vmatprep.subr.bf16.mxu1 %v2714_v27  ;;  %v1541_v63 = vmul.f32 %v1540_v33, %v2966_v57  ;;  %v1542_v44 = vmul.f32 %v1539_v32, %v2969_v58  ;;  %v2564_v33 = vld [vmem:[%s4544_s2 + $0x28] sm:$0xff] }
 0x7f9   :  { %2717 = vmatpush1.bf16.msra.mxu1 %v2716_v25  ;;  %v1544_v40 = vpop.permute.xlu0 %1543 }
 0x7fa   :  { %v1546_v2 = vpop.permute.xlu1 %1545 }
 0x7fb   :  { %v1547_v3 = vsel %vm140_vm4, %v1544_v40, %v1546_v2  ;;  %v1548_v62 = vsel %vm140_vm4, %v1546_v2, %v1544_v40 }
 0x7fc   :  { %v1549_v52 = vmul.f32 %v1548_v62, %v3006_v12  ;;  %v1550_v11 = vmul.f32 %v1547_v3, %v3013_v17  ;;  %v1552_v12 = vmul.f32 %v1518_v1, %v2878_v14 }
 0x7fd   :  { %v1554_v28 = vpop.permute.xlu0 %1553 }
 0x7fe   :  { %v2720_v53 = vpack.c.bf16 %v1549_v52, %v1541_v63  ;;  %v1556_v47 = vpop.permute.xlu1 %1555  ;;  %v2718_v49 = vpack.c.bf16 %v1550_v11, %v1542_v44 }
 0x7ff   :  { %v1557_v59 = vsel %vm196_vm5, %v1554_v28, %v1556_v47  ;;  %v1558_v41 = vsel %vm196_vm5, %v1556_v47, %v1554_v28 }
 0x800   :  { %v1559_v57 = vmul.f32 %v1557_v59, %v2960_v55  ;;  %v1560_v58 = vmul.f32 %v1558_v41, %v2963_v56  ;;  %2719 = vmatprep.subr.bf16.mxu1 %v2718_v49 }
 0x801   :  { %2721 = vmatpush1.bf16.msra.mxu1 %v2720_v53  ;;  %v1562_v17 = vpop.permute.xlu0 %1561 }
 0x802   :  { %v2724_v42 = vpack.c.bf16 %v1559_v57, %v1551_v0  ;;  %v1564_v4 = vpop.permute.xlu1 %1563  ;;  %v2722_v26 = vpack.c.bf16 %v1560_v58, %v1552_v12 }
 0x803   :  { %v1565_v7 = vsel %vm216_vm6, %v1562_v17, %v1564_v4  ;;  %v1566_v24 = vsel %vm216_vm6, %v1564_v4, %v1562_v17 }
 0x804   :  { %2723 = vmatprep.subr.bf16.mxu1 %v2722_v26  ;;  %v1567_v23 = vmul.f32 %v1565_v7, %v2976_v60  ;;  %v1568_v1 = vmul.f32 %v1566_v24, %v2979_v61  ;;  %v2577_v61 = vld [vmem:[%s4545_s1 + $0x48] sm:$0xff] }
 0x805   :  { %v1570_v13 = vpop.permute.xlu0 %1569  ;;  %2725 = vmatpush1.bf16.msra.mxu1 %v2724_v42 }
 0x806   :  { %v1572_v55 = vpop.permute.xlu1 %1571 }
 0x807   :  { %v1573_v56 = vsel %vm236_vm7, %v1570_v13, %v1572_v55  ;;  %v1574_v14 = vsel %vm236_vm7, %v1572_v55, %v1570_v13 }
 0x808   :  { %v1575_v15 = vmul.f32 %v1573_v56, %v3016_v18  ;;  %v1576_v54 = vmul.f32 %v1574_v14, %v3024_v22 }
 0x809   :  { %v1578_v16 = vpop.permute.xlu0 %1577 }
 0x80a   :  { %v2728_v50 = vpack.c.bf16 %v1575_v15, %v1567_v23  ;;  %v1580_v19 = vpop.permute.xlu1 %1579  ;;  %v2726_v29 = vpack.c.bf16 %v1576_v54, %v1568_v1 }
 0x80b   :  { %v1582_v51 = vsel %vm256_vm12, %v1580_v19, %v1578_v16  ;;  %v1581_v20 = vsel %vm256_vm12, %v1578_v16, %v1580_v19 }
 0x80c   :  { %2727 = vmatprep.subr.bf16.mxu1 %v2726_v29  ;;  %v1584_v21 = vmul.f32 %v1582_v51, %v3063_v31  ;;  %v1583_v60 = vmul.f32 %v1581_v20, %v3050_v6  ;;  %v2553_v6 = vld [vmem:[%s4544_s2 + $0x10] sm:$0xff] }
 0x80d   :  { %2729 = vmatpush1.bf16.msra.mxu1 %v2728_v50 }
 0x80e   :  { %1613 = vmatprep.subr.mxu1 %v1584_v21 }
 0x811   :  { %1614 = vmatpush1.msra.mxu1 %v1583_v60 }
 0x812   :  { %2579 = vmatmul.mubr.msk.f32.vlgmr.msra.gmra.mrb[8].mxu1 %vm517_vm14, %v2577_v61 }
 0x81a   :  { %v1592_v18 = vpop.permute.xlu0 %1591 }
 0x8e5   :  { %v1663_v22 = vpop.f32.mrb[8].mxu1 }
 0x8e6   :  { %v1664_v25 = vadd.f32 %v1663_v22, %v1592_v18  ;;  %v1665_v43 = vpop.f32.mrb[9].mxu1 }
 0x8e7   :  { %v1666_v27 = vadd.f32 %v1665_v43, %v1592_v18 }
 0x8e8   :  { %2759 = vtanh.f32 %v1664_v25 }
 0x8e9   :  { %2761 = vtanh.f32 %v1666_v27 }
 0x8f2   :  { %v3737_v32 = vpop.eup %2759 }
 0x8f3   :  { %v3739_v31 = vpop.eup %2761  ;;  %1670 = vrot.lane.b32.xlu1 %v3737_v32, %s2813_s27  ;;  %v1738_v15 = vmul.f32 4.0, %v3737_v32 }
 0x8f4   :  { %1672 = vrot.lane.b32.xlu0 %v3739_v31, %s2813_s27  ;;  %v1739_v54 = vmul.f32 4.0, %v3739_v31 }
 0x8f7   :  { %1676 = vrot.lane.b32.xlu1 %v3737_v32, %s2818_s8 }
 0x8f8   :  { %1678 = vrot.lane.b32.xlu0 %v3739_v31, %s2818_s8 }
 0x8fb   :  { %1682 = vrot.lane.b32.xlu1 %v3737_v32, %s2815_s29 }
 0x8fc   :  { %1684 = vrot.lane.b32.xlu0 %v3739_v31, %s2815_s29 }
 0x8ff   :  { %1688 = vrot.lane.b32.xlu1 %v3737_v32, %s2817_s7 }
 0x900   :  { %1690 = vrot.lane.b32.xlu0 %v3739_v31, %s2817_s7 }
 0x903   :  { %1707 = vrot.lane.b32.xlu1 %v3737_v32, %s2814_s28 }
 0x904   :  { %1709 = vrot.lane.b32.xlu0 %v3739_v31, %s2814_s28 }
 0x907   :  { %1713 = vrot.lane.b32.xlu1 %v3737_v32, %s2812_s0 }
 0x908   :  { %1715 = vrot.lane.b32.xlu0 %v3739_v31, %s2812_s0 }
 0x90b   :  { %666 = vperm.xlu1 %2758, %v2553_v6  }
 0x90c   :  { %1053 = vperm.xlu0 %2757, %v2564_v33  }
 0x965   :  { %v1671_v40 = vpop.permute.xlu1 %1670 }
 0x966   :  { %v1673_v2 = vpop.permute.xlu0 %1672 }
 0x967   :  { %v1675_v57 = vsel %vm100_vm2, %v1673_v2, %v1671_v40  ;;  %v1674_v4 = vsel %vm100_vm2, %v1671_v40, %v1673_v2 }
 0x969   :  { %v1677_v3 = vpop.permute.xlu1 %1676 }
 0x96a   :  { %v1679_v62 = vpop.permute.xlu0 %1678 }
 0x96b   :  { %v1680_v47 = vsel %vm236_vm7, %v1677_v3, %v1679_v62  ;;  %v1681_v58 = vsel %vm236_vm7, %v1679_v62, %v1677_v3 }
 0x96c   :  { %v1732_v36 = vadd.f32 %v1680_v47, %v1675_v57  ;;  %v1733_v24 = vadd.f32 %v1681_v58, %v1674_v4 }
 0x96d   :  { %v1683_v63 = vpop.permute.xlu1 %1682 }
 0x96e   :  { %v1685_v44 = vpop.permute.xlu0 %1684 }
 0x96f   :  { %v1686_v35 = vsel %vm216_vm6, %v1683_v63, %v1685_v44  ;;  %v1687_v12 = vsel %vm216_vm6, %v1685_v44, %v1683_v63 }
 0x971   :  { %v1689_v52 = vpop.permute.xlu1 %1688 }
 0x972   :  { %v1691_v11 = vpop.permute.xlu0 %1690 }
 0x973   :  { %v1693_v53 = vsel %vm140_vm4, %v1691_v11, %v1689_v52  ;;  %v1692_v41 = vsel %vm140_vm4, %v1689_v52, %v1691_v11 }
 0x974   :  { %v1705_v34 = vsel %vm3774_vm15, %v1686_v35, %v1693_v53  ;;  %v1706_v26 = vsel %vm3785_vm0, %v1687_v12, %v1692_v41 }
 0x975   :  { %v1708_v49 = vpop.permute.xlu1 %1707  ;;  %v1734_v8 = vadd.f32 %v1732_v36, %v1705_v34  ;;  %v1735_v55 = vadd.f32 %v1733_v24, %v1706_v26 }
 0x976   :  { %v1710_v0 = vpop.permute.xlu0 %1709 }
 0x977   :  { %v1711_v13 = vsel %vm120_vm3, %v1708_v49, %v1710_v0  ;;  %v1712_v9 = vsel %vm120_vm3, %v1710_v0, %v1708_v49 }
 0x979   :  { %v1714_v7 = vpop.permute.xlu1 %1713 }
 0x97a   :  { %v1716_v38 = vpop.permute.xlu0 %1715 }
 0x97b   :  { %v1717_v37 = vsel %vm196_vm5, %v1714_v7, %v1716_v38  ;;  %v1718_v39 = vsel %vm196_vm5, %v1716_v38, %v1714_v7 }
 0x97c   :  { %v1730_v56 = vsel %vm3804_vm1, %v1712_v9, %v1717_v37  ;;  %v1731_v14 = vsel %vm3811_vm8, %v1711_v13, %v1718_v39 }
 0x97d   :  { %v1736_v23 = vadd.f32 %v1734_v8, %v1730_v56  ;;  %v1737_v1 = vadd.f32 %v1735_v55, %v1731_v14 }
 0x97f   :  { %v1740_v16 = vsub.f32 %v1736_v23, %v1738_v15  ;;  %v1741_v50 = vsub.f32 %v1737_v1, %v1739_v54 }
 0x981   :  { %2763 = vtanh.f32 %v1740_v16 }
 0x982   :  { %2765 = vtanh.f32 %v1741_v50 }
 0x98a   :  { %v667_v19 = vpop.permute.xlu1 %666 }
 0x98b   :  { %v739_v29 = vadd.f32 %v3393_v46, %v667_v19  ;;  %v741_v51 = vadd.f32 %v3395_v10, %v667_v19  ;;  %v1054_v20 = vpop.permute.xlu0 %1053  ;;  %v2764_v43 = vpop.eup %2763 }
 0x98c   :  { %v1126_v21 = vadd.f32 %v3586_v48, %v1054_v20  ;;  %v1128_v60 = vadd.f32 %v3588_v5, %v1054_v20  ;;  %v2766_v10 = vpop.eup %2765 }
 0x98d   :  { %v3837_v61 = vmax.f32 %v739_v29, 0.0  ;;  %v3839_v18 = vmax.f32 %v741_v51, 0.0 }
 0x98e   :  { %v3841_v22 = vmax.f32 %v1126_v21, 0.0  ;;  %v3843_v25 = vmax.f32 %v1128_v60, 0.0 }
 0x98f   :  { %v1744_v27 = vmul.f32 %v3737_v32, %v3837_v61  ;;  %v1745_v46 = vmul.f32 %v3739_v31, %v3839_v18 }
 0x990   :  { %v1748_v48 = vmul.f32 0.0, %v3841_v22  ;;  %v1749_v5 = vmul.f32 0.0, %v3843_v25 }
 0x991   :  { %v1746_v6 = vsub.f32 %v2764_v43, %v1744_v27  ;;  %v1747_v33 = vsub.f32 %v2766_v10, %v1745_v46 }
 0x993   :  { %v1750_v40 = vsub.f32 %v1746_v6, %v1748_v48  ;;  %v1751_v2 = vsub.f32 %v1747_v33, %v1749_v5 }
 0x995   :  { %v3851_v3 = vmul.f32 0.5, %v1750_v40  ;;  %v3853_v62 = vmul.f32 0.5, %v1751_v2 }
 0x997   :  { %v1756_v63 = vmul.f32 0.5, %v3851_v3  ;;  %v1757_v44 = vmul.f32 0.5, %v3853_v62  ;;  %v1824_v6 = vmul.f32 %v3851_v3, %v3841_v22  ;;  %v1825_v40 = vmul.f32 %v3853_v62, %v3843_v25 }
 0x999   :  { %v3858_v52 = vadd.f32 %v3737_v32, %v1756_v63  ;;  %v3861_v11 = vadd.f32 %v3739_v31, %v1757_v44 }
 0x99b   :  { %1770 = vrot.lane.b32.xlu0 %v3861_v11, %s2813_s27  ;;  %1768 = vrot.lane.b32.xlu1 %v3858_v52, %s2813_s27  ;;  %v1762_v53 = vcombine.low %v3858_v52, %v3861_v11  ;;  %v1763_v47 = vcombine.high %v3858_v52, %v3861_v11  ;;  %v1815_v51 = vmul.f32 4.0, %v3861_v11  ;;  %v1814_v60 = vmul.f32 4.0, %v3858_v52 }
 0x99c   :  { %v1820_v46 = vmul.f32 %v3858_v52, %v3837_v61  ;;  %v1821_v48 = vmul.f32 %v3861_v11, %v3839_v18 }
 0x99d   :  { %1766 = vst [vmem:[%s4546_s6] sm:$0xff] %v1762_v53  ;;  %1767 = vst [vmem:[%s4546_s6 + $0x40] sm:$0xff] %v1763_v47 }
 0x99f   :  { %1776 = vrot.lane.b32.xlu0 %v3861_v11, %s2818_s8  ;;  %1774 = vrot.lane.b32.xlu1 %v3858_v52, %s2818_s8 }
 0x9a3   :  { %1782 = vrot.lane.b32.xlu0 %v3861_v11, %s2815_s29  ;;  %1780 = vrot.lane.b32.xlu1 %v3858_v52, %s2815_s29 }
 0x9a7   :  { %1788 = vrot.lane.b32.xlu0 %v3861_v11, %s2817_s7  ;;  %1786 = vrot.lane.b32.xlu1 %v3858_v52, %s2817_s7 }
 0x9ab   :  { %1796 = vrot.lane.b32.xlu0 %v3861_v11, %s2814_s28  ;;  %1794 = vrot.lane.b32.xlu1 %v3858_v52, %s2814_s28 }
 0x9af   :  { %1802 = vrot.lane.b32.xlu0 %v3861_v11, %s2812_s0  ;;  %1800 = vrot.lane.b32.xlu1 %v3858_v52, %s2812_s0 }
 0xa0d   :  { %v1771_v32 = vpop.permute.xlu0 %1770  ;;  %v1769_v31 = vpop.permute.xlu1 %1768 }
 0xa0e   :  { %v1772_v38 = vsel %vm100_vm2, %v1769_v31, %v1771_v32  ;;  %v1773_v13 = vsel %vm100_vm2, %v1771_v32, %v1769_v31 }
 0xa11   :  { %v1777_v49 = vpop.permute.xlu0 %1776  ;;  %v1775_v35 = vpop.permute.xlu1 %1774 }
 0xa12   :  { %v1778_v12 = vsel %vm236_vm7, %v1775_v35, %v1777_v49  ;;  %v1779_v4 = vsel %vm236_vm7, %v1777_v49, %v1775_v35 }
 0xa13   :  { %v1808_v39 = vadd.f32 %v1778_v12, %v1773_v13  ;;  %v1809_v55 = vadd.f32 %v1779_v4, %v1772_v38 }
 0xa15   :  { %v1783_v41 = vpop.permute.xlu0 %1782  ;;  %v1781_v0 = vpop.permute.xlu1 %1780 }
 0xa16   :  { %v1784_v26 = vsel %vm216_vm6, %v1781_v0, %v1783_v41  ;;  %v1785_v7 = vsel %vm216_vm6, %v1783_v41, %v1781_v0 }
 0xa19   :  { %v1789_v57 = vpop.permute.xlu0 %1788  ;;  %v1787_v58 = vpop.permute.xlu1 %1786 }
 0xa1a   :  { %v1790_v34 = vsel %vm140_vm4, %v1787_v58, %v1789_v57  ;;  %v1791_v36 = vsel %vm140_vm4, %v1789_v57, %v1787_v58 }
 0xa1b   :  { %v1792_v9 = vsel %vm3774_vm15, %v1784_v26, %v1791_v36  ;;  %v1793_v37 = vsel %vm3785_vm0, %v1785_v7, %v1790_v34 }
 0xa1c   :  { %v1810_v56 = vadd.f32 %v1808_v39, %v1792_v9  ;;  %v1811_v14 = vadd.f32 %v1809_v55, %v1793_v37 }
 0xa1d   :  { %v1797_v24 = vpop.permute.xlu0 %1796  ;;  %v1795_v8 = vpop.permute.xlu1 %1794 }
 0xa1e   :  { %v1798_v15 = vsel %vm120_vm3, %v1795_v8, %v1797_v24  ;;  %v1799_v54 = vsel %vm120_vm3, %v1797_v24, %v1795_v8 }
 0xa21   :  { %v1803_v23 = vpop.permute.xlu0 %1802  ;;  %v1801_v1 = vpop.permute.xlu1 %1800 }
 0xa22   :  { %v1804_v16 = vsel %vm196_vm5, %v1801_v1, %v1803_v23  ;;  %v1805_v50 = vsel %vm196_vm5, %v1803_v23, %v1801_v1 }
 0xa23   :  { %v1806_v19 = vsel %vm3804_vm1, %v1799_v54, %v1804_v16  ;;  %v1807_v29 = vsel %vm3811_vm8, %v1798_v15, %v1805_v50 }
 0xa24   :  { %v1812_v20 = vadd.f32 %v1810_v56, %v1806_v19  ;;  %v1813_v21 = vadd.f32 %v1811_v14, %v1807_v29 }
 0xa26   :  { %v1816_v43 = vsub.f32 %v1812_v20, %v1814_v60  ;;  %v1817_v27 = vsub.f32 %v1813_v21, %v1815_v51 }
 0xa28   :  { %2767 = vtanh.f32 %v1816_v43 }
 0xa29   :  { %2769 = vtanh.f32 %v1817_v27 }
 0xa32   :  { %v2768_v10 = vpop.eup %2767 }
 0xa33   :  { %v2770_v5 = vpop.eup %2769  ;;  %v1822_v33 = vsub.f32 %v2768_v10, %v1820_v46 }
 0xa34   :  { %v1823_v2 = vsub.f32 %v2770_v5, %v1821_v48 }
 0xa35   :  { %v1826_v63 = vsub.f32 %v1822_v33, %v1824_v6 }
 0xa36   :  { %v1827_v44 = vsub.f32 %v1823_v2, %v1825_v40 }
 0xa37   :  { %v1828_v53 = vmul.f32 0.5, %v1826_v63 }
 0xa38   :  { %v1829_v47 = vmul.f32 0.5, %v1827_v44 }
 0xa39   :  { %v3940_v32 = vadd.f32 %v1828_v53, %v3851_v3 }
 0xa3a   :  { %v3943_v31 = vadd.f32 %v1829_v47, %v3853_v62 }
 0xa3b   :  { %v1832_v49 = vmul.f32 0.5, %v3940_v32  ;;  %v1901_v53 = vmul.f32 %v3940_v32, %v3841_v22 }
 0xa3c   :  { %v1833_v35 = vmul.f32 0.5, %v3943_v31 }
 0xa3d   :  { %v3948_v41 = vadd.f32 %v1832_v49, %v3858_v52  ;;  %v1902_v49 = vmul.f32 %v3943_v31, %v3843_v25 }
 0xa3e   :  { %v3951_v0 = vadd.f32 %v1833_v35, %v3861_v11 }
 0xa3f   :  { %1845 = vrot.lane.b32.xlu1 %v3948_v41, %s2813_s27  ;;  %v1891_v5 = vmul.f32 4.0, %v3948_v41  ;;  %v1897_v40 = vmul.f32 %v3948_v41, %v3837_v61 }
 0xa40   :  { %1847 = vrot.lane.b32.xlu0 %v3951_v0, %s2813_s27  ;;  %v1838_v3 = vcombine.low %v3948_v41, %v3951_v0  ;;  %v1839_v62 = vcombine.high %v3948_v41, %v3951_v0  ;;  %v1892_v46 = vmul.f32 4.0, %v3951_v0  ;;  %v1898_v63 = vmul.f32 %v3951_v0, %v3839_v18 }
 0xa42   :  { %2580 = vst [vmem:[%s4546_s6 + $0x8] sm:$0xff] %v1838_v3  ;;  %2581 = vst [vmem:[%s4546_s6 + $0x48] sm:$0xff] %v1839_v62 }
 0xa43   :  { %1851 = vrot.lane.b32.xlu1 %v3948_v41, %s2818_s8 }
 0xa44   :  { %1853 = vrot.lane.b32.xlu0 %v3951_v0, %s2818_s8 }
 0xa47   :  { %1857 = vrot.lane.b32.xlu1 %v3948_v41, %s2815_s29 }
 0xa48   :  { %1859 = vrot.lane.b32.xlu0 %v3951_v0, %s2815_s29 }
 0xa4b   :  { %1863 = vrot.lane.b32.xlu1 %v3948_v41, %s2817_s7 }
 0xa4c   :  { %1865 = vrot.lane.b32.xlu0 %v3951_v0, %s2817_s7 }
 0xa4f   :  { %1871 = vrot.lane.b32.xlu1 %v3948_v41, %s2814_s28 }
 0xa50   :  { %1873 = vrot.lane.b32.xlu0 %v3951_v0, %s2814_s28 }
 0xa53   :  { %1877 = vrot.lane.b32.xlu1 %v3948_v41, %s2812_s0 }
 0xa54   :  { %1879 = vrot.lane.b32.xlu0 %v3951_v0, %s2812_s0 }
 0xab1   :  { %v1846_v57 = vpop.permute.xlu1 %1845 }
 0xab2   :  { %v1848_v58 = vpop.permute.xlu0 %1847 }
 0xab3   :  { %v1849_v56 = vsel %vm100_vm2, %v1846_v57, %v1848_v58  ;;  %v1850_v14 = vsel %vm100_vm2, %v1848_v58, %v1846_v57 }
 0xab5   :  { %v1852_v34 = vpop.permute.xlu1 %1851 }
 0xab6   :  { %v1854_v36 = vpop.permute.xlu0 %1853 }
 0xab7   :  { %v1855_v38 = vsel %vm236_vm7, %v1852_v34, %v1854_v36  ;;  %v1856_v13 = vsel %vm236_vm7, %v1854_v36, %v1852_v34 }
 0xab8   :  { %v1885_v15 = vadd.f32 %v1855_v38, %v1850_v14  ;;  %v1886_v54 = vadd.f32 %v1856_v13, %v1849_v56 }
 0xab9   :  { %v1858_v12 = vpop.permute.xlu1 %1857 }
 0xaba   :  { %v1860_v4 = vpop.permute.xlu0 %1859 }
 0xabb   :  { %v1861_v37 = vsel %vm216_vm6, %v1858_v12, %v1860_v4  ;;  %v1862_v39 = vsel %vm216_vm6, %v1860_v4, %v1858_v12 }
 0xabd   :  { %v1864_v26 = vpop.permute.xlu1 %1863 }
 0xabe   :  { %v1866_v7 = vpop.permute.xlu0 %1865 }
 0xabf   :  { %v1867_v24 = vsel %vm140_vm4, %v1864_v26, %v1866_v7  ;;  %v1868_v8 = vsel %vm140_vm4, %v1866_v7, %v1864_v26 }
 0xac0   :  { %v1869_v23 = vsel %vm3774_vm15, %v1861_v37, %v1868_v8  ;;  %v1870_v1 = vsel %vm3785_vm0, %v1862_v39, %v1867_v24 }
 0xac1   :  { %v1872_v9 = vpop.permute.xlu1 %1871  ;;  %v1887_v50 = vadd.f32 %v1885_v15, %v1869_v23  ;;  %v1888_v19 = vadd.f32 %v1886_v54, %v1870_v1 }
 0xac2   :  { %v1874_v55 = vpop.permute.xlu0 %1873 }
 0xac3   :  { %v1875_v51 = vsel %vm120_vm3, %v1872_v9, %v1874_v55  ;;  %v1876_v20 = vsel %vm120_vm3, %v1874_v55, %v1872_v9 }
 0xac5   :  { %v1878_v16 = vpop.permute.xlu1 %1877 }
 0xac6   :  { %v1880_v29 = vpop.permute.xlu0 %1879 }
 0xac7   :  { %v1881_v21 = vsel %vm196_vm5, %v1878_v16, %v1880_v29  ;;  %v1882_v60 = vsel %vm196_vm5, %v1880_v29, %v1878_v16 }
 0xac8   :  { %v1883_v43 = vsel %vm3804_vm1, %v1876_v20, %v1881_v21  ;;  %v1884_v27 = vsel %vm3811_vm8, %v1875_v51, %v1882_v60 }
 0xac9   :  { %v1889_v10 = vadd.f32 %v1887_v50, %v1883_v43  ;;  %v1890_v48 = vadd.f32 %v1888_v19, %v1884_v27 }
 0xacb   :  { %v1893_v6 = vsub.f32 %v1889_v10, %v1891_v5  ;;  %v1894_v33 = vsub.f32 %v1890_v48, %v1892_v46 }
 0xacd   :  { %2771 = vtanh.f32 %v1893_v6 }
 0xace   :  { %2773 = vtanh.f32 %v1894_v33 }
 0xad7   :  { %v2772_v2 = vpop.eup %2771 }
 0xad8   :  { %v2774_v44 = vpop.eup %2773  ;;  %v1899_v47 = vsub.f32 %v2772_v2, %v1897_v40 }
 0xad9   :  { %v1900_v35 = vsub.f32 %v2774_v44, %v1898_v63 }
 0xada   :  { %v1903_v3 = vsub.f32 %v1899_v47, %v1901_v53 }
 0xadb   :  { %v1904_v62 = vsub.f32 %v1900_v35, %v1902_v49 }
 0xadc   :  { %v1905_v57 = vmul.f32 0.5, %v1903_v3 }
 0xadd   :  { %v1906_v58 = vmul.f32 0.5, %v1904_v62 }
 0xade   :  { %v4030_v34 = vadd.f32 %v1905_v57, %v3940_v32 }
 0xadf   :  { %v4033_v36 = vadd.f32 %v1906_v58, %v3943_v31 }
 0xae0   :  { %v1909_v12 = vmul.f32 0.5, %v4030_v34 }
 0xae1   :  { %v1910_v4 = vmul.f32 0.5, %v4033_v36 }
 0xae2   :  { %v4038_v26 = vadd.f32 %v1909_v12, %v3948_v41  ;;  %v1978_v12 = vmul.f32 %v4030_v34, %v3841_v22 }
 0xae3   :  { %v4041_v7 = vadd.f32 %v1910_v4, %v3951_v0 }
 0xae4   :  { %1922 = vrot.lane.b32.xlu1 %v4038_v26, %s2813_s27  ;;  %v1968_v47 = vmul.f32 4.0, %v4038_v26  ;;  %v1974_v3 = vmul.f32 %v4038_v26, %v3837_v61 }
 0xae5   :  { %1924 = vrot.lane.b32.xlu0 %v4041_v7, %s2813_s27  ;;  %v1915_v32 = vcombine.low %v4038_v26, %v4041_v7  ;;  %v1916_v31 = vcombine.high %v4038_v26, %v4041_v7  ;;  %v1969_v63 = vmul.f32 4.0, %v4041_v7  ;;  %v1975_v57 = vmul.f32 %v4041_v7, %v3839_v18 }
 0xae7   :  { %2582 = vst [vmem:[%s4546_s6 + $0x10] sm:$0xff] %v1915_v32  ;;  %2583 = vst [vmem:[%s4546_s6 + $0x50] sm:$0xff] %v1916_v31  ;;  %v1979_v32 = vmul.f32 %v4033_v36, %v3843_v25 }
 0xae8   :  { %1928 = vrot.lane.b32.xlu1 %v4038_v26, %s2818_s8 }
 0xae9   :  { %1930 = vrot.lane.b32.xlu0 %v4041_v7, %s2818_s8 }
 0xaec   :  { %1934 = vrot.lane.b32.xlu1 %v4038_v26, %s2815_s29 }
 0xaed   :  { %1936 = vrot.lane.b32.xlu0 %v4041_v7, %s2815_s29 }
 0xaf0   :  { %1940 = vrot.lane.b32.xlu1 %v4038_v26, %s2817_s7 }
 0xaf1   :  { %1942 = vrot.lane.b32.xlu0 %v4041_v7, %s2817_s7 }
 0xaf4   :  { %1948 = vrot.lane.b32.xlu1 %v4038_v26, %s2814_s28 }
 0xaf5   :  { %1950 = vrot.lane.b32.xlu0 %v4041_v7, %s2814_s28 }
 0xaf8   :  { %1954 = vrot.lane.b32.xlu1 %v4038_v26, %s2812_s0 }
 0xaf9   :  { %1956 = vrot.lane.b32.xlu0 %v4041_v7, %s2812_s0 }
 0xb56   :  { %v1923_v24 = vpop.permute.xlu1 %1922 }
 0xb57   :  { %v1925_v8 = vpop.permute.xlu0 %1924 }
 0xb58   :  { %v1926_v19 = vsel %vm100_vm2, %v1923_v24, %v1925_v8  ;;  %v1927_v29 = vsel %vm100_vm2, %v1925_v8, %v1923_v24 }
 0xb5a   :  { %v1929_v38 = vpop.permute.xlu1 %1928 }
 0xb5b   :  { %v1931_v13 = vpop.permute.xlu0 %1930 }
 0xb5c   :  { %v1932_v23 = vsel %vm236_vm7, %v1929_v38, %v1931_v13  ;;  %v1933_v1 = vsel %vm236_vm7, %v1931_v13, %v1929_v38 }
 0xb5d   :  { %v1962_v21 = vadd.f32 %v1932_v23, %v1927_v29  ;;  %v1963_v60 = vadd.f32 %v1933_v1, %v1926_v19  ;;  %v2795_v23 = vcombine.low %v3858_v52, %v3948_v41  ;;  %v2796_v1 = vcombine.low %v3861_v11, %v3951_v0 }
 0xb5e   :  { %v1935_v9 = vpop.permute.xlu1 %1934 }
 0xb5f   :  { %v1937_v37 = vpop.permute.xlu0 %1936 }
 0xb60   :  { %v1938_v54 = vsel %vm216_vm6, %v1935_v9, %v1937_v37  ;;  %v1939_v16 = vsel %vm216_vm6, %v1937_v37, %v1935_v9 }
 0xb62   :  { %v1941_v39 = vpop.permute.xlu1 %1940 }
 0xb63   :  { %v1943_v55 = vpop.permute.xlu0 %1942 }
 0xb64   :  { %v1944_v56 = vsel %vm140_vm4, %v1941_v39, %v1943_v55  ;;  %v1945_v14 = vsel %vm140_vm4, %v1943_v55, %v1941_v39 }
 0xb65   :  { %v1946_v51 = vsel %vm3774_vm15, %v1938_v54, %v1945_v14  ;;  %v1947_v20 = vsel %vm3785_vm0, %v1939_v16, %v1944_v56  ;;  %v2798_v54 = vcombine.high %v3861_v11, %v3951_v0 }
 0xb66   :  { %v1949_v15 = vpop.permute.xlu1 %1948  ;;  %v1964_v27 = vadd.f32 %v1962_v21, %v1946_v51  ;;  %v1965_v46 = vadd.f32 %v1963_v60, %v1947_v20 }
 0xb67   :  { %v1951_v50 = vpop.permute.xlu0 %1950 }
 0xb68   :  { %v1952_v48 = vsel %vm120_vm3, %v1949_v15, %v1951_v50  ;;  %v1953_v5 = vsel %vm120_vm3, %v1951_v50, %v1949_v15  ;;  %v2797_v15 = vcombine.high %v3858_v52, %v3948_v41 }
 0xb6a   :  { %v1955_v43 = vpop.permute.xlu1 %1954 }
 0xb6b   :  { %v1957_v10 = vpop.permute.xlu0 %1956 }
 0xb6c   :  { %v1958_v6 = vsel %vm196_vm5, %v1955_v43, %v1957_v10  ;;  %v1959_v33 = vsel %vm196_vm5, %v1957_v10, %v1955_v43 }
 0xb6d   :  { %v1960_v40 = vsel %vm3804_vm1, %v1953_v5, %v1958_v6  ;;  %v1961_v2 = vsel %vm3811_vm8, %v1952_v48, %v1959_v33 }
 0xb6e   :  { %v1966_v44 = vadd.f32 %v1964_v27, %v1960_v40  ;;  %v1967_v53 = vadd.f32 %v1965_v46, %v1961_v2 }
 0xb70   :  { %v1970_v49 = vsub.f32 %v1966_v44, %v1968_v47  ;;  %v1971_v35 = vsub.f32 %v1967_v53, %v1969_v63 }
 0xb72   :  { %2775 = vtanh.f32 %v1970_v49 }
 0xb73   :  { %2777 = vtanh.f32 %v1971_v35 }
 0xb7c   :  { %v2776_v62 = vpop.eup %2775 }
 0xb7d   :  { %v2778_v58 = vpop.eup %2777  ;;  %v1976_v4 = vsub.f32 %v2776_v62, %v1974_v3 }
 0xb7e   :  { %v1977_v31 = vsub.f32 %v2778_v58, %v1975_v57 }
 0xb7f   :  { %v1980_v24 = vsub.f32 %v1976_v4, %v1978_v12 }
 0xb80   :  { %v1981_v8 = vsub.f32 %v1977_v31, %v1979_v32 }
 0xb81   :  { %v1982_v38 = vmul.f32 0.5, %v1980_v24 }
 0xb82   :  { %v1983_v13 = vmul.f32 0.5, %v1981_v8 }
 0xb83   :  { %v4120_v9 = vadd.f32 %v1982_v38, %v4030_v34 }
 0xb84   :  { %v4123_v37 = vadd.f32 %v1983_v13, %v4033_v36 }
 0xb85   :  { %v1986_v39 = vmul.f32 0.5, %v4120_v9 }
 0xb86   :  { %v1987_v55 = vmul.f32 0.5, %v4123_v37 }
 0xb87   :  { %v4128_v56 = vadd.f32 %v1986_v39, %v4038_v26 }
 0xb88   :  { %v4131_v14 = vadd.f32 %v1987_v55, %v4041_v7 }
 0xb89   :  { %1999 = vrot.lane.b32.xlu1 %v4128_v56, %s2813_s27  ;;  %v2799_v16 = vcombine.low %v4038_v26, %v4128_v56  ;;  %v2801_v52 = vcombine.high %v4038_v26, %v4128_v56  ;;  %v2045_v55 = vmul.f32 4.0, %v4128_v56 }
 0xb8a   :  { %2001 = vrot.lane.b32.xlu0 %v4131_v14, %s2813_s27  ;;  %v1992_v34 = vcombine.low %v4128_v56, %v4131_v14  ;;  %v1993_v36 = vcombine.high %v4128_v56, %v4131_v14  ;;  %v2800_v50 = vcombine.low %v4041_v7, %v4131_v14  ;;  %v2802_v11 = vcombine.high %v4041_v7, %v4131_v14 }
 0xb8b   :  { %v2732_v0 = vpack.c.bf16 %v2799_v16, %v2795_v23  ;;  %v4169_v29 = vpack.c.bf16 %v2801_v52, %v2797_v15  ;;  %v2046_v38 = vmul.f32 4.0, %v4131_v14  ;;  %v2051_v23 = vmul.f32 %v4128_v56, %v3837_v61 }
 0xb8c   :  { %2584 = vst [vmem:[%s4546_s6 + $0x18] sm:$0xff] %v1992_v34  ;;  %2585 = vst [vmem:[%s4546_s6 + $0x58] sm:$0xff] %v1993_v36  ;;  %v2730_v41 = vpack.c.bf16 %v2800_v50, %v2796_v1  ;;  %v4167_v19 = vpack.c.bf16 %v2802_v11, %v2798_v54  ;;  %v2052_v15 = vmul.f32 %v4131_v14, %v3839_v18 }
 0xb8d   :  { %2005 = vrot.lane.b32.xlu1 %v4128_v56, %s2818_s8  ;;  %v2055_v16 = vmul.f32 %v4120_v9, %v3841_v22  ;;  %v2056_v52 = vmul.f32 %v4123_v37, %v3843_v25 }
 0xb8e   :  { %2007 = vrot.lane.b32.xlu0 %v4131_v14, %s2818_s8  ;;  %2731 = vmatprep.subr.bf16.mxu0 %v2730_v41 }
 0xb8f   :  { %2733 = vmatpush1.bf16.msra.mxu0 %v2732_v0 }
 0xb91   :  { %2011 = vrot.lane.b32.xlu1 %v4128_v56, %s2815_s29 }
 0xb92   :  { %2013 = vrot.lane.b32.xlu0 %v4131_v14, %s2815_s29 }
 0xb95   :  { %2017 = vrot.lane.b32.xlu1 %v4128_v56, %s2817_s7 }
 0xb96   :  { %2019 = vrot.lane.b32.xlu0 %v4131_v14, %s2817_s7 }
 0xb99   :  { %2025 = vrot.lane.b32.xlu1 %v4128_v56, %s2814_s28 }
 0xb9a   :  { %2027 = vrot.lane.b32.xlu0 %v4131_v14, %s2814_s28 }
 0xb9d   :  { %2031 = vrot.lane.b32.xlu1 %v4128_v56, %s2812_s0 }
 0xb9e   :  { %2033 = vrot.lane.b32.xlu0 %v4131_v14, %s2812_s0 }
 0xbfb   :  { %v2000_v26 = vpop.permute.xlu1 %1999 }
 0xbfc   :  { %v2002_v7 = vpop.permute.xlu0 %2001 }
 0xbfd   :  { %v2003_v63 = vsel %vm100_vm2, %v2000_v26, %v2002_v7  ;;  %v2004_v44 = vsel %vm100_vm2, %v2002_v7, %v2000_v26 }
 0xbff   :  { %v2006_v51 = vpop.permute.xlu1 %2005 }
 0xc00   :  { %v2008_v20 = vpop.permute.xlu0 %2007 }
 0xc01   :  { %v2009_v48 = vsel %vm236_vm7, %v2006_v51, %v2008_v20  ;;  %v2010_v5 = vsel %vm236_vm7, %v2008_v20, %v2006_v51 }
 0xc02   :  { %v2039_v49 = vadd.f32 %v2009_v48, %v2004_v44  ;;  %v2040_v35 = vadd.f32 %v2010_v5, %v2003_v63 }
 0xc03   :  { %v2012_v21 = vpop.permute.xlu1 %2011 }
 0xc04   :  { %v2014_v60 = vpop.permute.xlu0 %2013 }
 0xc05   :  { %v2015_v33 = vsel %vm216_vm6, %v2012_v21, %v2014_v60  ;;  %v2016_v40 = vsel %vm216_vm6, %v2014_v60, %v2012_v21 }
 0xc07   :  { %v2018_v43 = vpop.permute.xlu1 %2017 }
 0xc08   :  { %v2020_v27 = vpop.permute.xlu0 %2019 }
 0xc09   :  { %v2021_v46 = vsel %vm140_vm4, %v2018_v43, %v2020_v27  ;;  %v2022_v10 = vsel %vm140_vm4, %v2020_v27, %v2018_v43 }
 0xc0a   :  { %v2023_v53 = vsel %vm3774_vm15, %v2015_v33, %v2022_v10  ;;  %v2024_v47 = vsel %vm3785_vm0, %v2016_v40, %v2021_v46 }
 0xc0b   :  { %v2026_v6 = vpop.permute.xlu1 %2025  ;;  %v2041_v62 = vadd.f32 %v2039_v49, %v2023_v53  ;;  %v2042_v57 = vadd.f32 %v2040_v35, %v2024_v47 }
 0xc0c   :  { %v2028_v2 = vpop.permute.xlu0 %2027 }
 0xc0d   :  { %v2029_v12 = vsel %vm120_vm3, %v2026_v6, %v2028_v2  ;;  %v2030_v4 = vsel %vm120_vm3, %v2028_v2, %v2026_v6 }
 0xc0f   :  { %v2032_v3 = vpop.permute.xlu1 %2031 }
 0xc10   :  { %v2034_v58 = vpop.permute.xlu0 %2033 }
 0xc11   :  { %v2035_v32 = vsel %vm196_vm5, %v2032_v3, %v2034_v58  ;;  %v2036_v31 = vsel %vm196_vm5, %v2034_v58, %v2032_v3 }
 0xc12   :  { %v2037_v24 = vsel %vm3804_vm1, %v2030_v4, %v2035_v32  ;;  %v2038_v8 = vsel %vm3811_vm8, %v2029_v12, %v2036_v31 }
 0xc13   :  { %v2043_v13 = vadd.f32 %v2041_v62, %v2037_v24  ;;  %v2044_v39 = vadd.f32 %v2042_v57, %v2038_v8 }
 0xc15   :  { %v2047_v34 = vsub.f32 %v2043_v13, %v2045_v55  ;;  %v2048_v36 = vsub.f32 %v2044_v39, %v2046_v38 }
 0xc17   :  { %2779 = vtanh.f32 %v2047_v34 }
 0xc18   :  { %2781 = vtanh.f32 %v2048_v36 }
 0xc21   :  { %v2780_v1 = vpop.eup %2779 }
 0xc22   :  { %v2782_v54 = vpop.eup %2781  ;;  %v2053_v50 = vsub.f32 %v2780_v1, %v2051_v23 }
 0xc23   :  { %v2054_v11 = vsub.f32 %v2782_v54, %v2052_v15 }
 0xc24   :  { %v2057_v41 = vsub.f32 %v2053_v50, %v2055_v16 }
 0xc25   :  { %v2058_v0 = vsub.f32 %v2054_v11, %v2056_v52 }
 0xc26   :  { %v2059_v26 = vmul.f32 0.5, %v2057_v41 }
 0xc27   :  { %v2060_v7 = vmul.f32 0.5, %v2058_v0 }
 0xc28   :  { %v4230_v51 = vadd.f32 %v2059_v26, %v4120_v9 }
 0xc29   :  { %v4233_v20 = vadd.f32 %v2060_v7, %v4123_v37 }
 0xc2a   :  { %v2063_v21 = vmul.f32 0.5, %v4230_v51  ;;  %v2132_v26 = vmul.f32 %v4230_v51, %v3841_v22 }
 0xc2b   :  { %v2064_v60 = vmul.f32 0.5, %v4233_v20 }
 0xc2c   :  { %v4238_v43 = vadd.f32 %v2063_v21, %v4128_v56  ;;  %v2133_v21 = vmul.f32 %v4233_v20, %v3843_v25 }
 0xc2d   :  { %v4241_v27 = vadd.f32 %v2064_v60, %v4131_v14 }
 0xc2e   :  { %2076 = vrot.lane.b32.xlu1 %v4238_v43, %s2813_s27  ;;  %v2122_v54 = vmul.f32 4.0, %v4238_v43  ;;  %v2128_v52 = vmul.f32 %v4238_v43, %v3837_v61 }
 0xc2f   :  { %2078 = vrot.lane.b32.xlu0 %v4241_v27, %s2813_s27  ;;  %v2069_v9 = vcombine.low %v4238_v43, %v4241_v27  ;;  %v2070_v37 = vcombine.high %v4238_v43, %v4241_v27  ;;  %v2123_v23 = vmul.f32 4.0, %v4241_v27  ;;  %v2129_v41 = vmul.f32 %v4241_v27, %v3839_v18 }
 0xc31   :  { %2586 = vst [vmem:[%s4546_s6 + $0x20] sm:$0xff] %v2069_v9  ;;  %2587 = vst [vmem:[%s4546_s6 + $0x60] sm:$0xff] %v2070_v37 }
 0xc32   :  { %2082 = vrot.lane.b32.xlu1 %v4238_v43, %s2818_s8 }
 0xc33   :  { %2084 = vrot.lane.b32.xlu0 %v4241_v27, %s2818_s8 }
 0xc36   :  { %2088 = vrot.lane.b32.xlu1 %v4238_v43, %s2815_s29 }
 0xc37   :  { %2090 = vrot.lane.b32.xlu0 %v4241_v27, %s2815_s29 }
 0xc3a   :  { %2094 = vrot.lane.b32.xlu1 %v4238_v43, %s2817_s7 }
 0xc3b   :  { %2096 = vrot.lane.b32.xlu0 %v4241_v27, %s2817_s7 }
 0xc3e   :  { %2102 = vrot.lane.b32.xlu1 %v4238_v43, %s2814_s28 }
 0xc3f   :  { %2104 = vrot.lane.b32.xlu0 %v4241_v27, %s2814_s28 }
 0xc42   :  { %2108 = vrot.lane.b32.xlu1 %v4238_v43, %s2812_s0 }
 0xc43   :  { %2110 = vrot.lane.b32.xlu0 %v4241_v27, %s2812_s0 }
 0xca0   :  { %v2077_v56 = vpop.permute.xlu1 %2076 }
 0xca1   :  { %v2079_v14 = vpop.permute.xlu0 %2078 }
 0xca2   :  { %v2080_v3 = vsel %vm100_vm2, %v2077_v56, %v2079_v14  ;;  %v2081_v62 = vsel %vm100_vm2, %v2079_v14, %v2077_v56 }
 0xca4   :  { %v2083_v46 = vpop.permute.xlu1 %2082 }
 0xca5   :  { %v2085_v10 = vpop.permute.xlu0 %2084 }
 0xca6   :  { %v2086_v63 = vsel %vm236_vm7, %v2083_v46, %v2085_v10  ;;  %v2087_v44 = vsel %vm236_vm7, %v2085_v10, %v2083_v46 }
 0xca7   :  { %v2116_v12 = vadd.f32 %v2086_v63, %v2081_v62  ;;  %v2117_v4 = vadd.f32 %v2087_v44, %v2080_v3 }
 0xca8   :  { %v2089_v48 = vpop.permute.xlu1 %2088 }
 0xca9   :  { %v2091_v5 = vpop.permute.xlu0 %2090 }
 0xcaa   :  { %v2092_v47 = vsel %vm216_vm6, %v2089_v48, %v2091_v5  ;;  %v2093_v49 = vsel %vm216_vm6, %v2091_v5, %v2089_v48 }
 0xcac   :  { %v2095_v6 = vpop.permute.xlu1 %2094 }
 0xcad   :  { %v2097_v33 = vpop.permute.xlu0 %2096 }
 0xcae   :  { %v2098_v40 = vsel %vm140_vm4, %v2095_v6, %v2097_v33  ;;  %v2099_v2 = vsel %vm140_vm4, %v2097_v33, %v2095_v6 }
 0xcaf   :  { %v2100_v57 = vsel %vm3774_vm15, %v2092_v47, %v2099_v2  ;;  %v2101_v58 = vsel %vm3785_vm0, %v2093_v49, %v2098_v40 }
 0xcb0   :  { %v2103_v53 = vpop.permute.xlu1 %2102  ;;  %v2118_v31 = vadd.f32 %v2116_v12, %v2100_v57  ;;  %v2119_v24 = vadd.f32 %v2117_v4, %v2101_v58 }
 0xcb1   :  { %v2105_v35 = vpop.permute.xlu0 %2104 }
 0xcb2   :  { %v2106_v38 = vsel %vm120_vm3, %v2103_v53, %v2105_v35  ;;  %v2107_v13 = vsel %vm120_vm3, %v2105_v35, %v2103_v53 }
 0xcb4   :  { %v2109_v32 = vpop.permute.xlu1 %2108 }
 0xcb5   :  { %v2111_v8 = vpop.permute.xlu0 %2110 }
 0xcb6   :  { %v2112_v39 = vsel %vm196_vm5, %v2109_v32, %v2111_v8  ;;  %v2113_v55 = vsel %vm196_vm5, %v2111_v8, %v2109_v32 }
 0xcb7   :  { %v2114_v34 = vsel %vm3804_vm1, %v2107_v13, %v2112_v39  ;;  %v2115_v36 = vsel %vm3811_vm8, %v2106_v38, %v2113_v55 }
 0xcb8   :  { %v2120_v1 = vadd.f32 %v2118_v31, %v2114_v34  ;;  %v2121_v15 = vadd.f32 %v2119_v24, %v2115_v36 }
 0xcba   :  { %v2124_v16 = vsub.f32 %v2120_v1, %v2122_v54  ;;  %v2125_v50 = vsub.f32 %v2121_v15, %v2123_v23 }
 0xcbc   :  { %2783 = vtanh.f32 %v2124_v16 }
 0xcbd   :  { %2785 = vtanh.f32 %v2125_v50 }
 0xcc6   :  { %v2784_v11 = vpop.eup %2783 }
 0xcc7   :  { %v2786_v0 = vpop.eup %2785  ;;  %v2130_v7 = vsub.f32 %v2784_v11, %v2128_v52 }
 0xcc8   :  { %v2131_v60 = vsub.f32 %v2786_v0, %v2129_v41 }
 0xcc9   :  { %v2134_v9 = vsub.f32 %v2130_v7, %v2132_v26 }
 0xcca   :  { %v2135_v37 = vsub.f32 %v2131_v60, %v2133_v21 }
 0xccb   :  { %v2136_v56 = vmul.f32 0.5, %v2134_v9 }
 0xccc   :  { %v2137_v14 = vmul.f32 0.5, %v2135_v37 }
 0xccd   :  { %v4320_v46 = vadd.f32 %v2136_v56, %v4230_v51 }
 0xcce   :  { %v4323_v10 = vadd.f32 %v2137_v14, %v4233_v20 }
 0xccf   :  { %v2140_v48 = vmul.f32 0.5, %v4320_v46 }
 0xcd0   :  { %v2141_v5 = vmul.f32 0.5, %v4323_v10 }
 0xcd1   :  { %v4328_v6 = vadd.f32 %v2140_v48, %v4238_v43  ;;  %v2209_v48 = vmul.f32 %v4320_v46, %v3841_v22 }
 0xcd2   :  { %v4331_v33 = vadd.f32 %v2141_v5, %v4241_v27 }
 0xcd3   :  { %2153 = vrot.lane.b32.xlu1 %v4328_v6, %s2813_s27  ;;  %v2199_v7 = vmul.f32 4.0, %v4328_v6  ;;  %v2205_v9 = vmul.f32 %v4328_v6, %v3837_v61 }
 0xcd4   :  { %2155 = vrot.lane.b32.xlu0 %v4331_v33, %s2813_s27  ;;  %v2146_v51 = vcombine.low %v4328_v6, %v4331_v33  ;;  %v2147_v20 = vcombine.high %v4328_v6, %v4331_v33  ;;  %v2200_v41 = vmul.f32 4.0, %v4331_v33  ;;  %v2206_v56 = vmul.f32 %v4331_v33, %v3839_v18 }
 0xcd6   :  { %2588 = vst [vmem:[%s4546_s6 + $0x28] sm:$0xff] %v2146_v51  ;;  %2589 = vst [vmem:[%s4546_s6 + $0x68] sm:$0xff] %v2147_v20  ;;  %v2210_v51 = vmul.f32 %v4323_v10, %v3843_v25 }
 0xcd7   :  { %2159 = vrot.lane.b32.xlu1 %v4328_v6, %s2818_s8 }
 0xcd8   :  { %2161 = vrot.lane.b32.xlu0 %v4331_v33, %s2818_s8 }
 0xcdb   :  { %2165 = vrot.lane.b32.xlu1 %v4328_v6, %s2815_s29 }
 0xcdc   :  { %2167 = vrot.lane.b32.xlu0 %v4331_v33, %s2815_s29 }
 0xcdf   :  { %2171 = vrot.lane.b32.xlu1 %v4328_v6, %s2817_s7 }
 0xce0   :  { %2173 = vrot.lane.b32.xlu0 %v4331_v33, %s2817_s7 }
 0xce3   :  { %2179 = vrot.lane.b32.xlu1 %v4328_v6, %s2814_s28 }
 0xce4   :  { %2181 = vrot.lane.b32.xlu0 %v4331_v33, %s2814_s28 }
 0xce7   :  { %2185 = vrot.lane.b32.xlu1 %v4328_v6, %s2812_s0 }
 0xce8   :  { %2187 = vrot.lane.b32.xlu0 %v4331_v33, %s2812_s0 }
 0xd45   :  { %v2154_v40 = vpop.permute.xlu1 %2153 }
 0xd46   :  { %v2156_v2 = vpop.permute.xlu0 %2155 }
 0xd47   :  { %v2157_v24 = vsel %vm100_vm2, %v2154_v40, %v2156_v2  ;;  %v2158_v8 = vsel %vm100_vm2, %v2156_v2, %v2154_v40 }
 0xd49   :  { %v2160_v63 = vpop.permute.xlu1 %2159 }
 0xd4a   :  { %v2162_v44 = vpop.permute.xlu0 %2161 }
 0xd4b   :  { %v2163_v57 = vsel %vm236_vm7, %v2160_v63, %v2162_v44  ;;  %v2164_v58 = vsel %vm236_vm7, %v2162_v44, %v2160_v63 }
 0xd4c   :  { %v2193_v39 = vadd.f32 %v2163_v57, %v2158_v8  ;;  %v2194_v55 = vadd.f32 %v2164_v58, %v2157_v24 }
 0xd4d   :  { %v2166_v53 = vpop.permute.xlu1 %2165 }
 0xd4e   :  { %v2168_v47 = vpop.permute.xlu0 %2167 }
 0xd4f   :  { %v2169_v4 = vsel %vm216_vm6, %v2166_v53, %v2168_v47  ;;  %v2170_v32 = vsel %vm216_vm6, %v2168_v47, %v2166_v53 }
 0xd51   :  { %v2172_v49 = vpop.permute.xlu1 %2171 }
 0xd52   :  { %v2174_v35 = vpop.permute.xlu0 %2173 }
 0xd53   :  { %v2175_v3 = vsel %vm140_vm4, %v2172_v49, %v2174_v35  ;;  %v2176_v62 = vsel %vm140_vm4, %v2174_v35, %v2172_v49 }
 0xd54   :  { %v2177_v38 = vsel %vm3774_vm15, %v2169_v4, %v2176_v62  ;;  %v2178_v13 = vsel %vm3785_vm0, %v2170_v32, %v2175_v3 }
 0xd55   :  { %v2180_v12 = vpop.permute.xlu1 %2179  ;;  %v2195_v36 = vadd.f32 %v2193_v39, %v2177_v38  ;;  %v2196_v23 = vadd.f32 %v2194_v55, %v2178_v13 }
 0xd56   :  { %v2182_v31 = vpop.permute.xlu0 %2181 }
 0xd57   :  { %v2183_v15 = vsel %vm120_vm3, %v2180_v12, %v2182_v31  ;;  %v2184_v54 = vsel %vm120_vm3, %v2182_v31, %v2180_v12 }
 0xd59   :  { %v2186_v34 = vpop.permute.xlu1 %2185 }
 0xd5a   :  { %v2188_v1 = vpop.permute.xlu0 %2187 }
 0xd5b   :  { %v2189_v16 = vsel %vm196_vm5, %v2186_v34, %v2188_v1  ;;  %v2190_v50 = vsel %vm196_vm5, %v2188_v1, %v2186_v34 }
 0xd5c   :  { %v2191_v52 = vsel %vm3804_vm1, %v2184_v54, %v2189_v16  ;;  %v2192_v11 = vsel %vm3811_vm8, %v2183_v15, %v2190_v50 }
 0xd5d   :  { %v2197_v0 = vadd.f32 %v2195_v36, %v2191_v52  ;;  %v2198_v26 = vadd.f32 %v2196_v23, %v2192_v11 }
 0xd5f   :  { %v2201_v21 = vsub.f32 %v2197_v0, %v2199_v7  ;;  %v2202_v60 = vsub.f32 %v2198_v26, %v2200_v41 }
 0xd61   :  { %2787 = vtanh.f32 %v2201_v21 }
 0xd62   :  { %2789 = vtanh.f32 %v2202_v60 }
 0xd6b   :  { %v2788_v37 = vpop.eup %2787 }
 0xd6c   :  { %v2790_v14 = vpop.eup %2789  ;;  %v2207_v5 = vsub.f32 %v2788_v37, %v2205_v9 }
 0xd6d   :  { %v2208_v20 = vsub.f32 %v2790_v14, %v2206_v56 }
 0xd6e   :  { %v2211_v40 = vsub.f32 %v2207_v5, %v2209_v48 }
 0xd6f   :  { %v2212_v2 = vsub.f32 %v2208_v20, %v2210_v51 }
 0xd70   :  { %v2213_v63 = vmul.f32 0.5, %v2211_v40 }
 0xd71   :  { %v2214_v44 = vmul.f32 0.5, %v2212_v2 }
 0xd72   :  { %v4410_v53 = vadd.f32 %v2213_v63, %v4320_v46 }
 0xd73   :  { %v4413_v47 = vadd.f32 %v2214_v44, %v4323_v10 }
 0xd74   :  { %v2217_v49 = vmul.f32 0.5, %v4410_v53  ;;  %v2286_v42 = vmul.f32 %v4410_v53, %v3841_v22 }
 0xd75   :  { %v2218_v35 = vmul.f32 0.5, %v4413_v47  ;;  %v2287_v44 = vmul.f32 %v4413_v47, %v3843_v25  ;;  %v2803_v25 = vcombine.low %v4238_v43, %v4328_v6 }
 0xd76   :  { %v4418_v3 = vadd.f32 %v2217_v49, %v4328_v6 }
 0xd77   :  { %v4421_v62 = vadd.f32 %v2218_v35, %v4331_v33 }
 0xd78   :  { %2230 = vrot.lane.b32.xlu1 %v4418_v3, %s2813_s27  ;;  %v2276_v5 = vmul.f32 4.0, %v4418_v3  ;;  %v2282_v45 = vmul.f32 %v4418_v3, %v3837_v61 }
 0xd79   :  { %2232 = vrot.lane.b32.xlu0 %v4421_v62, %s2813_s27  ;;  %v2223_v46 = vcombine.low %v4418_v3, %v4421_v62  ;;  %v2224_v10 = vcombine.high %v4418_v3, %v4421_v62  ;;  %v2277_v56 = vmul.f32 4.0, %v4421_v62  ;;  %v2283_v17 = vmul.f32 %v4421_v62, %v3839_v18 }
 0xd7b   :  { %2590 = vst [vmem:[%s4546_s6 + $0x30] sm:$0xff] %v2223_v46  ;;  %2591 = vst [vmem:[%s4546_s6 + $0x70] sm:$0xff] %v2224_v10 }
 0xd7c   :  { %2236 = vrot.lane.b32.xlu1 %v4418_v3, %s2818_s8 }
 0xd7d   :  { %2238 = vrot.lane.b32.xlu0 %v4421_v62, %s2818_s8 }
 0xd80   :  { %2242 = vrot.lane.b32.xlu1 %v4418_v3, %s2815_s29 }
 0xd81   :  { %2244 = vrot.lane.b32.xlu0 %v4421_v62, %s2815_s29 }
 0xd84   :  { %2248 = vrot.lane.b32.xlu1 %v4418_v3, %s2817_s7 }
 0xd85   :  { %2250 = vrot.lane.b32.xlu0 %v4421_v62, %s2817_s7 }
 0xd88   :  { %2256 = vrot.lane.b32.xlu1 %v4418_v3, %s2814_s28 }
 0xd89   :  { %2258 = vrot.lane.b32.xlu0 %v4421_v62, %s2814_s28 }
 0xd8c   :  { %2262 = vrot.lane.b32.xlu1 %v4418_v3, %s2812_s0 }
 0xd8d   :  { %2264 = vrot.lane.b32.xlu0 %v4421_v62, %s2812_s0 }
 0xdea   :  { %v2231_v57 = vpop.permute.xlu1 %2230 }
 0xdeb   :  { %v2233_v58 = vpop.permute.xlu0 %2232 }
 0xdec   :  { %v2234_v15 = vsel %vm100_vm2, %v2231_v57, %v2233_v58  ;;  %v2235_v54 = vsel %vm100_vm2, %v2233_v58, %v2231_v57  ;;  %vm2340_vm2 = vcmask 261120  }
 0xdee   :  { %v2237_v12 = vpop.permute.xlu1 %2236 }
 0xdef   :  { %v2239_v4 = vpop.permute.xlu0 %2238 }
 0xdf0   :  { %v2240_v39 = vsel %vm236_vm7, %v2237_v12, %v2239_v4  ;;  %v2241_v55 = vsel %vm236_vm7, %v2239_v4, %v2237_v12 }
 0xdf1   :  { %v2270_v52 = vadd.f32 %v2240_v39, %v2235_v54  ;;  %v2271_v11 = vadd.f32 %v2241_v55, %v2234_v15  ;;  %v2315_v39 = vld [vmem:[%s4547_s4] sm:$0x7f]  ;;  %v2808_v55 = vcombine.high %v4241_v27, %v4331_v33 }
 0xdf2   :  { %v2243_v32 = vpop.permute.xlu1 %2242 }
 0xdf3   :  { %v2245_v31 = vpop.permute.xlu0 %2244 }
 0xdf4   :  { %v2246_v36 = vsel %vm216_vm6, %v2243_v32, %v2245_v31  ;;  %v2247_v23 = vsel %vm216_vm6, %v2245_v31, %v2243_v32 }
 0xdf6   :  { %v2249_v24 = vpop.permute.xlu1 %2248 }
 0xdf7   :  { %v2251_v8 = vpop.permute.xlu0 %2250 }
 0xdf8   :  { %v2252_v38 = vsel %vm140_vm4, %v2249_v24, %v2251_v8  ;;  %v2253_v13 = vsel %vm140_vm4, %v2251_v8, %v2249_v24 }
 0xdf9   :  { %v2254_v16 = vsel %vm3774_vm15, %v2246_v36, %v2253_v13  ;;  %v2255_v50 = vsel %vm3785_vm0, %v2247_v23, %v2252_v38 }
 0xdfa   :  { %v2257_v34 = vpop.permute.xlu1 %2256  ;;  %v2272_v0 = vadd.f32 %v2270_v52, %v2254_v16  ;;  %v2273_v26 = vadd.f32 %v2271_v11, %v2255_v50 }
 0xdfb   :  { %v2259_v1 = vpop.permute.xlu0 %2258 }
 0xdfc   :  { %v2260_v21 = vsel %vm120_vm3, %v2257_v34, %v2259_v1  ;;  %v2261_v60 = vsel %vm120_vm3, %v2259_v1, %v2257_v34 }
 0xdfe   :  { %v2263_v41 = vpop.permute.xlu1 %2262 }
 0xdff   :  { %v2265_v7 = vpop.permute.xlu0 %2264 }
 0xe00   :  { %v2266_v9 = vsel %vm196_vm5, %v2263_v41, %v2265_v7  ;;  %v2267_v28 = vsel %vm196_vm5, %v2265_v7, %v2263_v41 }
 0xe01   :  { %v2268_v59 = vsel %vm3804_vm1, %v2261_v60, %v2266_v9  ;;  %v2269_v37 = vsel %vm3811_vm8, %v2260_v21, %v2267_v28 }
 0xe02   :  { %v2274_v14 = vadd.f32 %v2272_v0, %v2268_v59  ;;  %v2275_v48 = vadd.f32 %v2273_v26, %v2269_v37 }
 0xe04   :  { %v2278_v51 = vsub.f32 %v2274_v14, %v2276_v5  ;;  %v2279_v20 = vsub.f32 %v2275_v48, %v2277_v56 }
 0xe06   :  { %2791 = vtanh.f32 %v2278_v51 }
 0xe07   :  { %2793 = vtanh.f32 %v2279_v20 }
 0xe10   :  { %v2792_v40 = vpop.eup %2791 }
 0xe11   :  { %v2794_v2 = vpop.eup %2793  ;;  %v2284_v63 = vsub.f32 %v2792_v40, %v2282_v45 }
 0xe12   :  { %v2285_v49 = vsub.f32 %v2794_v2, %v2283_v17 }
 0xe13   :  { %v2288_v35 = vsub.f32 %v2284_v63, %v2286_v42 }
 0xe14   :  { %v2289_v46 = vsub.f32 %v2285_v49, %v2287_v44 }
 0xe15   :  { %v2290_v10 = vmul.f32 0.5, %v2288_v35 }
 0xe16   :  { %v2291_v57 = vmul.f32 0.5, %v2289_v46 }
 0xe17   :  { %v2292_v58 = vadd.f32 %v2290_v10, %v4410_v53  ;;  %v2804_v53 = vcombine.low %v4241_v27, %v4331_v33 }
 0xe18   :  { %v2293_v61 = vadd.f32 %v2291_v57, %v4413_v47 }
 0xe19   :  { %v2294_v12 = vmul.f32 0.5, %v2292_v58 }
 0xe1a   :  { %v2295_v4 = vmul.f32 0.5, %v2293_v61 }
 0xe1b   :  { %v2296_v18 = vadd.f32 %v2294_v12, %v4418_v3 }
 0xe1c   :  { %v2297_v32 = vadd.f32 %v2295_v4, %v4421_v62 }
 0xe1d   :  { %v2805_v47 = vcombine.low %v4418_v3, %v2296_v18  ;;  %v2809_v34 = vcombine.high %v4418_v3, %v2296_v18 }
 0xe1e   :  { %v2300_v22 = vcombine.low %v2296_v18, %v2297_v32  ;;  %v2301_v31 = vcombine.high %v2296_v18, %v2297_v32  ;;  %v2806_v24 = vcombine.low %v4421_v62, %v2297_v32  ;;  %v2807_v13 = vcombine.high %v4421_v62, %v2297_v32 }
 0xe1f   :  { %v2736_v38 = vpack.c.bf16 %v2805_v47, %v2803_v25  ;;  %v2810_v62 = vcombine.high %v4238_v43, %v4328_v6 }
 0xe20   :  { %2592 = vst [vmem:[%s4546_s6 + $0x38] sm:$0xff] %v2300_v22  ;;  %2593 = vst [vmem:[%s4546_s6 + $0x78] sm:$0xff] %v2301_v31  ;;  %v2734_v8 = vpack.c.bf16 %v2806_v24, %v2804_v53  ;;  %v2742_v36 = vpack.c.bf16 %v2807_v13, %v2808_v55 }
 0xe21   :  { %v2744_v23 = vpack.c.bf16 %v2809_v34, %v2810_v62 }
 0xe22   :  { %2735 = vmatprep.subr.bf16.mxu0 %v2734_v8 }
 0xe23   :  { %2737 = vmatpush1.bf16.msra.mxu0 %v2736_v38 }
 0xe24   :  { %2739 = vmatprep.subr.bf16.mxu0 %v4167_v19  ;;  %v2426_v19 = vld [vmem:[%s4547_s4] sm:$0x7f] }
 0xe26   :  { %2594 = vmatmul.mubr.msk.f32.vlgmr.msra.gmra.mrb[10].mxu0 %vm2340_vm2, %v2315_v39 }
 0xe27   :  { %2741 = vmatpush1.bf16.msra.mxu0 %v4169_v29  ;;  %2518 = vmatprep.mubr.f32.mxu0 %v2819_v30 }
 0xe28   :  { %2743 = vmatprep.subr.bf16.mxu0 %v2742_v36 }
 0xe2b   :  { %2745 = vmatpush1.bf16.msra.mxu0 %v2744_v23 }
 0xe2e   :  { %2603 = vmatmul.mubr.msk.f32.vlgmr.msra.gmra.mrb[12].mxu0 %vm2340_vm2, %v2426_v19 }
 0xef9   :  { %v2410_v27 = vpop.f32.mrb[10].mxu0 }
 0xefa   :  { %2415 = vst [vmem:[%s4548_s5] sm:$0x7f] %v2410_v27  ;;  %v2412_v33 = vpop.f32.mrb[11].mxu0 }
 0xefb   :  { %2416 = vst [vmem:[%s4548_s5 + $0x8] sm:$0x7f] %v2412_v33 }
 0xf01   :  { %v2520_v29 = vpop.f32.mrb[12].mxu0 }
 0xf02   :  { %2604 = vst [vmem:[%s4548_s5 + $0x10] sm:$0x7f] %v2520_v29  ;;  %v2522_v30 = vpop.f32.mrb[13].mxu0 }
 0xf03   :  { %2605 = vst [vmem:[%s4548_s5 + $0x18] sm:$0x7f] %v2522_v30 }

</bundles_post_ra>
